<compile_context>
chip_gen: v5e
topology: v5e:2x2
jax: 0.10.0
libtpu: 0.0.40
codegen_flags: <defaults>
</compile_context>

<pallas_src>
import functools

import jax
import jax.numpy as jnp
from jax.experimental import pallas as pl
from jax.experimental.pallas import tpu as pltpu


def _round_up(n, m):
    return ((n + m - 1) // m) * m


def _pad_gate_cols(w, h, hp):
    """Zero-pad each of the 4 gate blocks (size h) along the last axis to hp."""
    if h == hp:
        return w
    parts = jnp.split(w, 4, axis=-1)
    pad = [(0, 0)] * (w.ndim - 1) + [(0, hp - h)]
    return jnp.concatenate([jnp.pad(p, pad) for p in parts], axis=-1)


def _vmem_footprint_bytes(t_chunk, b_pad, h_pad, in_dims, num_layers, c_itemsize):
    """Conservative VMEM footprint: double-buffered blocks + scratch + weights."""
    total = 0
    total += 2 * t_chunk * b_pad * in_dims[0] * c_itemsize            # x block
    total += 2 * t_chunk * b_pad * h_pad * c_itemsize                 # y block
    for d in in_dims:                                                 # weights+bias
        total += 2 * ((d + h_pad) * 4 * h_pad * c_itemsize + 4 * h_pad * 4)
    total += 2 * 2 * num_layers * b_pad * h_pad * 4                   # h_n / c_n
    total += t_chunk * b_pad * h_pad * c_itemsize                     # act_sc
    total += t_chunk * b_pad * 4 * h_pad * 4                          # gate_sc (f32)
    return total


def _make_encoder_kernel(num_layers, t_chunk, b_pad, h_pad, unroll):
    """Fused multi-layer LSTM kernel over one time-chunk per grid step."""

    def kernel(*refs):
        x_ref = refs[0]
        w_refs = refs[1:1 + 3 * num_layers]
        y_ref, hn_ref, cn_ref = refs[1 + 3 * num_layers:4 + 3 * num_layers]
        act_sc, gate_sc = refs[4 + 3 * num_layers:]

        # Recurrent state lives in the constant-block-index hn/cn outputs, which
        # are VMEM-resident for the entire grid (P3 accumulator pattern).
        # NOTE: this requires the (single) time-chunk grid axis to remain
        # sequential ("arbitrary") — never mark it "parallel" / shard it.
        @pl.when(pl.program_id(0) == 0)
        def _():
            hn_ref[...] = jnp.zeros_like(hn_ref)
            cn_ref[...] = jnp.zeros_like(cn_ref)

        def sigmoid(x):
            # One EUP tanh + cheap VPU fixup instead of a possible exp+divide.
            return 0.5 * jnp.tanh(0.5 * x) + 0.5

        for layer in range(num_layers):
            wih_ref, whh_ref, b_ref = w_refs[3 * layer:3 * layer + 3]
            cd = whh_ref.dtype
            last_layer = layer == num_layers - 1
            out_ref = y_ref if last_layer else act_sc

            # ---- hoisted input projection: one big MXU matmul per chunk ----
            # (t_chunk*B_pad, in_dim) x (in_dim, 4*H_pad), bias folded in once.
            inp = x_ref[...].astype(cd) if layer == 0 else act_sc[...]
            gate_sc[...] = (
                jnp.dot(inp, wih_ref[...], preferred_element_type=jnp.float32)
                + b_ref[...])

            def step(t, carry, out_ref=out_ref, whh_ref=whh_ref, cd=cd):
                h, c = carry                                  # f32 (B_pad, H_pad)
                row = pl.multiple_of(t * b_pad, b_pad)        # sublane-aligned
                gates = gate_sc[pl.ds(row, b_pad), :] + jnp.dot(
                    h.astype(cd), whh_ref[...],
                    preferred_element_type=jnp.float32)
                # PyTorch gate order [i, f, g, o]; slices are lane-aligned
                # because h_pad is a multiple of 128.
                i_g = sigmoid(gates[:, 0 * h_pad:1 * h_pad])
                f_g = sigmoid(gates[:, 1 * h_pad:2 * h_pad])
                g_g = jnp.tanh(gates[:, 2 * h_pad:3 * h_pad])
                o_g = sigmoid(gates[:, 3 * h_pad:4 * h_pad])
                c_new = f_g * c + i_g * g_g
                h_new = o_g * jnp.tanh(c_new)
                # Lane/sublane-dense store into the chunk's VMEM-resident slab.
                out_ref[pl.ds(row, b_pad), :] = h_new.astype(out_ref.dtype)
                return h_new, c_new

            h_fin, c_fin = jax.lax.fori_loop(
                0, t_chunk, step, (hn_ref[layer], cn_ref[layer]), unroll=unroll)

            # Carry the state to the next chunk (and, at grid end, to HBM).
            hn_ref[layer] = h_fin
            cn_ref[layer] = c_fin

    return kernel


@functools.partial(
    jax.jit, static_argnames=("compute_dtype", "t_chunk", "vmem_budget_bytes"))
def encoder_forward(x, params, compute_dtype=jnp.bfloat16, t_chunk=None,
                    vmem_budget_bytes=48 * 2**20):
    """Equivalent of Encoder.forward(x) -> (output, (h_n, c_n)).

    x:      (B, T, input_size) float32, batch_first (as in the PyTorch module)
    params: sequence of (w_ih, w_hh, b_ih, b_hh) per layer, PyTorch shapes:
            w_ih (4H, in_dim), w_hh (4H, H), b_* (4H,)
    compute_dtype: jnp.bfloat16 (default, MXU-native fast path, f32 accumulation)
                   or jnp.float32 (exact-match mode).
    """
    B, T, D = x.shape
    L = len(params)
    H = params[0][1].shape[1]
    c_itemsize = jnp.dtype(compute_dtype).itemsize
    sublane = max(8, 32 // c_itemsize)       # 8 for f32, 16 for bf16
    Hp = _round_up(max(H, 1), 128)           # lane-aligned gates + lane-dense out
    Bp = _round_up(max(B, 1), sublane)       # full (packed) sublanes per step
    in_dims = [D] + [Hp] * (L - 1)           # padded per-layer input dims

    # ---- size the time-chunk from an explicit VMEM budget (v7x-safe) ----
    if t_chunk is None:
        t_chunk = 1
        for cand in range(T, 0, -1):
            if T % cand == 0 and _vmem_footprint_bytes(
                    cand, Bp, Hp, in_dims, L, c_itemsize) <= vmem_budget_bytes:
                t_chunk = cand
                break
    assert T % t_chunk == 0, "t_chunk must divide the sequence length"
    num_chunks = T // t_chunk

    footprint = _vmem_footprint_bytes(t_chunk, Bp, Hp, in_dims, L, c_itemsize)
    vmem_limit = int(min(max(int(footprint * 1.3) + (2 << 20), 32 << 20),
                         128 << 20))

    # ---- layout prep in XLA (cheap): time-major 2D, batch padded ----
    xp = jnp.pad(x.astype(jnp.float32), ((0, Bp - B), (0, 0), (0, 0)))
    x2d = jnp.transpose(xp, (1, 0, 2)).reshape(T * Bp, D).astype(compute_dtype)

    weight_args = []
    in_specs = [pl.BlockSpec((t_chunk * Bp, D), lambda k: (k, 0))]
    for l in range(L):
        w_ih, w_hh, b_ih, b_hh = params[l]
        in_dim = w_ih.shape[1]
        # Transpose to (in_dim, 4H); zero-pad each gate block H -> Hp.
        w_ih_p = _pad_gate_cols(jnp.transpose(w_ih), H, Hp)
        w_hh_p = _pad_gate_cols(jnp.transpose(w_hh), H, Hp)
        b_p = _pad_gate_cols((b_ih + b_hh)[None, :], H, Hp)
        # Zero-pad input rows for deeper layers (their input is zero-padded h)
        # and the recurrent rows of w_hh: exact, padded units stay zero.
        if l > 0 and in_dim != Hp:
            w_ih_p = jnp.pad(w_ih_p, ((0, Hp - in_dim), (0, 0)))
        if H != Hp:
            w_hh_p = jnp.pad(w_hh_p, ((0, Hp - H), (0, 0)))
        w_ih_p = w_ih_p.astype(compute_dtype)
        w_hh_p = w_hh_p.astype(compute_dtype)
        b_p = b_p.astype(jnp.float32)
        weight_args += [w_ih_p, w_hh_p, b_p]
        in_specs += [
            pl.BlockSpec(w_ih_p.shape, lambda k: (0, 0)),
            pl.BlockSpec(w_hh_p.shape, lambda k: (0, 0)),
            pl.BlockSpec((1, 4 * Hp), lambda k: (0, 0)),
        ]

    # Advisory cost estimate so XLA schedules surrounding ops around the kernel.
    flops = sum(2 * T * Bp * (d + Hp) * 4 * Hp for d in in_dims)
    transcendentals = 5 * T * Bp * Hp * L
    bytes_accessed = (T * Bp * D * c_itemsize + T * Bp * Hp * c_itemsize
                      + sum((d + Hp) * 4 * Hp * c_itemsize + 4 * Hp * 4
                            for d in in_dims)
                      + 2 * L * Bp * Hp * 4)
    cost = pl.CostEstimate(flops=int(flops),
                           transcendentals=int(transcendentals),
                           bytes_accessed=int(bytes_accessed))

    grid_spec = pltpu.PrefetchScalarGridSpec(
        num_scalar_prefetch=0,
        grid=(num_chunks,),
        in_specs=in_specs,
        out_specs=[
            pl.BlockSpec((t_chunk * Bp, Hp), lambda k: (k, 0)),   # y (time-major)
            pl.BlockSpec((L, Bp, Hp), lambda k: (0, 0, 0)),       # h_n (resident)
            pl.BlockSpec((L, Bp, Hp), lambda k: (0, 0, 0)),       # c_n (resident)
        ],
        scratch_shapes=[
            pltpu.VMEM((t_chunk * Bp, Hp), compute_dtype),        # inter-layer acts
            pltpu.VMEM((t_chunk * Bp, 4 * Hp), jnp.float32),      # hoisted gates
        ],
    )

    unroll = t_chunk if t_chunk <= 8 else 8   # partial unroll of the recurrence

    y2d, h_n, c_n = pl.pallas_call(
        _make_encoder_kernel(L, t_chunk, Bp, Hp, unroll),
        grid_spec=grid_spec,
        out_shape=(
            jax.ShapeDtypeStruct((T * Bp, Hp), compute_dtype),    # y in compute dtype
            jax.ShapeDtypeStruct((L, Bp, Hp), jnp.float32),
            jax.ShapeDtypeStruct((L, Bp, Hp), jnp.float32),
        ),
        compiler_params=pltpu.CompilerParams(
            # Time recurrence is inherently serial; keep the chunk axis
            # "arbitrary".  (v7x second TensorCore: see TODO at top of file.)
            dimension_semantics=("arbitrary",),
            vmem_limit_bytes=vmem_limit,
        ),
        cost_estimate=cost,
    )(x2d, *weight_args)

    # Back to batch-first, drop batch / hidden padding (cheap XLA ops).
    y = (y2d.reshape(T, Bp, Hp)[:, :B, :H]
         .transpose(1, 0, 2).astype(jnp.float32))
    return y, (h_n[:, :B, :H], c_n[:, :B, :H])


def init_encoder_params(key, input_size, hidden_size, num_layers=2):
    """Deterministic parameter init mimicking nn.LSTM shapes (uniform +-1/sqrt(H))."""
    params = []
    k = 1.0 / jnp.sqrt(hidden_size)
    for layer in range(num_layers):
        in_dim = input_size if layer == 0 else hidden_size
        key, k1, k2, k3, k4 = jax.random.split(key, 5)
        w_ih = jax.random.uniform(k1, (4 * hidden_size, in_dim), jnp.float32, -k, k)
        w_hh = jax.random.uniform(k2, (4 * hidden_size, hidden_size), jnp.float32, -k, k)
        b_ih = jax.random.uniform(k3, (4 * hidden_size,), jnp.float32, -k, k)
        b_hh = jax.random.uniform(k4, (4 * hidden_size,), jnp.float32, -k, k)
        params.append((w_ih, w_hh, b_ih, b_hh))
    return params


def encoder_forward_ref(x, params):
    """Pure-JAX reference (lax.scan, full-precision matmuls)."""
    B = x.shape[0]
    H = params[0][1].shape[1]
    hiprec = jax.lax.Precision.HIGHEST
    layer_in = x
    h_all, c_all = [], []
    for (w_ih, w_hh, b_ih, b_hh) in params:
        b = b_ih + b_hh

        def step(carry, x_t, w_ih=w_ih, w_hh=w_hh, b=b):
            h, c = carry
            gates = (jnp.dot(x_t, w_ih.T, precision=hiprec)
                     + jnp.dot(h, w_hh.T, precision=hiprec) + b)
            i_g, f_g, g_g, o_g = jnp.split(gates, 4, axis=-1)
            i_g = jax.nn.sigmoid(i_g)
            f_g = jax.nn.sigmoid(f_g)
            g_g = jnp.tanh(g_g)
            o_g = jax.nn.sigmoid(o_g)
            c_new = f_g * c + i_g * g_g
            h_new = o_g * jnp.tanh(c_new)
            return (h_new, c_new), h_new

        init = (jnp.zeros((B, H), jnp.float32), jnp.zeros((B, H), jnp.float32))
        (h_T, c_T), ys = jax.lax.scan(step, init, jnp.transpose(layer_in, (1, 0, 2)))
        layer_in = jnp.transpose(ys, (1, 0, 2))
        h_all.append(h_T)
        c_all.append(c_T)
    return layer_in, (jnp.stack(h_all, 0), jnp.stack(c_all, 0))


if __name__ == "__main__":
    batch, seq, input_size, hidden_size, num_layers = 2, 8, 16, 32, 2

    key = jax.random.PRNGKey(0)
    key, kx = jax.random.split(key)
    x = jax.random.normal(kx, (batch, seq, input_size), jnp.float32)
    params = init_encoder_params(key, input_size, hidden_size, num_layers)

    out_ref, (h_ref, c_ref) = encoder_forward_ref(x, params)

    # Exact-match float32 path: tight check against the full-precision reference.
    out, (h_n, c_n) = encoder_forward(x, params, compute_dtype=jnp.float32)
    out = jax.block_until_ready(out)
    h_n = jax.block_until_ready(h_n)
    c_n = jax.block_until_ready(c_n)
    assert out.shape == (batch, seq, hidden_size)
    assert h_n.shape == (num_layers, batch, hidden_size)
    assert c_n.shape == (num_layers, batch, hidden_size)
    assert jnp.allclose(out, out_ref, rtol=1e-4, atol=1e-4)
    assert jnp.allclose(h_n, h_ref, rtol=1e-4, atol=1e-4)
    assert jnp.allclose(c_n, c_ref, rtol=1e-4, atol=1e-4)

    # Default fast path: bf16 weights/activations (MXU-native), f32 accumulation
    # and f32 gate nonlinearities.
    out_bf, (h_bf, c_bf) = encoder_forward(x, params)
    out_bf = jax.block_until_ready(out_bf)
    h_bf = jax.block_until_ready(h_bf)
    c_bf = jax.block_until_ready(c_bf)
    assert out_bf.shape == (batch, seq, hidden_size)
    assert jnp.allclose(out_bf, out_ref, rtol=5e-2, atol=5e-2)
    assert jnp.allclose(h_bf, h_ref, rtol=5e-2, atol=5e-2)
    assert jnp.allclose(c_bf, c_ref, rtol=5e-2, atol=5e-2)

    print("KERNEL_OK")
</pallas_src>

<mosaic_0001>
module attributes {stable_mosaic.version = 11 : i64} {
  func.func @kernel(%arg0: i32, %arg1: memref<64x16xf32, #tpu.memory_space<vmem>>, %arg2: memref<16x512xf32, #tpu.memory_space<vmem>>, %arg3: memref<128x512xf32, #tpu.memory_space<vmem>>, %arg4: memref<1x512xf32, #tpu.memory_space<vmem>>, %arg5: memref<128x512xf32, #tpu.memory_space<vmem>>, %arg6: memref<128x512xf32, #tpu.memory_space<vmem>>, %arg7: memref<1x512xf32, #tpu.memory_space<vmem>>, %arg8: memref<64x128xf32, #tpu.memory_space<vmem>>, %arg9: memref<2x8x128xf32, #tpu.memory_space<vmem>>, %arg10: memref<2x8x128xf32, #tpu.memory_space<vmem>>, %arg11: memref<64x128xf32, #tpu.memory_space<vmem>>, %arg12: memref<64x512xf32, #tpu.memory_space<vmem>>) attributes {dimension_semantics = [#tpu.dimension_semantics<arbitrary>], iteration_bounds = array<i64: 1>, scalar_prefetch = 0 : i64, scratch_operands = 2 : i64, tpu.core_type = #tpu.core_type<tc>, window_params = [{transform_indices = @transform_0, window_bounds = array<i64: 64, 16>}, {pipeline_mode = #tpu.pipeline_mode<synchronous>, transform_indices = @transform_1, window_bounds = array<i64: 16, 512>}, {pipeline_mode = #tpu.pipeline_mode<synchronous>, transform_indices = @transform_2, window_bounds = array<i64: 128, 512>}, {pipeline_mode = #tpu.pipeline_mode<synchronous>, transform_indices = @transform_3, window_bounds = array<i64: 1, 512>}, {pipeline_mode = #tpu.pipeline_mode<synchronous>, transform_indices = @transform_4, window_bounds = array<i64: 128, 512>}, {pipeline_mode = #tpu.pipeline_mode<synchronous>, transform_indices = @transform_5, window_bounds = array<i64: 128, 512>}, {pipeline_mode = #tpu.pipeline_mode<synchronous>, transform_indices = @transform_6, window_bounds = array<i64: 1, 512>}, {transform_indices = @transform_7, window_bounds = array<i64: 64, 128>}, {pipeline_mode = #tpu.pipeline_mode<synchronous>, transform_indices = @transform_8, window_bounds = array<i64: 2, 8, 128>}, {pipeline_mode = #tpu.pipeline_mode<synchronous>, transform_indices = @transform_9, window_bounds = array<i64: 2, 8, 128>}]} {
    %c0_i32 = arith.constant 0 : i32
    %0 = arith.cmpi eq, %arg0, %c0_i32 : i32
    %1 = arith.extui %0 : i1 to i32
    %c0_i32_0 = arith.constant 0 : i32
    %2 = arith.cmpi ne, %1, %c0_i32_0 : i32
    scf.if %2 {
      %cst_290 = arith.constant 0.000000e+00 : f32
      %677 = vector.broadcast %cst_290 : f32 to vector<2x8x128xf32>
      %c0_291 = arith.constant 0 : index
      %c0_292 = arith.constant 0 : index
      %c0_293 = arith.constant 0 : index
      %678 = vector.load %arg9[%c0_291, %c0_292, %c0_293] : memref<2x8x128xf32, #tpu.memory_space<vmem>>, vector<2x8x128xf32>
      tpu.vector_store %arg9[%c0_291, %c0_292, %c0_293], %677 {strides = array<i32>} : memref<2x8x128xf32, #tpu.memory_space<vmem>>, vector<2x8x128xf32>,
      %cst_294 = arith.constant 0.000000e+00 : f32
      %679 = vector.broadcast %cst_294 : f32 to vector<2x8x128xf32>
      %c0_295 = arith.constant 0 : index
      %c0_296 = arith.constant 0 : index
      %c0_297 = arith.constant 0 : index
      %680 = vector.load %arg10[%c0_295, %c0_296, %c0_297] : memref<2x8x128xf32, #tpu.memory_space<vmem>>, vector<2x8x128xf32>
      tpu.vector_store %arg10[%c0_295, %c0_296, %c0_297], %679 {strides = array<i32>} : memref<2x8x128xf32, #tpu.memory_space<vmem>>, vector<2x8x128xf32>,
    } else {
    }
    %c0 = arith.constant 0 : index
    %c0_1 = arith.constant 0 : index
    %3 = vector.load %arg1[%c0, %c0_1] : memref<64x16xf32, #tpu.memory_space<vmem>>, vector<64x16xf32>
    %c0_2 = arith.constant 0 : index
    %c0_3 = arith.constant 0 : index
    %4 = vector.load %arg2[%c0_2, %c0_3] : memref<16x512xf32, #tpu.memory_space<vmem>>, vector<16x512xf32>
    %cst = arith.constant dense<0.000000e+00> : vector<64x512xf32>
    %5 = tpu.matmul %3, %4, %cst {dimension_numbers = #tpu.dot_dimension_numbers<[1], [0], [0], [1], [0, 0, 1, 1], [], []>} : vector<64x16xf32>, vector<16x512xf32>, vector<64x512xf32> -> vector<64x512xf32>
    %c0_4 = arith.constant 0 : index
    %c0_5 = arith.constant 0 : index
    %6 = vector.load %arg4[%c0_4, %c0_5] : memref<1x512xf32, #tpu.memory_space<vmem>>, vector<1x512xf32>
    %7 = vector.broadcast %6 : vector<1x512xf32> to vector<64x512xf32>
    %8 = arith.addf %5, %7 : vector<64x512xf32>
    %c0_6 = arith.constant 0 : index
    %c0_7 = arith.constant 0 : index
    %9 = vector.load %arg12[%c0_6, %c0_7] : memref<64x512xf32, #tpu.memory_space<vmem>>, vector<64x512xf32>
    tpu.vector_store %arg12[%c0_6, %c0_7], %8 {strides = array<i32>} : memref<64x512xf32, #tpu.memory_space<vmem>>, vector<64x512xf32>,
    %c0_8 = arith.constant 0 : index
    %c0_9 = arith.constant 0 : index
    %c0_10 = arith.constant 0 : index
    %10 = vector.load %arg9[%c0_8, %c0_9, %c0_10] : memref<2x8x128xf32, #tpu.memory_space<vmem>>, vector<1x8x128xf32>
    %11 = vector.shape_cast %10 : vector<1x8x128xf32> to vector<8x128xf32>
    %c0_11 = arith.constant 0 : index
    %c0_12 = arith.constant 0 : index
    %c0_13 = arith.constant 0 : index
    %12 = vector.load %arg10[%c0_11, %c0_12, %c0_13] : memref<2x8x128xf32, #tpu.memory_space<vmem>>, vector<1x8x128xf32>
    %13 = vector.shape_cast %12 : vector<1x8x128xf32> to vector<8x128xf32>
    %c0_i32_14 = arith.constant 0 : i32
    %c8_i32 = arith.constant 8 : i32
    %14 = arith.muli %c0_i32_14, %c8_i32 : i32
    %15 = tpu.assume_multiple %14, 8 : i32
    %16 = arith.index_cast %15 : i32 to index
    %c0_15 = arith.constant 0 : index
    %17 = vector.load %arg12[%16, %c0_15] : memref<64x512xf32, #tpu.memory_space<vmem>>, vector<8x512xf32>
    %c0_16 = arith.constant 0 : index
    %c0_17 = arith.constant 0 : index
    %18 = vector.load %arg3[%c0_16, %c0_17] : memref<128x512xf32, #tpu.memory_space<vmem>>, vector<128x512xf32>
    %cst_18 = arith.constant dense<0.000000e+00> : vector<8x512xf32>
    %19 = tpu.matmul %11, %18, %cst_18 {dimension_numbers = #tpu.dot_dimension_numbers<[1], [0], [0], [1], [0, 0, 1, 1], [], []>} : vector<8x128xf32>, vector<128x512xf32>, vector<8x512xf32> -> vector<8x512xf32>
    %20 = arith.addf %17, %19 : vector<8x512xf32>
    %21 = vector.extract_strided_slice %20 {offsets = [0, 0], sizes = [8, 128], strides = [1, 1]} : vector<8x512xf32> to vector<8x128xf32>
    %cst_19 = arith.constant 5.000000e-01 : f32
    %22 = vector.broadcast %cst_19 : f32 to vector<8x128xf32>
    %23 = arith.mulf %22, %21 : vector<8x128xf32>
    %24 = math.tanh %23 : vector<8x128xf32>
    %cst_20 = arith.constant 5.000000e-01 : f32
    %25 = vector.broadcast %cst_20 : f32 to vector<8x128xf32>
    %26 = arith.mulf %25, %24 : vector<8x128xf32>
    %cst_21 = arith.constant 5.000000e-01 : f32
    %27 = vector.broadcast %cst_21 : f32 to vector<8x128xf32>
    %28 = arith.addf %26, %27 : vector<8x128xf32>
    %29 = vector.extract_strided_slice %20 {offsets = [0, 128], sizes = [8, 128], strides = [1, 1]} : vector<8x512xf32> to vector<8x128xf32>
    %cst_22 = arith.constant 5.000000e-01 : f32
    %30 = vector.broadcast %cst_22 : f32 to vector<8x128xf32>
    %31 = arith.mulf %30, %29 : vector<8x128xf32>
    %32 = math.tanh %31 : vector<8x128xf32>
    %cst_23 = arith.constant 5.000000e-01 : f32
    %33 = vector.broadcast %cst_23 : f32 to vector<8x128xf32>
    %34 = arith.mulf %33, %32 : vector<8x128xf32>
    %cst_24 = arith.constant 5.000000e-01 : f32
    %35 = vector.broadcast %cst_24 : f32 to vector<8x128xf32>
    %36 = arith.addf %34, %35 : vector<8x128xf32>
    %37 = vector.extract_strided_slice %20 {offsets = [0, 256], sizes = [8, 128], strides = [1, 1]} : vector<8x512xf32> to vector<8x128xf32>
    %38 = math.tanh %37 : vector<8x128xf32>
    %39 = vector.extract_strided_slice %20 {offsets = [0, 384], sizes = [8, 128], strides = [1, 1]} : vector<8x512xf32> to vector<8x128xf32>
    %cst_25 = arith.constant 5.000000e-01 : f32
    %40 = vector.broadcast %cst_25 : f32 to vector<8x128xf32>
    %41 = arith.mulf %40, %39 : vector<8x128xf32>
    %42 = math.tanh %41 : vector<8x128xf32>
    %cst_26 = arith.constant 5.000000e-01 : f32
    %43 = vector.broadcast %cst_26 : f32 to vector<8x128xf32>
    %44 = arith.mulf %43, %42 : vector<8x128xf32>
    %cst_27 = arith.constant 5.000000e-01 : f32
    %45 = vector.broadcast %cst_27 : f32 to vector<8x128xf32>
    %46 = arith.addf %44, %45 : vector<8x128xf32>
    %47 = arith.mulf %36, %13 : vector<8x128xf32>
    %48 = arith.mulf %28, %38 : vector<8x128xf32>
    %49 = arith.addf %47, %48 : vector<8x128xf32>
    %50 = math.tanh %49 : vector<8x128xf32>
    %51 = arith.mulf %46, %50 : vector<8x128xf32>
    %52 = arith.index_cast %15 : i32 to index
    %c0_28 = arith.constant 0 : index
    %53 = vector.load %arg11[%52, %c0_28] : memref<64x128xf32, #tpu.memory_space<vmem>>, vector<8x128xf32>
    tpu.vector_store %arg11[%52, %c0_28], %51 {strides = array<i32>} : memref<64x128xf32, #tpu.memory_space<vmem>>, vector<8x128xf32>,
    %c1_i32 = arith.constant 1 : i32
    %c8_i32_29 = arith.constant 8 : i32
    %54 = arith.muli %c1_i32, %c8_i32_29 : i32
    %55 = tpu.assume_multiple %54, 8 : i32
    %56 = arith.index_cast %55 : i32 to index
    %c0_30 = arith.constant 0 : index
    %57 = vector.load %arg12[%56, %c0_30] : memref<64x512xf32, #tpu.memory_space<vmem>>, vector<8x512xf32>
    %c0_31 = arith.constant 0 : index
    %c0_32 = arith.constant 0 : index
    %58 = vector.load %arg3[%c0_31, %c0_32] : memref<128x512xf32, #tpu.memory_space<vmem>>, vector<128x512xf32>
    %cst_33 = arith.constant dense<0.000000e+00> : vector<8x512xf32>
    %59 = tpu.matmul %51, %58, %cst_33 {dimension_numbers = #tpu.dot_dimension_numbers<[1], [0], [0], [1], [0, 0, 1, 1], [], []>} : vector<8x128xf32>, vector<128x512xf32>, vector<8x512xf32> -> vector<8x512xf32>
    %60 = arith.addf %57, %59 : vector<8x512xf32>
    %61 = vector.extract_strided_slice %60 {offsets = [0, 0], sizes = [8, 128], strides = [1, 1]} : vector<8x512xf32> to vector<8x128xf32>
    %cst_34 = arith.constant 5.000000e-01 : f32
    %62 = vector.broadcast %cst_34 : f32 to vector<8x128xf32>
    %63 = arith.mulf %62, %61 : vector<8x128xf32>
    %64 = math.tanh %63 : vector<8x128xf32>
    %cst_35 = arith.constant 5.000000e-01 : f32
    %65 = vector.broadcast %cst_35 : f32 to vector<8x128xf32>
    %66 = arith.mulf %65, %64 : vector<8x128xf32>
    %cst_36 = arith.constant 5.000000e-01 : f32
    %67 = vector.broadcast %cst_36 : f32 to vector<8x128xf32>
    %68 = arith.addf %66, %67 : vector<8x128xf32>
    %69 = vector.extract_strided_slice %60 {offsets = [0, 128], sizes = [8, 128], strides = [1, 1]} : vector<8x512xf32> to vector<8x128xf32>
    %cst_37 = arith.constant 5.000000e-01 : f32
    %70 = vector.broadcast %cst_37 : f32 to vector<8x128xf32>
    %71 = arith.mulf %70, %69 : vector<8x128xf32>
    %72 = math.tanh %71 : vector<8x128xf32>
    %cst_38 = arith.constant 5.000000e-01 : f32
    %73 = vector.broadcast %cst_38 : f32 to vector<8x128xf32>
    %74 = arith.mulf %73, %72 : vector<8x128xf32>
    %cst_39 = arith.constant 5.000000e-01 : f32
    %75 = vector.broadcast %cst_39 : f32 to vector<8x128xf32>
    %76 = arith.addf %74, %75 : vector<8x128xf32>
    %77 = vector.extract_strided_slice %60 {offsets = [0, 256], sizes = [8, 128], strides = [1, 1]} : vector<8x512xf32> to vector<8x128xf32>
    %78 = math.tanh %77 : vector<8x128xf32>
    %79 = vector.extract_strided_slice %60 {offsets = [0, 384], sizes = [8, 128], strides = [1, 1]} : vector<8x512xf32> to vector<8x128xf32>
    %cst_40 = arith.constant 5.000000e-01 : f32
    %80 = vector.broadcast %cst_40 : f32 to vector<8x128xf32>
    %81 = arith.mulf %80, %79 : vector<8x128xf32>
    %82 = math.tanh %81 : vector<8x128xf32>
    %cst_41 = arith.constant 5.000000e-01 : f32
    %83 = vector.broadcast %cst_41 : f32 to vector<8x128xf32>
    %84 = arith.mulf %83, %82 : vector<8x128xf32>
    %cst_42 = arith.constant 5.000000e-01 : f32
    %85 = vector.broadcast %cst_42 : f32 to vector<8x128xf32>
    %86 = arith.addf %84, %85 : vector<8x128xf32>
    %87 = arith.mulf %76, %49 : vector<8x128xf32>
    %88 = arith.mulf %68, %78 : vector<8x128xf32>
    %89 = arith.addf %87, %88 : vector<8x128xf32>
    %90 = math.tanh %89 : vector<8x128xf32>
    %91 = arith.mulf %86, %90 : vector<8x128xf32>
    %92 = arith.index_cast %55 : i32 to index
    %c0_43 = arith.constant 0 : index
    %93 = vector.load %arg11[%92, %c0_43] : memref<64x128xf32, #tpu.memory_space<vmem>>, vector<8x128xf32>
    tpu.vector_store %arg11[%92, %c0_43], %91 {strides = array<i32>} : memref<64x128xf32, #tpu.memory_space<vmem>>, vector<8x128xf32>,
    %c2_i32 = arith.constant 2 : i32
    %c8_i32_44 = arith.constant 8 : i32
    %94 = arith.muli %c2_i32, %c8_i32_44 : i32
    %95 = tpu.assume_multiple %94, 8 : i32
    %96 = arith.index_cast %95 : i32 to index
    %c0_45 = arith.constant 0 : index
    %97 = vector.load %arg12[%96, %c0_45] : memref<64x512xf32, #tpu.memory_space<vmem>>, vector<8x512xf32>
    %c0_46 = arith.constant 0 : index
    %c0_47 = arith.constant 0 : index
    %98 = vector.load %arg3[%c0_46, %c0_47] : memref<128x512xf32, #tpu.memory_space<vmem>>, vector<128x512xf32>
    %cst_48 = arith.constant dense<0.000000e+00> : vector<8x512xf32>
    %99 = tpu.matmul %91, %98, %cst_48 {dimension_numbers = #tpu.dot_dimension_numbers<[1], [0], [0], [1], [0, 0, 1, 1], [], []>} : vector<8x128xf32>, vector<128x512xf32>, vector<8x512xf32> -> vector<8x512xf32>
    %100 = arith.addf %97, %99 : vector<8x512xf32>
    %101 = vector.extract_strided_slice %100 {offsets = [0, 0], sizes = [8, 128], strides = [1, 1]} : vector<8x512xf32> to vector<8x128xf32>
    %cst_49 = arith.constant 5.000000e-01 : f32
    %102 = vector.broadcast %cst_49 : f32 to vector<8x128xf32>
    %103 = arith.mulf %102, %101 : vector<8x128xf32>
    %104 = math.tanh %103 : vector<8x128xf32>
    %cst_50 = arith.constant 5.000000e-01 : f32
    %105 = vector.broadcast %cst_50 : f32 to vector<8x128xf32>
    %106 = arith.mulf %105, %104 : vector<8x128xf32>
    %cst_51 = arith.constant 5.000000e-01 : f32
    %107 = vector.broadcast %cst_51 : f32 to vector<8x128xf32>
    %108 = arith.addf %106, %107 : vector<8x128xf32>
    %109 = vector.extract_strided_slice %100 {offsets = [0, 128], sizes = [8, 128], strides = [1, 1]} : vector<8x512xf32> to vector<8x128xf32>
    %cst_52 = arith.constant 5.000000e-01 : f32
    %110 = vector.broadcast %cst_52 : f32 to vector<8x128xf32>
    %111 = arith.mulf %110, %109 : vector<8x128xf32>
    %112 = math.tanh %111 : vector<8x128xf32>
    %cst_53 = arith.constant 5.000000e-01 : f32
    %113 = vector.broadcast %cst_53 : f32 to vector<8x128xf32>
    %114 = arith.mulf %113, %112 : vector<8x128xf32>
    %cst_54 = arith.constant 5.000000e-01 : f32
    %115 = vector.broadcast %cst_54 : f32 to vector<8x128xf32>
    %116 = arith.addf %114, %115 : vector<8x128xf32>
    %117 = vector.extract_strided_slice %100 {offsets = [0, 256], sizes = [8, 128], strides = [1, 1]} : vector<8x512xf32> to vector<8x128xf32>
    %118 = math.tanh %117 : vector<8x128xf32>
    %119 = vector.extract_strided_slice %100 {offsets = [0, 384], sizes = [8, 128], strides = [1, 1]} : vector<8x512xf32> to vector<8x128xf32>
    %cst_55 = arith.constant 5.000000e-01 : f32
    %120 = vector.broadcast %cst_55 : f32 to vector<8x128xf32>
    %121 = arith.mulf %120, %119 : vector<8x128xf32>
    %122 = math.tanh %121 : vector<8x128xf32>
    %cst_56 = arith.constant 5.000000e-01 : f32
    %123 = vector.broadcast %cst_56 : f32 to vector<8x128xf32>
    %124 = arith.mulf %123, %122 : vector<8x128xf32>
    %cst_57 = arith.constant 5.000000e-01 : f32
    %125 = vector.broadcast %cst_57 : f32 to vector<8x128xf32>
    %126 = arith.addf %124, %125 : vector<8x128xf32>
    %127 = arith.mulf %116, %89 : vector<8x128xf32>
    %128 = arith.mulf %108, %118 : vector<8x128xf32>
    %129 = arith.addf %127, %128 : vector<8x128xf32>
    %130 = math.tanh %129 : vector<8x128xf32>
    %131 = arith.mulf %126, %130 : vector<8x128xf32>
    %132 = arith.index_cast %95 : i32 to index
    %c0_58 = arith.constant 0 : index
    %133 = vector.load %arg11[%132, %c0_58] : memref<64x128xf32, #tpu.memory_space<vmem>>, vector<8x128xf32>
    tpu.vector_store %arg11[%132, %c0_58], %131 {strides = array<i32>} : memref<64x128xf32, #tpu.memory_space<vmem>>, vector<8x128xf32>,
    %c3_i32 = arith.constant 3 : i32
    %c8_i32_59 = arith.constant 8 : i32
    %134 = arith.muli %c3_i32, %c8_i32_59 : i32
    %135 = tpu.assume_multiple %134, 8 : i32
    %136 = arith.index_cast %135 : i32 to index
    %c0_60 = arith.constant 0 : index
    %137 = vector.load %arg12[%136, %c0_60] : memref<64x512xf32, #tpu.memory_space<vmem>>, vector<8x512xf32>
    %c0_61 = arith.constant 0 : index
    %c0_62 = arith.constant 0 : index
    %138 = vector.load %arg3[%c0_61, %c0_62] : memref<128x512xf32, #tpu.memory_space<vmem>>, vector<128x512xf32>
    %cst_63 = arith.constant dense<0.000000e+00> : vector<8x512xf32>
    %139 = tpu.matmul %131, %138, %cst_63 {dimension_numbers = #tpu.dot_dimension_numbers<[1], [0], [0], [1], [0, 0, 1, 1], [], []>} : vector<8x128xf32>, vector<128x512xf32>, vector<8x512xf32> -> vector<8x512xf32>
    %140 = arith.addf %137, %139 : vector<8x512xf32>
    %141 = vector.extract_strided_slice %140 {offsets = [0, 0], sizes = [8, 128], strides = [1, 1]} : vector<8x512xf32> to vector<8x128xf32>
    %cst_64 = arith.constant 5.000000e-01 : f32
    %142 = vector.broadcast %cst_64 : f32 to vector<8x128xf32>
    %143 = arith.mulf %142, %141 : vector<8x128xf32>
    %144 = math.tanh %143 : vector<8x128xf32>
    %cst_65 = arith.constant 5.000000e-01 : f32
    %145 = vector.broadcast %cst_65 : f32 to vector<8x128xf32>
    %146 = arith.mulf %145, %144 : vector<8x128xf32>
    %cst_66 = arith.constant 5.000000e-01 : f32
    %147 = vector.broadcast %cst_66 : f32 to vector<8x128xf32>
    %148 = arith.addf %146, %147 : vector<8x128xf32>
    %149 = vector.extract_strided_slice %140 {offsets = [0, 128], sizes = [8, 128], strides = [1, 1]} : vector<8x512xf32> to vector<8x128xf32>
    %cst_67 = arith.constant 5.000000e-01 : f32
    %150 = vector.broadcast %cst_67 : f32 to vector<8x128xf32>
    %151 = arith.mulf %150, %149 : vector<8x128xf32>
    %152 = math.tanh %151 : vector<8x128xf32>
    %cst_68 = arith.constant 5.000000e-01 : f32
    %153 = vector.broadcast %cst_68 : f32 to vector<8x128xf32>
    %154 = arith.mulf %153, %152 : vector<8x128xf32>
    %cst_69 = arith.constant 5.000000e-01 : f32
    %155 = vector.broadcast %cst_69 : f32 to vector<8x128xf32>
    %156 = arith.addf %154, %155 : vector<8x128xf32>
    %157 = vector.extract_strided_slice %140 {offsets = [0, 256], sizes = [8, 128], strides = [1, 1]} : vector<8x512xf32> to vector<8x128xf32>
    %158 = math.tanh %157 : vector<8x128xf32>
    %159 = vector.extract_strided_slice %140 {offsets = [0, 384], sizes = [8, 128], strides = [1, 1]} : vector<8x512xf32> to vector<8x128xf32>
    %cst_70 = arith.constant 5.000000e-01 : f32
    %160 = vector.broadcast %cst_70 : f32 to vector<8x128xf32>
    %161 = arith.mulf %160, %159 : vector<8x128xf32>
    %162 = math.tanh %161 : vector<8x128xf32>
    %cst_71 = arith.constant 5.000000e-01 : f32
    %163 = vector.broadcast %cst_71 : f32 to vector<8x128xf32>
    %164 = arith.mulf %163, %162 : vector<8x128xf32>
    %cst_72 = arith.constant 5.000000e-01 : f32
    %165 = vector.broadcast %cst_72 : f32 to vector<8x128xf32>
    %166 = arith.addf %164, %165 : vector<8x128xf32>
    %167 = arith.mulf %156, %129 : vector<8x128xf32>
    %168 = arith.mulf %148, %158 : vector<8x128xf32>
    %169 = arith.addf %167, %168 : vector<8x128xf32>
    %170 = math.tanh %169 : vector<8x128xf32>
    %171 = arith.mulf %166, %170 : vector<8x128xf32>
    %172 = arith.index_cast %135 : i32 to index
    %c0_73 = arith.constant 0 : index
    %173 = vector.load %arg11[%172, %c0_73] : memref<64x128xf32, #tpu.memory_space<vmem>>, vector<8x128xf32>
    tpu.vector_store %arg11[%172, %c0_73], %171 {strides = array<i32>} : memref<64x128xf32, #tpu.memory_space<vmem>>, vector<8x128xf32>,
    %c4_i32 = arith.constant 4 : i32
    %c8_i32_74 = arith.constant 8 : i32
    %174 = arith.muli %c4_i32, %c8_i32_74 : i32
    %175 = tpu.assume_multiple %174, 8 : i32
    %176 = arith.index_cast %175 : i32 to index
    %c0_75 = arith.constant 0 : index
    %177 = vector.load %arg12[%176, %c0_75] : memref<64x512xf32, #tpu.memory_space<vmem>>, vector<8x512xf32>
    %c0_76 = arith.constant 0 : index
    %c0_77 = arith.constant 0 : index
    %178 = vector.load %arg3[%c0_76, %c0_77] : memref<128x512xf32, #tpu.memory_space<vmem>>, vector<128x512xf32>
    %cst_78 = arith.constant dense<0.000000e+00> : vector<8x512xf32>
    %179 = tpu.matmul %171, %178, %cst_78 {dimension_numbers = #tpu.dot_dimension_numbers<[1], [0], [0], [1], [0, 0, 1, 1], [], []>} : vector<8x128xf32>, vector<128x512xf32>, vector<8x512xf32> -> vector<8x512xf32>
    %180 = arith.addf %177, %179 : vector<8x512xf32>
    %181 = vector.extract_strided_slice %180 {offsets = [0, 0], sizes = [8, 128], strides = [1, 1]} : vector<8x512xf32> to vector<8x128xf32>
    %cst_79 = arith.constant 5.000000e-01 : f32
    %182 = vector.broadcast %cst_79 : f32 to vector<8x128xf32>
    %183 = arith.mulf %182, %181 : vector<8x128xf32>
    %184 = math.tanh %183 : vector<8x128xf32>
    %cst_80 = arith.constant 5.000000e-01 : f32
    %185 = vector.broadcast %cst_80 : f32 to vector<8x128xf32>
    %186 = arith.mulf %185, %184 : vector<8x128xf32>
    %cst_81 = arith.constant 5.000000e-01 : f32
    %187 = vector.broadcast %cst_81 : f32 to vector<8x128xf32>
    %188 = arith.addf %186, %187 : vector<8x128xf32>
    %189 = vector.extract_strided_slice %180 {offsets = [0, 128], sizes = [8, 128], strides = [1, 1]} : vector<8x512xf32> to vector<8x128xf32>
    %cst_82 = arith.constant 5.000000e-01 : f32
    %190 = vector.broadcast %cst_82 : f32 to vector<8x128xf32>
    %191 = arith.mulf %190, %189 : vector<8x128xf32>
    %192 = math.tanh %191 : vector<8x128xf32>
    %cst_83 = arith.constant 5.000000e-01 : f32
    %193 = vector.broadcast %cst_83 : f32 to vector<8x128xf32>
    %194 = arith.mulf %193, %192 : vector<8x128xf32>
    %cst_84 = arith.constant 5.000000e-01 : f32
    %195 = vector.broadcast %cst_84 : f32 to vector<8x128xf32>
    %196 = arith.addf %194, %195 : vector<8x128xf32>
    %197 = vector.extract_strided_slice %180 {offsets = [0, 256], sizes = [8, 128], strides = [1, 1]} : vector<8x512xf32> to vector<8x128xf32>
    %198 = math.tanh %197 : vector<8x128xf32>
    %199 = vector.extract_strided_slice %180 {offsets = [0, 384], sizes = [8, 128], strides = [1, 1]} : vector<8x512xf32> to vector<8x128xf32>
    %cst_85 = arith.constant 5.000000e-01 : f32
    %200 = vector.broadcast %cst_85 : f32 to vector<8x128xf32>
    %201 = arith.mulf %200, %199 : vector<8x128xf32>
    %202 = math.tanh %201 : vector<8x128xf32>
    %cst_86 = arith.constant 5.000000e-01 : f32
    %203 = vector.broadcast %cst_86 : f32 to vector<8x128xf32>
    %204 = arith.mulf %203, %202 : vector<8x128xf32>
    %cst_87 = arith.constant 5.000000e-01 : f32
    %205 = vector.broadcast %cst_87 : f32 to vector<8x128xf32>
    %206 = arith.addf %204, %205 : vector<8x128xf32>
    %207 = arith.mulf %196, %169 : vector<8x128xf32>
    %208 = arith.mulf %188, %198 : vector<8x128xf32>
    %209 = arith.addf %207, %208 : vector<8x128xf32>
    %210 = math.tanh %209 : vector<8x128xf32>
    %211 = arith.mulf %206, %210 : vector<8x128xf32>
    %212 = arith.index_cast %175 : i32 to index
    %c0_88 = arith.constant 0 : index
    %213 = vector.load %arg11[%212, %c0_88] : memref<64x128xf32, #tpu.memory_space<vmem>>, vector<8x128xf32>
    tpu.vector_store %arg11[%212, %c0_88], %211 {strides = array<i32>} : memref<64x128xf32, #tpu.memory_space<vmem>>, vector<8x128xf32>,
    %c5_i32 = arith.constant 5 : i32
    %c8_i32_89 = arith.constant 8 : i32
    %214 = arith.muli %c5_i32, %c8_i32_89 : i32
    %215 = tpu.assume_multiple %214, 8 : i32
    %216 = arith.index_cast %215 : i32 to index
    %c0_90 = arith.constant 0 : index
    %217 = vector.load %arg12[%216, %c0_90] : memref<64x512xf32, #tpu.memory_space<vmem>>, vector<8x512xf32>
    %c0_91 = arith.constant 0 : index
    %c0_92 = arith.constant 0 : index
    %218 = vector.load %arg3[%c0_91, %c0_92] : memref<128x512xf32, #tpu.memory_space<vmem>>, vector<128x512xf32>
    %cst_93 = arith.constant dense<0.000000e+00> : vector<8x512xf32>
    %219 = tpu.matmul %211, %218, %cst_93 {dimension_numbers = #tpu.dot_dimension_numbers<[1], [0], [0], [1], [0, 0, 1, 1], [], []>} : vector<8x128xf32>, vector<128x512xf32>, vector<8x512xf32> -> vector<8x512xf32>
    %220 = arith.addf %217, %219 : vector<8x512xf32>
    %221 = vector.extract_strided_slice %220 {offsets = [0, 0], sizes = [8, 128], strides = [1, 1]} : vector<8x512xf32> to vector<8x128xf32>
    %cst_94 = arith.constant 5.000000e-01 : f32
    %222 = vector.broadcast %cst_94 : f32 to vector<8x128xf32>
    %223 = arith.mulf %222, %221 : vector<8x128xf32>
    %224 = math.tanh %223 : vector<8x128xf32>
    %cst_95 = arith.constant 5.000000e-01 : f32
    %225 = vector.broadcast %cst_95 : f32 to vector<8x128xf32>
    %226 = arith.mulf %225, %224 : vector<8x128xf32>
    %cst_96 = arith.constant 5.000000e-01 : f32
    %227 = vector.broadcast %cst_96 : f32 to vector<8x128xf32>
    %228 = arith.addf %226, %227 : vector<8x128xf32>
    %229 = vector.extract_strided_slice %220 {offsets = [0, 128], sizes = [8, 128], strides = [1, 1]} : vector<8x512xf32> to vector<8x128xf32>
    %cst_97 = arith.constant 5.000000e-01 : f32
    %230 = vector.broadcast %cst_97 : f32 to vector<8x128xf32>
    %231 = arith.mulf %230, %229 : vector<8x128xf32>
    %232 = math.tanh %231 : vector<8x128xf32>
    %cst_98 = arith.constant 5.000000e-01 : f32
    %233 = vector.broadcast %cst_98 : f32 to vector<8x128xf32>
    %234 = arith.mulf %233, %232 : vector<8x128xf32>
    %cst_99 = arith.constant 5.000000e-01 : f32
    %235 = vector.broadcast %cst_99 : f32 to vector<8x128xf32>
    %236 = arith.addf %234, %235 : vector<8x128xf32>
    %237 = vector.extract_strided_slice %220 {offsets = [0, 256], sizes = [8, 128], strides = [1, 1]} : vector<8x512xf32> to vector<8x128xf32>
    %238 = math.tanh %237 : vector<8x128xf32>
    %239 = vector.extract_strided_slice %220 {offsets = [0, 384], sizes = [8, 128], strides = [1, 1]} : vector<8x512xf32> to vector<8x128xf32>
    %cst_100 = arith.constant 5.000000e-01 : f32
    %240 = vector.broadcast %cst_100 : f32 to vector<8x128xf32>
    %241 = arith.mulf %240, %239 : vector<8x128xf32>
    %242 = math.tanh %241 : vector<8x128xf32>
    %cst_101 = arith.constant 5.000000e-01 : f32
    %243 = vector.broadcast %cst_101 : f32 to vector<8x128xf32>
    %244 = arith.mulf %243, %242 : vector<8x128xf32>
    %cst_102 = arith.constant 5.000000e-01 : f32
    %245 = vector.broadcast %cst_102 : f32 to vector<8x128xf32>
    %246 = arith.addf %244, %245 : vector<8x128xf32>
    %247 = arith.mulf %236, %209 : vector<8x128xf32>
    %248 = arith.mulf %228, %238 : vector<8x128xf32>
    %249 = arith.addf %247, %248 : vector<8x128xf32>
    %250 = math.tanh %249 : vector<8x128xf32>
    %251 = arith.mulf %246, %250 : vector<8x128xf32>
    %252 = arith.index_cast %215 : i32 to index
    %c0_103 = arith.constant 0 : index
    %253 = vector.load %arg11[%252, %c0_103] : memref<64x128xf32, #tpu.memory_space<vmem>>, vector<8x128xf32>
    tpu.vector_store %arg11[%252, %c0_103], %251 {strides = array<i32>} : memref<64x128xf32, #tpu.memory_space<vmem>>, vector<8x128xf32>,
    %c6_i32 = arith.constant 6 : i32
    %c8_i32_104 = arith.constant 8 : i32
    %254 = arith.muli %c6_i32, %c8_i32_104 : i32
    %255 = tpu.assume_multiple %254, 8 : i32
    %256 = arith.index_cast %255 : i32 to index
    %c0_105 = arith.constant 0 : index
    %257 = vector.load %arg12[%256, %c0_105] : memref<64x512xf32, #tpu.memory_space<vmem>>, vector<8x512xf32>
    %c0_106 = arith.constant 0 : index
    %c0_107 = arith.constant 0 : index
    %258 = vector.load %arg3[%c0_106, %c0_107] : memref<128x512xf32, #tpu.memory_space<vmem>>, vector<128x512xf32>
    %cst_108 = arith.constant dense<0.000000e+00> : vector<8x512xf32>
    %259 = tpu.matmul %251, %258, %cst_108 {dimension_numbers = #tpu.dot_dimension_numbers<[1], [0], [0], [1], [0, 0, 1, 1], [], []>} : vector<8x128xf32>, vector<128x512xf32>, vector<8x512xf32> -> vector<8x512xf32>
    %260 = arith.addf %257, %259 : vector<8x512xf32>
    %261 = vector.extract_strided_slice %260 {offsets = [0, 0], sizes = [8, 128], strides = [1, 1]} : vector<8x512xf32> to vector<8x128xf32>
    %cst_109 = arith.constant 5.000000e-01 : f32
    %262 = vector.broadcast %cst_109 : f32 to vector<8x128xf32>
    %263 = arith.mulf %262, %261 : vector<8x128xf32>
    %264 = math.tanh %263 : vector<8x128xf32>
    %cst_110 = arith.constant 5.000000e-01 : f32
    %265 = vector.broadcast %cst_110 : f32 to vector<8x128xf32>
    %266 = arith.mulf %265, %264 : vector<8x128xf32>
    %cst_111 = arith.constant 5.000000e-01 : f32
    %267 = vector.broadcast %cst_111 : f32 to vector<8x128xf32>
    %268 = arith.addf %266, %267 : vector<8x128xf32>
    %269 = vector.extract_strided_slice %260 {offsets = [0, 128], sizes = [8, 128], strides = [1, 1]} : vector<8x512xf32> to vector<8x128xf32>
    %cst_112 = arith.constant 5.000000e-01 : f32
    %270 = vector.broadcast %cst_112 : f32 to vector<8x128xf32>
    %271 = arith.mulf %270, %269 : vector<8x128xf32>
    %272 = math.tanh %271 : vector<8x128xf32>
    %cst_113 = arith.constant 5.000000e-01 : f32
    %273 = vector.broadcast %cst_113 : f32 to vector<8x128xf32>
    %274 = arith.mulf %273, %272 : vector<8x128xf32>
    %cst_114 = arith.constant 5.000000e-01 : f32
    %275 = vector.broadcast %cst_114 : f32 to vector<8x128xf32>
    %276 = arith.addf %274, %275 : vector<8x128xf32>
    %277 = vector.extract_strided_slice %260 {offsets = [0, 256], sizes = [8, 128], strides = [1, 1]} : vector<8x512xf32> to vector<8x128xf32>
    %278 = math.tanh %277 : vector<8x128xf32>
    %279 = vector.extract_strided_slice %260 {offsets = [0, 384], sizes = [8, 128], strides = [1, 1]} : vector<8x512xf32> to vector<8x128xf32>
    %cst_115 = arith.constant 5.000000e-01 : f32
    %280 = vector.broadcast %cst_115 : f32 to vector<8x128xf32>
    %281 = arith.mulf %280, %279 : vector<8x128xf32>
    %282 = math.tanh %281 : vector<8x128xf32>
    %cst_116 = arith.constant 5.000000e-01 : f32
    %283 = vector.broadcast %cst_116 : f32 to vector<8x128xf32>
    %284 = arith.mulf %283, %282 : vector<8x128xf32>
    %cst_117 = arith.constant 5.000000e-01 : f32
    %285 = vector.broadcast %cst_117 : f32 to vector<8x128xf32>
    %286 = arith.addf %284, %285 : vector<8x128xf32>
    %287 = arith.mulf %276, %249 : vector<8x128xf32>
    %288 = arith.mulf %268, %278 : vector<8x128xf32>
    %289 = arith.addf %287, %288 : vector<8x128xf32>
    %290 = math.tanh %289 : vector<8x128xf32>
    %291 = arith.mulf %286, %290 : vector<8x128xf32>
    %292 = arith.index_cast %255 : i32 to index
    %c0_118 = arith.constant 0 : index
    %293 = vector.load %arg11[%292, %c0_118] : memref<64x128xf32, #tpu.memory_space<vmem>>, vector<8x128xf32>
    tpu.vector_store %arg11[%292, %c0_118], %291 {strides = array<i32>} : memref<64x128xf32, #tpu.memory_space<vmem>>, vector<8x128xf32>,
    %c7_i32 = arith.constant 7 : i32
    %c8_i32_119 = arith.constant 8 : i32
    %294 = arith.muli %c7_i32, %c8_i32_119 : i32
    %295 = tpu.assume_multiple %294, 8 : i32
    %296 = arith.index_cast %295 : i32 to index
    %c0_120 = arith.constant 0 : index
    %297 = vector.load %arg12[%296, %c0_120] : memref<64x512xf32, #tpu.memory_space<vmem>>, vector<8x512xf32>
    %c0_121 = arith.constant 0 : index
    %c0_122 = arith.constant 0 : index
    %298 = vector.load %arg3[%c0_121, %c0_122] : memref<128x512xf32, #tpu.memory_space<vmem>>, vector<128x512xf32>
    %cst_123 = arith.constant dense<0.000000e+00> : vector<8x512xf32>
    %299 = tpu.matmul %291, %298, %cst_123 {dimension_numbers = #tpu.dot_dimension_numbers<[1], [0], [0], [1], [0, 0, 1, 1], [], []>} : vector<8x128xf32>, vector<128x512xf32>, vector<8x512xf32> -> vector<8x512xf32>
    %300 = arith.addf %297, %299 : vector<8x512xf32>
    %301 = vector.extract_strided_slice %300 {offsets = [0, 0], sizes = [8, 128], strides = [1, 1]} : vector<8x512xf32> to vector<8x128xf32>
    %cst_124 = arith.constant 5.000000e-01 : f32
    %302 = vector.broadcast %cst_124 : f32 to vector<8x128xf32>
    %303 = arith.mulf %302, %301 : vector<8x128xf32>
    %304 = math.tanh %303 : vector<8x128xf32>
    %cst_125 = arith.constant 5.000000e-01 : f32
    %305 = vector.broadcast %cst_125 : f32 to vector<8x128xf32>
    %306 = arith.mulf %305, %304 : vector<8x128xf32>
    %cst_126 = arith.constant 5.000000e-01 : f32
    %307 = vector.broadcast %cst_126 : f32 to vector<8x128xf32>
    %308 = arith.addf %306, %307 : vector<8x128xf32>
    %309 = vector.extract_strided_slice %300 {offsets = [0, 128], sizes = [8, 128], strides = [1, 1]} : vector<8x512xf32> to vector<8x128xf32>
    %cst_127 = arith.constant 5.000000e-01 : f32
    %310 = vector.broadcast %cst_127 : f32 to vector<8x128xf32>
    %311 = arith.mulf %310, %309 : vector<8x128xf32>
    %312 = math.tanh %311 : vector<8x128xf32>
    %cst_128 = arith.constant 5.000000e-01 : f32
    %313 = vector.broadcast %cst_128 : f32 to vector<8x128xf32>
    %314 = arith.mulf %313, %312 : vector<8x128xf32>
    %cst_129 = arith.constant 5.000000e-01 : f32
    %315 = vector.broadcast %cst_129 : f32 to vector<8x128xf32>
    %316 = arith.addf %314, %315 : vector<8x128xf32>
    %317 = vector.extract_strided_slice %300 {offsets = [0, 256], sizes = [8, 128], strides = [1, 1]} : vector<8x512xf32> to vector<8x128xf32>
    %318 = math.tanh %317 : vector<8x128xf32>
    %319 = vector.extract_strided_slice %300 {offsets = [0, 384], sizes = [8, 128], strides = [1, 1]} : vector<8x512xf32> to vector<8x128xf32>
    %cst_130 = arith.constant 5.000000e-01 : f32
    %320 = vector.broadcast %cst_130 : f32 to vector<8x128xf32>
    %321 = arith.mulf %320, %319 : vector<8x128xf32>
    %322 = math.tanh %321 : vector<8x128xf32>
    %cst_131 = arith.constant 5.000000e-01 : f32
    %323 = vector.broadcast %cst_131 : f32 to vector<8x128xf32>
    %324 = arith.mulf %323, %322 : vector<8x128xf32>
    %cst_132 = arith.constant 5.000000e-01 : f32
    %325 = vector.broadcast %cst_132 : f32 to vector<8x128xf32>
    %326 = arith.addf %324, %325 : vector<8x128xf32>
    %327 = arith.mulf %316, %289 : vector<8x128xf32>
    %328 = arith.mulf %308, %318 : vector<8x128xf32>
    %329 = arith.addf %327, %328 : vector<8x128xf32>
    %330 = math.tanh %329 : vector<8x128xf32>
    %331 = arith.mulf %326, %330 : vector<8x128xf32>
    %332 = arith.index_cast %295 : i32 to index
    %c0_133 = arith.constant 0 : index
    %333 = vector.load %arg11[%332, %c0_133] : memref<64x128xf32, #tpu.memory_space<vmem>>, vector<8x128xf32>
    tpu.vector_store %arg11[%332, %c0_133], %331 {strides = array<i32>} : memref<64x128xf32, #tpu.memory_space<vmem>>, vector<8x128xf32>,
    %c8_i32_134 = arith.constant 8 : i32
    %c0_135 = arith.constant 0 : index
    %c0_136 = arith.constant 0 : index
    %c0_137 = arith.constant 0 : index
    %334 = vector.load %arg9[%c0_135, %c0_136, %c0_137] : memref<2x8x128xf32, #tpu.memory_space<vmem>>, vector<1x8x128xf32>
    %335 = vector.shape_cast %334 : vector<1x8x128xf32> to vector<8x128xf32>
    %336 = vector.shape_cast %331 : vector<8x128xf32> to vector<1x8x128xf32>
    tpu.vector_store %arg9[%c0_135, %c0_136, %c0_137], %336 {strides = array<i32>} : memref<2x8x128xf32, #tpu.memory_space<vmem>>, vector<1x8x128xf32>,
    %c0_138 = arith.constant 0 : index
    %c0_139 = arith.constant 0 : index
    %c0_140 = arith.constant 0 : index
    %337 = vector.load %arg10[%c0_138, %c0_139, %c0_140] : memref<2x8x128xf32, #tpu.memory_space<vmem>>, vector<1x8x128xf32>
    %338 = vector.shape_cast %337 : vector<1x8x128xf32> to vector<8x128xf32>
    %339 = vector.shape_cast %329 : vector<8x128xf32> to vector<1x8x128xf32>
    tpu.vector_store %arg10[%c0_138, %c0_139, %c0_140], %339 {strides = array<i32>} : memref<2x8x128xf32, #tpu.memory_space<vmem>>, vector<1x8x128xf32>,
    %c0_141 = arith.constant 0 : index
    %c0_142 = arith.constant 0 : index
    %340 = vector.load %arg11[%c0_141, %c0_142] : memref<64x128xf32, #tpu.memory_space<vmem>>, vector<64x128xf32>
    %c0_143 = arith.constant 0 : index
    %c0_144 = arith.constant 0 : index
    %341 = vector.load %arg5[%c0_143, %c0_144] : memref<128x512xf32, #tpu.memory_space<vmem>>, vector<128x512xf32>
    %cst_145 = arith.constant dense<0.000000e+00> : vector<64x512xf32>
    %342 = tpu.matmul %340, %341, %cst_145 {dimension_numbers = #tpu.dot_dimension_numbers<[1], [0], [0], [1], [0, 0, 1, 1], [], []>} : vector<64x128xf32>, vector<128x512xf32>, vector<64x512xf32> -> vector<64x512xf32>
    %c0_146 = arith.constant 0 : index
    %c0_147 = arith.constant 0 : index
    %343 = vector.load %arg7[%c0_146, %c0_147] : memref<1x512xf32, #tpu.memory_space<vmem>>, vector<1x512xf32>
    %344 = vector.broadcast %343 : vector<1x512xf32> to vector<64x512xf32>
    %345 = arith.addf %342, %344 : vector<64x512xf32>
    %c0_148 = arith.constant 0 : index
    %c0_149 = arith.constant 0 : index
    %346 = vector.load %arg12[%c0_148, %c0_149] : memref<64x512xf32, #tpu.memory_space<vmem>>, vector<64x512xf32>
    tpu.vector_store %arg12[%c0_148, %c0_149], %345 {strides = array<i32>} : memref<64x512xf32, #tpu.memory_space<vmem>>, vector<64x512xf32>,
    %c1 = arith.constant 1 : index
    %c0_150 = arith.constant 0 : index
    %c0_151 = arith.constant 0 : index
    %347 = vector.load %arg9[%c1, %c0_150, %c0_151] : memref<2x8x128xf32, #tpu.memory_space<vmem>>, vector<1x8x128xf32>
    %348 = vector.shape_cast %347 : vector<1x8x128xf32> to vector<8x128xf32>
    %c1_152 = arith.constant 1 : index
    %c0_153 = arith.constant 0 : index
    %c0_154 = arith.constant 0 : index
    %349 = vector.load %arg10[%c1_152, %c0_153, %c0_154] : memref<2x8x128xf32, #tpu.memory_space<vmem>>, vector<1x8x128xf32>
    %350 = vector.shape_cast %349 : vector<1x8x128xf32> to vector<8x128xf32>
    %c0_i32_155 = arith.constant 0 : i32
    %c8_i32_156 = arith.constant 8 : i32
    %351 = arith.muli %c0_i32_155, %c8_i32_156 : i32
    %352 = tpu.assume_multiple %351, 8 : i32
    %353 = arith.index_cast %352 : i32 to index
    %c0_157 = arith.constant 0 : index
    %354 = vector.load %arg12[%353, %c0_157] : memref<64x512xf32, #tpu.memory_space<vmem>>, vector<8x512xf32>
    %c0_158 = arith.constant 0 : index
    %c0_159 = arith.constant 0 : index
    %355 = vector.load %arg6[%c0_158, %c0_159] : memref<128x512xf32, #tpu.memory_space<vmem>>, vector<128x512xf32>
    %cst_160 = arith.constant dense<0.000000e+00> : vector<8x512xf32>
    %356 = tpu.matmul %348, %355, %cst_160 {dimension_numbers = #tpu.dot_dimension_numbers<[1], [0], [0], [1], [0, 0, 1, 1], [], []>} : vector<8x128xf32>, vector<128x512xf32>, vector<8x512xf32> -> vector<8x512xf32>
    %357 = arith.addf %354, %356 : vector<8x512xf32>
    %358 = vector.extract_strided_slice %357 {offsets = [0, 0], sizes = [8, 128], strides = [1, 1]} : vector<8x512xf32> to vector<8x128xf32>
    %cst_161 = arith.constant 5.000000e-01 : f32
    %359 = vector.broadcast %cst_161 : f32 to vector<8x128xf32>
    %360 = arith.mulf %359, %358 : vector<8x128xf32>
    %361 = math.tanh %360 : vector<8x128xf32>
    %cst_162 = arith.constant 5.000000e-01 : f32
    %362 = vector.broadcast %cst_162 : f32 to vector<8x128xf32>
    %363 = arith.mulf %362, %361 : vector<8x128xf32>
    %cst_163 = arith.constant 5.000000e-01 : f32
    %364 = vector.broadcast %cst_163 : f32 to vector<8x128xf32>
    %365 = arith.addf %363, %364 : vector<8x128xf32>
    %366 = vector.extract_strided_slice %357 {offsets = [0, 128], sizes = [8, 128], strides = [1, 1]} : vector<8x512xf32> to vector<8x128xf32>
    %cst_164 = arith.constant 5.000000e-01 : f32
    %367 = vector.broadcast %cst_164 : f32 to vector<8x128xf32>
    %368 = arith.mulf %367, %366 : vector<8x128xf32>
    %369 = math.tanh %368 : vector<8x128xf32>
    %cst_165 = arith.constant 5.000000e-01 : f32
    %370 = vector.broadcast %cst_165 : f32 to vector<8x128xf32>
    %371 = arith.mulf %370, %369 : vector<8x128xf32>
    %cst_166 = arith.constant 5.000000e-01 : f32
    %372 = vector.broadcast %cst_166 : f32 to vector<8x128xf32>
    %373 = arith.addf %371, %372 : vector<8x128xf32>
    %374 = vector.extract_strided_slice %357 {offsets = [0, 256], sizes = [8, 128], strides = [1, 1]} : vector<8x512xf32> to vector<8x128xf32>
    %375 = math.tanh %374 : vector<8x128xf32>
    %376 = vector.extract_strided_slice %357 {offsets = [0, 384], sizes = [8, 128], strides = [1, 1]} : vector<8x512xf32> to vector<8x128xf32>
    %cst_167 = arith.constant 5.000000e-01 : f32
    %377 = vector.broadcast %cst_167 : f32 to vector<8x128xf32>
    %378 = arith.mulf %377, %376 : vector<8x128xf32>
    %379 = math.tanh %378 : vector<8x128xf32>
    %cst_168 = arith.constant 5.000000e-01 : f32
    %380 = vector.broadcast %cst_168 : f32 to vector<8x128xf32>
    %381 = arith.mulf %380, %379 : vector<8x128xf32>
    %cst_169 = arith.constant 5.000000e-01 : f32
    %382 = vector.broadcast %cst_169 : f32 to vector<8x128xf32>
    %383 = arith.addf %381, %382 : vector<8x128xf32>
    %384 = arith.mulf %373, %350 : vector<8x128xf32>
    %385 = arith.mulf %365, %375 : vector<8x128xf32>
    %386 = arith.addf %384, %385 : vector<8x128xf32>
    %387 = math.tanh %386 : vector<8x128xf32>
    %388 = arith.mulf %383, %387 : vector<8x128xf32>
    %389 = arith.index_cast %352 : i32 to index
    %c0_170 = arith.constant 0 : index
    %390 = vector.load %arg8[%389, %c0_170] : memref<64x128xf32, #tpu.memory_space<vmem>>, vector<8x128xf32>
    tpu.vector_store %arg8[%389, %c0_170], %388 {strides = array<i32>} : memref<64x128xf32, #tpu.memory_space<vmem>>, vector<8x128xf32>,
    %c1_i32_171 = arith.constant 1 : i32
    %c8_i32_172 = arith.constant 8 : i32
    %391 = arith.muli %c1_i32_171, %c8_i32_172 : i32
    %392 = tpu.assume_multiple %391, 8 : i32
    %393 = arith.index_cast %392 : i32 to index
    %c0_173 = arith.constant 0 : index
    %394 = vector.load %arg12[%393, %c0_173] : memref<64x512xf32, #tpu.memory_space<vmem>>, vector<8x512xf32>
    %c0_174 = arith.constant 0 : index
    %c0_175 = arith.constant 0 : index
    %395 = vector.load %arg6[%c0_174, %c0_175] : memref<128x512xf32, #tpu.memory_space<vmem>>, vector<128x512xf32>
    %cst_176 = arith.constant dense<0.000000e+00> : vector<8x512xf32>
    %396 = tpu.matmul %388, %395, %cst_176 {dimension_numbers = #tpu.dot_dimension_numbers<[1], [0], [0], [1], [0, 0, 1, 1], [], []>} : vector<8x128xf32>, vector<128x512xf32>, vector<8x512xf32> -> vector<8x512xf32>
    %397 = arith.addf %394, %396 : vector<8x512xf32>
    %398 = vector.extract_strided_slice %397 {offsets = [0, 0], sizes = [8, 128], strides = [1, 1]} : vector<8x512xf32> to vector<8x128xf32>
    %cst_177 = arith.constant 5.000000e-01 : f32
    %399 = vector.broadcast %cst_177 : f32 to vector<8x128xf32>
    %400 = arith.mulf %399, %398 : vector<8x128xf32>
    %401 = math.tanh %400 : vector<8x128xf32>
    %cst_178 = arith.constant 5.000000e-01 : f32
    %402 = vector.broadcast %cst_178 : f32 to vector<8x128xf32>
    %403 = arith.mulf %402, %401 : vector<8x128xf32>
    %cst_179 = arith.constant 5.000000e-01 : f32
    %404 = vector.broadcast %cst_179 : f32 to vector<8x128xf32>
    %405 = arith.addf %403, %404 : vector<8x128xf32>
    %406 = vector.extract_strided_slice %397 {offsets = [0, 128], sizes = [8, 128], strides = [1, 1]} : vector<8x512xf32> to vector<8x128xf32>
    %cst_180 = arith.constant 5.000000e-01 : f32
    %407 = vector.broadcast %cst_180 : f32 to vector<8x128xf32>
    %408 = arith.mulf %407, %406 : vector<8x128xf32>
    %409 = math.tanh %408 : vector<8x128xf32>
    %cst_181 = arith.constant 5.000000e-01 : f32
    %410 = vector.broadcast %cst_181 : f32 to vector<8x128xf32>
    %411 = arith.mulf %410, %409 : vector<8x128xf32>
    %cst_182 = arith.constant 5.000000e-01 : f32
    %412 = vector.broadcast %cst_182 : f32 to vector<8x128xf32>
    %413 = arith.addf %411, %412 : vector<8x128xf32>
    %414 = vector.extract_strided_slice %397 {offsets = [0, 256], sizes = [8, 128], strides = [1, 1]} : vector<8x512xf32> to vector<8x128xf32>
    %415 = math.tanh %414 : vector<8x128xf32>
    %416 = vector.extract_strided_slice %397 {offsets = [0, 384], sizes = [8, 128], strides = [1, 1]} : vector<8x512xf32> to vector<8x128xf32>
    %cst_183 = arith.constant 5.000000e-01 : f32
    %417 = vector.broadcast %cst_183 : f32 to vector<8x128xf32>
    %418 = arith.mulf %417, %416 : vector<8x128xf32>
    %419 = math.tanh %418 : vector<8x128xf32>
    %cst_184 = arith.constant 5.000000e-01 : f32
    %420 = vector.broadcast %cst_184 : f32 to vector<8x128xf32>
    %421 = arith.mulf %420, %419 : vector<8x128xf32>
    %cst_185 = arith.constant 5.000000e-01 : f32
    %422 = vector.broadcast %cst_185 : f32 to vector<8x128xf32>
    %423 = arith.addf %421, %422 : vector<8x128xf32>
    %424 = arith.mulf %413, %386 : vector<8x128xf32>
    %425 = arith.mulf %405, %415 : vector<8x128xf32>
    %426 = arith.addf %424, %425 : vector<8x128xf32>
    %427 = math.tanh %426 : vector<8x128xf32>
    %428 = arith.mulf %423, %427 : vector<8x128xf32>
    %429 = arith.index_cast %392 : i32 to index
    %c0_186 = arith.constant 0 : index
    %430 = vector.load %arg8[%429, %c0_186] : memref<64x128xf32, #tpu.memory_space<vmem>>, vector<8x128xf32>
    tpu.vector_store %arg8[%429, %c0_186], %428 {strides = array<i32>} : memref<64x128xf32, #tpu.memory_space<vmem>>, vector<8x128xf32>,
    %c2_i32_187 = arith.constant 2 : i32
    %c8_i32_188 = arith.constant 8 : i32
    %431 = arith.muli %c2_i32_187, %c8_i32_188 : i32
    %432 = tpu.assume_multiple %431, 8 : i32
    %433 = arith.index_cast %432 : i32 to index
    %c0_189 = arith.constant 0 : index
    %434 = vector.load %arg12[%433, %c0_189] : memref<64x512xf32, #tpu.memory_space<vmem>>, vector<8x512xf32>
    %c0_190 = arith.constant 0 : index
    %c0_191 = arith.constant 0 : index
    %435 = vector.load %arg6[%c0_190, %c0_191] : memref<128x512xf32, #tpu.memory_space<vmem>>, vector<128x512xf32>
    %cst_192 = arith.constant dense<0.000000e+00> : vector<8x512xf32>
    %436 = tpu.matmul %428, %435, %cst_192 {dimension_numbers = #tpu.dot_dimension_numbers<[1], [0], [0], [1], [0, 0, 1, 1], [], []>} : vector<8x128xf32>, vector<128x512xf32>, vector<8x512xf32> -> vector<8x512xf32>
    %437 = arith.addf %434, %436 : vector<8x512xf32>
    %438 = vector.extract_strided_slice %437 {offsets = [0, 0], sizes = [8, 128], strides = [1, 1]} : vector<8x512xf32> to vector<8x128xf32>
    %cst_193 = arith.constant 5.000000e-01 : f32
    %439 = vector.broadcast %cst_193 : f32 to vector<8x128xf32>
    %440 = arith.mulf %439, %438 : vector<8x128xf32>
    %441 = math.tanh %440 : vector<8x128xf32>
    %cst_194 = arith.constant 5.000000e-01 : f32
    %442 = vector.broadcast %cst_194 : f32 to vector<8x128xf32>
    %443 = arith.mulf %442, %441 : vector<8x128xf32>
    %cst_195 = arith.constant 5.000000e-01 : f32
    %444 = vector.broadcast %cst_195 : f32 to vector<8x128xf32>
    %445 = arith.addf %443, %444 : vector<8x128xf32>
    %446 = vector.extract_strided_slice %437 {offsets = [0, 128], sizes = [8, 128], strides = [1, 1]} : vector<8x512xf32> to vector<8x128xf32>
    %cst_196 = arith.constant 5.000000e-01 : f32
    %447 = vector.broadcast %cst_196 : f32 to vector<8x128xf32>
    %448 = arith.mulf %447, %446 : vector<8x128xf32>
    %449 = math.tanh %448 : vector<8x128xf32>
    %cst_197 = arith.constant 5.000000e-01 : f32
    %450 = vector.broadcast %cst_197 : f32 to vector<8x128xf32>
    %451 = arith.mulf %450, %449 : vector<8x128xf32>
    %cst_198 = arith.constant 5.000000e-01 : f32
    %452 = vector.broadcast %cst_198 : f32 to vector<8x128xf32>
    %453 = arith.addf %451, %452 : vector<8x128xf32>
    %454 = vector.extract_strided_slice %437 {offsets = [0, 256], sizes = [8, 128], strides = [1, 1]} : vector<8x512xf32> to vector<8x128xf32>
    %455 = math.tanh %454 : vector<8x128xf32>
    %456 = vector.extract_strided_slice %437 {offsets = [0, 384], sizes = [8, 128], strides = [1, 1]} : vector<8x512xf32> to vector<8x128xf32>
    %cst_199 = arith.constant 5.000000e-01 : f32
    %457 = vector.broadcast %cst_199 : f32 to vector<8x128xf32>
    %458 = arith.mulf %457, %456 : vector<8x128xf32>
    %459 = math.tanh %458 : vector<8x128xf32>
    %cst_200 = arith.constant 5.000000e-01 : f32
    %460 = vector.broadcast %cst_200 : f32 to vector<8x128xf32>
    %461 = arith.mulf %460, %459 : vector<8x128xf32>
    %cst_201 = arith.constant 5.000000e-01 : f32
    %462 = vector.broadcast %cst_201 : f32 to vector<8x128xf32>
    %463 = arith.addf %461, %462 : vector<8x128xf32>
    %464 = arith.mulf %453, %426 : vector<8x128xf32>
    %465 = arith.mulf %445, %455 : vector<8x128xf32>
    %466 = arith.addf %464, %465 : vector<8x128xf32>
    %467 = math.tanh %466 : vector<8x128xf32>
    %468 = arith.mulf %463, %467 : vector<8x128xf32>
    %469 = arith.index_cast %432 : i32 to index
    %c0_202 = arith.constant 0 : index
    %470 = vector.load %arg8[%469, %c0_202] : memref<64x128xf32, #tpu.memory_space<vmem>>, vector<8x128xf32>
    tpu.vector_store %arg8[%469, %c0_202], %468 {strides = array<i32>} : memref<64x128xf32, #tpu.memory_space<vmem>>, vector<8x128xf32>,
    %c3_i32_203 = arith.constant 3 : i32
    %c8_i32_204 = arith.constant 8 : i32
    %471 = arith.muli %c3_i32_203, %c8_i32_204 : i32
    %472 = tpu.assume_multiple %471, 8 : i32
    %473 = arith.index_cast %472 : i32 to index
    %c0_205 = arith.constant 0 : index
    %474 = vector.load %arg12[%473, %c0_205] : memref<64x512xf32, #tpu.memory_space<vmem>>, vector<8x512xf32>
    %c0_206 = arith.constant 0 : index
    %c0_207 = arith.constant 0 : index
    %475 = vector.load %arg6[%c0_206, %c0_207] : memref<128x512xf32, #tpu.memory_space<vmem>>, vector<128x512xf32>
    %cst_208 = arith.constant dense<0.000000e+00> : vector<8x512xf32>
    %476 = tpu.matmul %468, %475, %cst_208 {dimension_numbers = #tpu.dot_dimension_numbers<[1], [0], [0], [1], [0, 0, 1, 1], [], []>} : vector<8x128xf32>, vector<128x512xf32>, vector<8x512xf32> -> vector<8x512xf32>
    %477 = arith.addf %474, %476 : vector<8x512xf32>
    %478 = vector.extract_strided_slice %477 {offsets = [0, 0], sizes = [8, 128], strides = [1, 1]} : vector<8x512xf32> to vector<8x128xf32>
    %cst_209 = arith.constant 5.000000e-01 : f32
    %479 = vector.broadcast %cst_209 : f32 to vector<8x128xf32>
    %480 = arith.mulf %479, %478 : vector<8x128xf32>
    %481 = math.tanh %480 : vector<8x128xf32>
    %cst_210 = arith.constant 5.000000e-01 : f32
    %482 = vector.broadcast %cst_210 : f32 to vector<8x128xf32>
    %483 = arith.mulf %482, %481 : vector<8x128xf32>
    %cst_211 = arith.constant 5.000000e-01 : f32
    %484 = vector.broadcast %cst_211 : f32 to vector<8x128xf32>
    %485 = arith.addf %483, %484 : vector<8x128xf32>
    %486 = vector.extract_strided_slice %477 {offsets = [0, 128], sizes = [8, 128], strides = [1, 1]} : vector<8x512xf32> to vector<8x128xf32>
    %cst_212 = arith.constant 5.000000e-01 : f32
    %487 = vector.broadcast %cst_212 : f32 to vector<8x128xf32>
    %488 = arith.mulf %487, %486 : vector<8x128xf32>
    %489 = math.tanh %488 : vector<8x128xf32>
    %cst_213 = arith.constant 5.000000e-01 : f32
    %490 = vector.broadcast %cst_213 : f32 to vector<8x128xf32>
    %491 = arith.mulf %490, %489 : vector<8x128xf32>
    %cst_214 = arith.constant 5.000000e-01 : f32
    %492 = vector.broadcast %cst_214 : f32 to vector<8x128xf32>
    %493 = arith.addf %491, %492 : vector<8x128xf32>
    %494 = vector.extract_strided_slice %477 {offsets = [0, 256], sizes = [8, 128], strides = [1, 1]} : vector<8x512xf32> to vector<8x128xf32>
    %495 = math.tanh %494 : vector<8x128xf32>
    %496 = vector.extract_strided_slice %477 {offsets = [0, 384], sizes = [8, 128], strides = [1, 1]} : vector<8x512xf32> to vector<8x128xf32>
    %cst_215 = arith.constant 5.000000e-01 : f32
    %497 = vector.broadcast %cst_215 : f32 to vector<8x128xf32>
    %498 = arith.mulf %497, %496 : vector<8x128xf32>
    %499 = math.tanh %498 : vector<8x128xf32>
    %cst_216 = arith.constant 5.000000e-01 : f32
    %500 = vector.broadcast %cst_216 : f32 to vector<8x128xf32>
    %501 = arith.mulf %500, %499 : vector<8x128xf32>
    %cst_217 = arith.constant 5.000000e-01 : f32
    %502 = vector.broadcast %cst_217 : f32 to vector<8x128xf32>
    %503 = arith.addf %501, %502 : vector<8x128xf32>
    %504 = arith.mulf %493, %466 : vector<8x128xf32>
    %505 = arith.mulf %485, %495 : vector<8x128xf32>
    %506 = arith.addf %504, %505 : vector<8x128xf32>
    %507 = math.tanh %506 : vector<8x128xf32>
    %508 = arith.mulf %503, %507 : vector<8x128xf32>
    %509 = arith.index_cast %472 : i32 to index
    %c0_218 = arith.constant 0 : index
    %510 = vector.load %arg8[%509, %c0_218] : memref<64x128xf32, #tpu.memory_space<vmem>>, vector<8x128xf32>
    tpu.vector_store %arg8[%509, %c0_218], %508 {strides = array<i32>} : memref<64x128xf32, #tpu.memory_space<vmem>>, vector<8x128xf32>,
    %c4_i32_219 = arith.constant 4 : i32
    %c8_i32_220 = arith.constant 8 : i32
    %511 = arith.muli %c4_i32_219, %c8_i32_220 : i32
    %512 = tpu.assume_multiple %511, 8 : i32
    %513 = arith.index_cast %512 : i32 to index
    %c0_221 = arith.constant 0 : index
    %514 = vector.load %arg12[%513, %c0_221] : memref<64x512xf32, #tpu.memory_space<vmem>>, vector<8x512xf32>
    %c0_222 = arith.constant 0 : index
    %c0_223 = arith.constant 0 : index
    %515 = vector.load %arg6[%c0_222, %c0_223] : memref<128x512xf32, #tpu.memory_space<vmem>>, vector<128x512xf32>
    %cst_224 = arith.constant dense<0.000000e+00> : vector<8x512xf32>
    %516 = tpu.matmul %508, %515, %cst_224 {dimension_numbers = #tpu.dot_dimension_numbers<[1], [0], [0], [1], [0, 0, 1, 1], [], []>} : vector<8x128xf32>, vector<128x512xf32>, vector<8x512xf32> -> vector<8x512xf32>
    %517 = arith.addf %514, %516 : vector<8x512xf32>
    %518 = vector.extract_strided_slice %517 {offsets = [0, 0], sizes = [8, 128], strides = [1, 1]} : vector<8x512xf32> to vector<8x128xf32>
    %cst_225 = arith.constant 5.000000e-01 : f32
    %519 = vector.broadcast %cst_225 : f32 to vector<8x128xf32>
    %520 = arith.mulf %519, %518 : vector<8x128xf32>
    %521 = math.tanh %520 : vector<8x128xf32>
    %cst_226 = arith.constant 5.000000e-01 : f32
    %522 = vector.broadcast %cst_226 : f32 to vector<8x128xf32>
    %523 = arith.mulf %522, %521 : vector<8x128xf32>
    %cst_227 = arith.constant 5.000000e-01 : f32
    %524 = vector.broadcast %cst_227 : f32 to vector<8x128xf32>
    %525 = arith.addf %523, %524 : vector<8x128xf32>
    %526 = vector.extract_strided_slice %517 {offsets = [0, 128], sizes = [8, 128], strides = [1, 1]} : vector<8x512xf32> to vector<8x128xf32>
    %cst_228 = arith.constant 5.000000e-01 : f32
    %527 = vector.broadcast %cst_228 : f32 to vector<8x128xf32>
    %528 = arith.mulf %527, %526 : vector<8x128xf32>
    %529 = math.tanh %528 : vector<8x128xf32>
    %cst_229 = arith.constant 5.000000e-01 : f32
    %530 = vector.broadcast %cst_229 : f32 to vector<8x128xf32>
    %531 = arith.mulf %530, %529 : vector<8x128xf32>
    %cst_230 = arith.constant 5.000000e-01 : f32
    %532 = vector.broadcast %cst_230 : f32 to vector<8x128xf32>
    %533 = arith.addf %531, %532 : vector<8x128xf32>
    %534 = vector.extract_strided_slice %517 {offsets = [0, 256], sizes = [8, 128], strides = [1, 1]} : vector<8x512xf32> to vector<8x128xf32>
    %535 = math.tanh %534 : vector<8x128xf32>
    %536 = vector.extract_strided_slice %517 {offsets = [0, 384], sizes = [8, 128], strides = [1, 1]} : vector<8x512xf32> to vector<8x128xf32>
    %cst_231 = arith.constant 5.000000e-01 : f32
    %537 = vector.broadcast %cst_231 : f32 to vector<8x128xf32>
    %538 = arith.mulf %537, %536 : vector<8x128xf32>
    %539 = math.tanh %538 : vector<8x128xf32>
    %cst_232 = arith.constant 5.000000e-01 : f32
    %540 = vector.broadcast %cst_232 : f32 to vector<8x128xf32>
    %541 = arith.mulf %540, %539 : vector<8x128xf32>
    %cst_233 = arith.constant 5.000000e-01 : f32
    %542 = vector.broadcast %cst_233 : f32 to vector<8x128xf32>
    %543 = arith.addf %541, %542 : vector<8x128xf32>
    %544 = arith.mulf %533, %506 : vector<8x128xf32>
    %545 = arith.mulf %525, %535 : vector<8x128xf32>
    %546 = arith.addf %544, %545 : vector<8x128xf32>
    %547 = math.tanh %546 : vector<8x128xf32>
    %548 = arith.mulf %543, %547 : vector<8x128xf32>
    %549 = arith.index_cast %512 : i32 to index
    %c0_234 = arith.constant 0 : index
    %550 = vector.load %arg8[%549, %c0_234] : memref<64x128xf32, #tpu.memory_space<vmem>>, vector<8x128xf32>
    tpu.vector_store %arg8[%549, %c0_234], %548 {strides = array<i32>} : memref<64x128xf32, #tpu.memory_space<vmem>>, vector<8x128xf32>,
    %c5_i32_235 = arith.constant 5 : i32
    %c8_i32_236 = arith.constant 8 : i32
    %551 = arith.muli %c5_i32_235, %c8_i32_236 : i32
    %552 = tpu.assume_multiple %551, 8 : i32
    %553 = arith.index_cast %552 : i32 to index
    %c0_237 = arith.constant 0 : index
    %554 = vector.load %arg12[%553, %c0_237] : memref<64x512xf32, #tpu.memory_space<vmem>>, vector<8x512xf32>
    %c0_238 = arith.constant 0 : index
    %c0_239 = arith.constant 0 : index
    %555 = vector.load %arg6[%c0_238, %c0_239] : memref<128x512xf32, #tpu.memory_space<vmem>>, vector<128x512xf32>
    %cst_240 = arith.constant dense<0.000000e+00> : vector<8x512xf32>
    %556 = tpu.matmul %548, %555, %cst_240 {dimension_numbers = #tpu.dot_dimension_numbers<[1], [0], [0], [1], [0, 0, 1, 1], [], []>} : vector<8x128xf32>, vector<128x512xf32>, vector<8x512xf32> -> vector<8x512xf32>
    %557 = arith.addf %554, %556 : vector<8x512xf32>
    %558 = vector.extract_strided_slice %557 {offsets = [0, 0], sizes = [8, 128], strides = [1, 1]} : vector<8x512xf32> to vector<8x128xf32>
    %cst_241 = arith.constant 5.000000e-01 : f32
    %559 = vector.broadcast %cst_241 : f32 to vector<8x128xf32>
    %560 = arith.mulf %559, %558 : vector<8x128xf32>
    %561 = math.tanh %560 : vector<8x128xf32>
    %cst_242 = arith.constant 5.000000e-01 : f32
    %562 = vector.broadcast %cst_242 : f32 to vector<8x128xf32>
    %563 = arith.mulf %562, %561 : vector<8x128xf32>
    %cst_243 = arith.constant 5.000000e-01 : f32
    %564 = vector.broadcast %cst_243 : f32 to vector<8x128xf32>
    %565 = arith.addf %563, %564 : vector<8x128xf32>
    %566 = vector.extract_strided_slice %557 {offsets = [0, 128], sizes = [8, 128], strides = [1, 1]} : vector<8x512xf32> to vector<8x128xf32>
    %cst_244 = arith.constant 5.000000e-01 : f32
    %567 = vector.broadcast %cst_244 : f32 to vector<8x128xf32>
    %568 = arith.mulf %567, %566 : vector<8x128xf32>
    %569 = math.tanh %568 : vector<8x128xf32>
    %cst_245 = arith.constant 5.000000e-01 : f32
    %570 = vector.broadcast %cst_245 : f32 to vector<8x128xf32>
    %571 = arith.mulf %570, %569 : vector<8x128xf32>
    %cst_246 = arith.constant 5.000000e-01 : f32
    %572 = vector.broadcast %cst_246 : f32 to vector<8x128xf32>
    %573 = arith.addf %571, %572 : vector<8x128xf32>
    %574 = vector.extract_strided_slice %557 {offsets = [0, 256], sizes = [8, 128], strides = [1, 1]} : vector<8x512xf32> to vector<8x128xf32>
    %575 = math.tanh %574 : vector<8x128xf32>
    %576 = vector.extract_strided_slice %557 {offsets = [0, 384], sizes = [8, 128], strides = [1, 1]} : vector<8x512xf32> to vector<8x128xf32>
    %cst_247 = arith.constant 5.000000e-01 : f32
    %577 = vector.broadcast %cst_247 : f32 to vector<8x128xf32>
    %578 = arith.mulf %577, %576 : vector<8x128xf32>
    %579 = math.tanh %578 : vector<8x128xf32>
    %cst_248 = arith.constant 5.000000e-01 : f32
    %580 = vector.broadcast %cst_248 : f32 to vector<8x128xf32>
    %581 = arith.mulf %580, %579 : vector<8x128xf32>
    %cst_249 = arith.constant 5.000000e-01 : f32
    %582 = vector.broadcast %cst_249 : f32 to vector<8x128xf32>
    %583 = arith.addf %581, %582 : vector<8x128xf32>
    %584 = arith.mulf %573, %546 : vector<8x128xf32>
    %585 = arith.mulf %565, %575 : vector<8x128xf32>
    %586 = arith.addf %584, %585 : vector<8x128xf32>
    %587 = math.tanh %586 : vector<8x128xf32>
    %588 = arith.mulf %583, %587 : vector<8x128xf32>
    %589 = arith.index_cast %552 : i32 to index
    %c0_250 = arith.constant 0 : index
    %590 = vector.load %arg8[%589, %c0_250] : memref<64x128xf32, #tpu.memory_space<vmem>>, vector<8x128xf32>
    tpu.vector_store %arg8[%589, %c0_250], %588 {strides = array<i32>} : memref<64x128xf32, #tpu.memory_space<vmem>>, vector<8x128xf32>,
    %c6_i32_251 = arith.constant 6 : i32
    %c8_i32_252 = arith.constant 8 : i32
    %591 = arith.muli %c6_i32_251, %c8_i32_252 : i32
    %592 = tpu.assume_multiple %591, 8 : i32
    %593 = arith.index_cast %592 : i32 to index
    %c0_253 = arith.constant 0 : index
    %594 = vector.load %arg12[%593, %c0_253] : memref<64x512xf32, #tpu.memory_space<vmem>>, vector<8x512xf32>
    %c0_254 = arith.constant 0 : index
    %c0_255 = arith.constant 0 : index
    %595 = vector.load %arg6[%c0_254, %c0_255] : memref<128x512xf32, #tpu.memory_space<vmem>>, vector<128x512xf32>
    %cst_256 = arith.constant dense<0.000000e+00> : vector<8x512xf32>
    %596 = tpu.matmul %588, %595, %cst_256 {dimension_numbers = #tpu.dot_dimension_numbers<[1], [0], [0], [1], [0, 0, 1, 1], [], []>} : vector<8x128xf32>, vector<128x512xf32>, vector<8x512xf32> -> vector<8x512xf32>
    %597 = arith.addf %594, %596 : vector<8x512xf32>
    %598 = vector.extract_strided_slice %597 {offsets = [0, 0], sizes = [8, 128], strides = [1, 1]} : vector<8x512xf32> to vector<8x128xf32>
    %cst_257 = arith.constant 5.000000e-01 : f32
    %599 = vector.broadcast %cst_257 : f32 to vector<8x128xf32>
    %600 = arith.mulf %599, %598 : vector<8x128xf32>
    %601 = math.tanh %600 : vector<8x128xf32>
    %cst_258 = arith.constant 5.000000e-01 : f32
    %602 = vector.broadcast %cst_258 : f32 to vector<8x128xf32>
    %603 = arith.mulf %602, %601 : vector<8x128xf32>
    %cst_259 = arith.constant 5.000000e-01 : f32
    %604 = vector.broadcast %cst_259 : f32 to vector<8x128xf32>
    %605 = arith.addf %603, %604 : vector<8x128xf32>
    %606 = vector.extract_strided_slice %597 {offsets = [0, 128], sizes = [8, 128], strides = [1, 1]} : vector<8x512xf32> to vector<8x128xf32>
    %cst_260 = arith.constant 5.000000e-01 : f32
    %607 = vector.broadcast %cst_260 : f32 to vector<8x128xf32>
    %608 = arith.mulf %607, %606 : vector<8x128xf32>
    %609 = math.tanh %608 : vector<8x128xf32>
    %cst_261 = arith.constant 5.000000e-01 : f32
    %610 = vector.broadcast %cst_261 : f32 to vector<8x128xf32>
    %611 = arith.mulf %610, %609 : vector<8x128xf32>
    %cst_262 = arith.constant 5.000000e-01 : f32
    %612 = vector.broadcast %cst_262 : f32 to vector<8x128xf32>
    %613 = arith.addf %611, %612 : vector<8x128xf32>
    %614 = vector.extract_strided_slice %597 {offsets = [0, 256], sizes = [8, 128], strides = [1, 1]} : vector<8x512xf32> to vector<8x128xf32>
    %615 = math.tanh %614 : vector<8x128xf32>
    %616 = vector.extract_strided_slice %597 {offsets = [0, 384], sizes = [8, 128], strides = [1, 1]} : vector<8x512xf32> to vector<8x128xf32>
    %cst_263 = arith.constant 5.000000e-01 : f32
    %617 = vector.broadcast %cst_263 : f32 to vector<8x128xf32>
    %618 = arith.mulf %617, %616 : vector<8x128xf32>
    %619 = math.tanh %618 : vector<8x128xf32>
    %cst_264 = arith.constant 5.000000e-01 : f32
    %620 = vector.broadcast %cst_264 : f32 to vector<8x128xf32>
    %621 = arith.mulf %620, %619 : vector<8x128xf32>
    %cst_265 = arith.constant 5.000000e-01 : f32
    %622 = vector.broadcast %cst_265 : f32 to vector<8x128xf32>
    %623 = arith.addf %621, %622 : vector<8x128xf32>
    %624 = arith.mulf %613, %586 : vector<8x128xf32>
    %625 = arith.mulf %605, %615 : vector<8x128xf32>
    %626 = arith.addf %624, %625 : vector<8x128xf32>
    %627 = math.tanh %626 : vector<8x128xf32>
    %628 = arith.mulf %623, %627 : vector<8x128xf32>
    %629 = arith.index_cast %592 : i32 to index
    %c0_266 = arith.constant 0 : index
    %630 = vector.load %arg8[%629, %c0_266] : memref<64x128xf32, #tpu.memory_space<vmem>>, vector<8x128xf32>
    tpu.vector_store %arg8[%629, %c0_266], %628 {strides = array<i32>} : memref<64x128xf32, #tpu.memory_space<vmem>>, vector<8x128xf32>,
    %c7_i32_267 = arith.constant 7 : i32
    %c8_i32_268 = arith.constant 8 : i32
    %631 = arith.muli %c7_i32_267, %c8_i32_268 : i32
    %632 = tpu.assume_multiple %631, 8 : i32
    %633 = arith.index_cast %632 : i32 to index
    %c0_269 = arith.constant 0 : index
    %634 = vector.load %arg12[%633, %c0_269] : memref<64x512xf32, #tpu.memory_space<vmem>>, vector<8x512xf32>
    %c0_270 = arith.constant 0 : index
    %c0_271 = arith.constant 0 : index
    %635 = vector.load %arg6[%c0_270, %c0_271] : memref<128x512xf32, #tpu.memory_space<vmem>>, vector<128x512xf32>
    %cst_272 = arith.constant dense<0.000000e+00> : vector<8x512xf32>
    %636 = tpu.matmul %628, %635, %cst_272 {dimension_numbers = #tpu.dot_dimension_numbers<[1], [0], [0], [1], [0, 0, 1, 1], [], []>} : vector<8x128xf32>, vector<128x512xf32>, vector<8x512xf32> -> vector<8x512xf32>
    %637 = arith.addf %634, %636 : vector<8x512xf32>
    %638 = vector.extract_strided_slice %637 {offsets = [0, 0], sizes = [8, 128], strides = [1, 1]} : vector<8x512xf32> to vector<8x128xf32>
    %cst_273 = arith.constant 5.000000e-01 : f32
    %639 = vector.broadcast %cst_273 : f32 to vector<8x128xf32>
    %640 = arith.mulf %639, %638 : vector<8x128xf32>
    %641 = math.tanh %640 : vector<8x128xf32>
    %cst_274 = arith.constant 5.000000e-01 : f32
    %642 = vector.broadcast %cst_274 : f32 to vector<8x128xf32>
    %643 = arith.mulf %642, %641 : vector<8x128xf32>
    %cst_275 = arith.constant 5.000000e-01 : f32
    %644 = vector.broadcast %cst_275 : f32 to vector<8x128xf32>
    %645 = arith.addf %643, %644 : vector<8x128xf32>
    %646 = vector.extract_strided_slice %637 {offsets = [0, 128], sizes = [8, 128], strides = [1, 1]} : vector<8x512xf32> to vector<8x128xf32>
    %cst_276 = arith.constant 5.000000e-01 : f32
    %647 = vector.broadcast %cst_276 : f32 to vector<8x128xf32>
    %648 = arith.mulf %647, %646 : vector<8x128xf32>
    %649 = math.tanh %648 : vector<8x128xf32>
    %cst_277 = arith.constant 5.000000e-01 : f32
    %650 = vector.broadcast %cst_277 : f32 to vector<8x128xf32>
    %651 = arith.mulf %650, %649 : vector<8x128xf32>
    %cst_278 = arith.constant 5.000000e-01 : f32
    %652 = vector.broadcast %cst_278 : f32 to vector<8x128xf32>
    %653 = arith.addf %651, %652 : vector<8x128xf32>
    %654 = vector.extract_strided_slice %637 {offsets = [0, 256], sizes = [8, 128], strides = [1, 1]} : vector<8x512xf32> to vector<8x128xf32>
    %655 = math.tanh %654 : vector<8x128xf32>
    %656 = vector.extract_strided_slice %637 {offsets = [0, 384], sizes = [8, 128], strides = [1, 1]} : vector<8x512xf32> to vector<8x128xf32>
    %cst_279 = arith.constant 5.000000e-01 : f32
    %657 = vector.broadcast %cst_279 : f32 to vector<8x128xf32>
    %658 = arith.mulf %657, %656 : vector<8x128xf32>
    %659 = math.tanh %658 : vector<8x128xf32>
    %cst_280 = arith.constant 5.000000e-01 : f32
    %660 = vector.broadcast %cst_280 : f32 to vector<8x128xf32>
    %661 = arith.mulf %660, %659 : vector<8x128xf32>
    %cst_281 = arith.constant 5.000000e-01 : f32
    %662 = vector.broadcast %cst_281 : f32 to vector<8x128xf32>
    %663 = arith.addf %661, %662 : vector<8x128xf32>
    %664 = arith.mulf %653, %626 : vector<8x128xf32>
    %665 = arith.mulf %645, %655 : vector<8x128xf32>
    %666 = arith.addf %664, %665 : vector<8x128xf32>
    %667 = math.tanh %666 : vector<8x128xf32>
    %668 = arith.mulf %663, %667 : vector<8x128xf32>
    %669 = arith.index_cast %632 : i32 to index
    %c0_282 = arith.constant 0 : index
    %670 = vector.load %arg8[%669, %c0_282] : memref<64x128xf32, #tpu.memory_space<vmem>>, vector<8x128xf32>
    tpu.vector_store %arg8[%669, %c0_282], %668 {strides = array<i32>} : memref<64x128xf32, #tpu.memory_space<vmem>>, vector<8x128xf32>,
    %c8_i32_283 = arith.constant 8 : i32
    %c1_284 = arith.constant 1 : index
    %c0_285 = arith.constant 0 : index
    %c0_286 = arith.constant 0 : index
    %671 = vector.load %arg9[%c1_284, %c0_285, %c0_286] : memref<2x8x128xf32, #tpu.memory_space<vmem>>, vector<1x8x128xf32>
    %672 = vector.shape_cast %671 : vector<1x8x128xf32> to vector<8x128xf32>
    %673 = vector.shape_cast %668 : vector<8x128xf32> to vector<1x8x128xf32>
    tpu.vector_store %arg9[%c1_284, %c0_285, %c0_286], %673 {strides = array<i32>} : memref<2x8x128xf32, #tpu.memory_space<vmem>>, vector<1x8x128xf32>,
    %c1_287 = arith.constant 1 : index
    %c0_288 = arith.constant 0 : index
    %c0_289 = arith.constant 0 : index
    %674 = vector.load %arg10[%c1_287, %c0_288, %c0_289] : memref<2x8x128xf32, #tpu.memory_space<vmem>>, vector<1x8x128xf32>
    %675 = vector.shape_cast %674 : vector<1x8x128xf32> to vector<8x128xf32>
    %676 = vector.shape_cast %666 : vector<8x128xf32> to vector<1x8x128xf32>
    tpu.vector_store %arg10[%c1_287, %c0_288, %c0_289], %676 {strides = array<i32>} : memref<2x8x128xf32, #tpu.memory_space<vmem>>, vector<1x8x128xf32>,
    return
  }
  func.func @transform_0(%arg0: i32) -> (i32, i32) {
    %c0_i32 = arith.constant 0 : i32
    %c0_i32_0 = arith.constant 0 : i32
    return %arg0, %c0_i32 : i32, i32
  }
  func.func @transform_1(%arg0: i32) -> (i32, i32) {
    %c0_i32 = arith.constant 0 : i32
    %c0_i32_0 = arith.constant 0 : i32
    %c0_i32_1 = arith.constant 0 : i32
    return %c0_i32, %c0_i32_0 : i32, i32
  }
  func.func @transform_2(%arg0: i32) -> (i32, i32) {
    %c0_i32 = arith.constant 0 : i32
    %c0_i32_0 = arith.constant 0 : i32
    %c0_i32_1 = arith.constant 0 : i32
    return %c0_i32, %c0_i32_0 : i32, i32
  }
  func.func @transform_3(%arg0: i32) -> (i32, i32) {
    %c0_i32 = arith.constant 0 : i32
    %c0_i32_0 = arith.constant 0 : i32
    %c0_i32_1 = arith.constant 0 : i32
    return %c0_i32, %c0_i32_0 : i32, i32
  }
  func.func @transform_4(%arg0: i32) -> (i32, i32) {
    %c0_i32 = arith.constant 0 : i32
    %c0_i32_0 = arith.constant 0 : i32
    %c0_i32_1 = arith.constant 0 : i32
    return %c0_i32, %c0_i32_0 : i32, i32
  }
  func.func @transform_5(%arg0: i32) -> (i32, i32) {
    %c0_i32 = arith.constant 0 : i32
    %c0_i32_0 = arith.constant 0 : i32
    %c0_i32_1 = arith.constant 0 : i32
    return %c0_i32, %c0_i32_0 : i32, i32
  }
  func.func @transform_6(%arg0: i32) -> (i32, i32) {
    %c0_i32 = arith.constant 0 : i32
    %c0_i32_0 = arith.constant 0 : i32
    %c0_i32_1 = arith.constant 0 : i32
    return %c0_i32, %c0_i32_0 : i32, i32
  }
  func.func @transform_7(%arg0: i32) -> (i32, i32) {
    %c0_i32 = arith.constant 0 : i32
    %c0_i32_0 = arith.constant 0 : i32
    return %arg0, %c0_i32 : i32, i32
  }
  func.func @transform_8(%arg0: i32) -> (i32, i32, i32) {
    %c0_i32 = arith.constant 0 : i32
    %c0_i32_0 = arith.constant 0 : i32
    %c0_i32_1 = arith.constant 0 : i32
    %c0_i32_2 = arith.constant 0 : i32
    return %c0_i32, %c0_i32_0, %c0_i32_1 : i32, i32, i32
  }
  func.func @transform_9(%arg0: i32) -> (i32, i32, i32) {
    %c0_i32 = arith.constant 0 : i32
    %c0_i32_0 = arith.constant 0 : i32
    %c0_i32_1 = arith.constant 0 : i32
    %c0_i32_2 = arith.constant 0 : i32
    return %c0_i32, %c0_i32_0, %c0_i32_1 : i32, i32, i32
  }
}

</mosaic_0001>

<bundles_post_ra>
// kernel: encoder_forward.1
= control target key start
LH: loop header
LB: loop body
LE: loop exit
PB: predicated region body
PF: predicated region fallthrough
CT: control target
= control target key end

     0   :  { %vm63_vm0 = vcmask 130048   ;;  %s6858_s1 = inlined_call_operand.vmem [shape: f32[16,512], index: 1, kind: input, shape index: {}]   ;;  %s6859_s0 = inlined_call_operand.vmem [shape: f32[64,16], index: 0, kind: input, shape index: {}]   ;;  %s6860_s2 = inlined_call_operand.vmem [shape: f32[128,512], index: 2, kind: input, shape index: {}]   ;;  %s6861_s3 = inlined_call_operand.vmem [shape: f32[1,512], index: 3, kind: input, shape index: {}]   ;;  %s6862_s4 = inlined_call_operand.vmem [shape: f32[128,512], index: 4, kind: input, shape index: {}]   ;;  %s6863_s5 = inlined_call_operand.vmem [shape: f32[128,512], index: 5, kind: input, shape index: {}]   ;;  %s6864_s9 = inlined_call_operand.vmem [shape: f32[2,8,128], index: 9, kind: output, shape index: {2}]   ;;  %s6865_s8 = inlined_call_operand.vmem [shape: f32[2,8,128], index: 8, kind: output, shape index: {1}]   ;;  %s6866_s6 = inlined_call_operand.vmem [shape: f32[1,512], index: 6, kind: input, shape index: {}]   ;;  %s6867_s7 = inlined_call_operand.vmem [shape: f32[64,128], index: 7, kind: output, shape index: {0}]  }
   0x1   :  { %v49_v0 = vld [vmem:[%s6858_s1 + $0x20] sm:$0xff]  ;;  %v50_v1 = vld [vmem:[%s6858_s1 + $0x28] sm:$0xff]  ;;  %v51_v2 = vld [vmem:[%s6858_s1 + $0x30] sm:$0xff] }
   0x2   :  { %102 = vmatpush.msra.mxu0 %v49_v0  ;;  %143 = vmatpush.msra.mxu1 %v50_v1  ;;  %v52_v3 = vld [vmem:[%s6858_s1 + $0x38] sm:$0xff]  ;;  %v45_v4 = vld [vmem:[%s6858_s1] sm:$0xff]  ;;  %v46_v5 = vld [vmem:[%s6858_s1 + $0x8] sm:$0xff] }
   0x3   :  { %184 = vmatpush.msra.mxu2 %v51_v2  ;;  %225 = vmatpush.msra.mxu3 %v52_v3  ;;  %v47_v6 = vld [vmem:[%s6858_s1 + $0x10] sm:$0xff]  ;;  %v48_v7 = vld [vmem:[%s6858_s1 + $0x18] sm:$0xff]  ;;  %v37_v8 = vld [vmem:[%s6859_s0] sm:$0xff] }
   0x4   :  { %103 = vmatpush.msra.mxu0 %v45_v4  ;;  %144 = vmatpush.msra.mxu1 %v46_v5  ;;  %v3650_v9 = vld [vmem:[%s6860_s2 + $0x1e0] sm:$0xff]  ;;  %v3655_v10 = vld [vmem:[%s6860_s2 + $0x1e8] sm:$0xff]  ;;  %v3662_v11 = vld [vmem:[%s6860_s2 + $0x1f0] sm:$0xff] }
   0x5   :  { %185 = vmatpush.msra.mxu2 %v47_v6  ;;  %226 = vmatpush.msra.mxu3 %v48_v7  ;;  %v3667_v12 = vld [vmem:[%s6860_s2 + $0x1f8] sm:$0xff]  ;;  %v3674_v13 = vld [vmem:[%s6860_s2 + $0x1c0] sm:$0xff]  ;;  %v3679_v14 = vld [vmem:[%s6860_s2 + $0x1c8] sm:$0xff] }
   0x6   :  { %3365 = vmatmul.msk.f32.vlgmr.msra.gmra.mxu0 %vm63_vm0, %v37_v8  ;;  %3373 = vmatmul.msk.f32.vlgmr.msra.gmra.mxu1 %vm63_vm0, %v37_v8  ;;  %v3686_v15 = vld [vmem:[%s6860_s2 + $0x1d0] sm:$0xff]  ;;  %v3691_v16 = vld [vmem:[%s6860_s2 + $0x1d8] sm:$0xff]  ;;  %v3698_v17 = vld [vmem:[%s6860_s2 + $0x1a0] sm:$0xff] }
   0x7   :  { %3381 = vmatmul.msk.f32.vlgmr.msra.gmra.mxu2 %vm63_vm0, %v37_v8  ;;  %3389 = vmatmul.msk.f32.vlgmr.msra.gmra.mxu3 %vm63_vm0, %v37_v8  ;;  %v3703_v18 = vld [vmem:[%s6860_s2 + $0x1a8] sm:$0xff]  ;;  %v3710_v19 = vld [vmem:[%s6860_s2 + $0x1b0] sm:$0xff]  ;;  %v3715_v20 = vld [vmem:[%s6860_s2 + $0x1b8] sm:$0xff] }
   0x8   :  { %357 = vmatpush.msrb.mxu0 %v3650_v9  ;;  %377 = vmatpush.msrb.mxu1 %v3655_v10  ;;  %v38_v21 = vld [vmem:[%s6859_s0 + $0x8] sm:$0xff]  ;;  %v3728_v22 = vld [vmem:[%s6860_s2 + $0x180] sm:$0xff]  ;;  %v3741_v24 = vld [vmem:[%s6860_s2 + $0x190] sm:$0xff] }
   0x9   :  { %397 = vmatpush.msrb.mxu2 %v3662_v11  ;;  %417 = vmatpush.msrb.mxu3 %v3667_v12  ;;  %v3733_v23 = vld [vmem:[%s6860_s2 + $0x188] sm:$0xff]  ;;  %v3746_v25 = vld [vmem:[%s6860_s2 + $0x198] sm:$0xff]  ;;  %v3753_v26 = vld [vmem:[%s6860_s2 + $0x160] sm:$0xff] }
   0xa   :  { %358 = vmatpush.msrb.mxu0 %v3674_v13  ;;  %378 = vmatpush.msrb.mxu1 %v3679_v14  ;;  %v3758_v27 = vld [vmem:[%s6860_s2 + $0x168] sm:$0xff]  ;;  %v3765_v28 = vld [vmem:[%s6860_s2 + $0x170] sm:$0xff]  ;;  %v3770_v29 = vld [vmem:[%s6860_s2 + $0x178] sm:$0xff] }
   0xb   :  { %398 = vmatpush.msrb.mxu2 %v3686_v15  ;;  %418 = vmatpush.msrb.mxu3 %v3691_v16  ;;  %v3777_v30 = vld [vmem:[%s6860_s2 + $0x140] sm:$0xff]  ;;  %v3782_v31 = vld [vmem:[%s6860_s2 + $0x148] sm:$0xff]  ;;  %v3789_v32 = vld [vmem:[%s6860_s2 + $0x150] sm:$0xff] }
   0xc   :  { %359 = vmatpush.msrb.mxu0 %v3698_v17  ;;  %379 = vmatpush.msrb.mxu1 %v3703_v18  ;;  %v3794_v33 = vld [vmem:[%s6860_s2 + $0x158] sm:$0xff]  ;;  %v39_v34 = vld [vmem:[%s6859_s0 + $0x10] sm:$0xff]  ;;  %v3807_v35 = vld [vmem:[%s6860_s2 + $0x120] sm:$0xff] }
   0xd   :  { %399 = vmatpush.msrb.mxu2 %v3710_v19  ;;  %419 = vmatpush.msrb.mxu3 %v3715_v20  ;;  %v3812_v36 = vld [vmem:[%s6860_s2 + $0x128] sm:$0xff]  ;;  %v3820_v37 = vld [vmem:[%s6860_s2 + $0x130] sm:$0xff]  ;;  %v3825_v38 = vld [vmem:[%s6860_s2 + $0x138] sm:$0xff] }
   0xe   :  { %3366 = vmatmul.msk.f32.gmra.mxu0 %vm63_vm0, %v38_v21  ;;  %3374 = vmatmul.msk.f32.gmra.mxu1 %vm63_vm0, %v38_v21  ;;  %v3832_v39 = vld [vmem:[%s6860_s2 + $0x100] sm:$0xff]  ;;  %v3837_v40 = vld [vmem:[%s6860_s2 + $0x108] sm:$0xff]  ;;  %v3844_v41 = vld [vmem:[%s6860_s2 + $0x110] sm:$0xff] }
   0xf   :  { %3382 = vmatmul.msk.f32.gmra.mxu2 %vm63_vm0, %v38_v21  ;;  %3390 = vmatmul.msk.f32.gmra.mxu3 %vm63_vm0, %v38_v21  ;;  %v3849_v42 = vld [vmem:[%s6860_s2 + $0x118] sm:$0xff]  ;;  %v3856_v43 = vld [vmem:[%s6860_s2 + $0xe0] sm:$0xff]  ;;  %v3861_v44 = vld [vmem:[%s6860_s2 + $0xe8] sm:$0xff] }
  0x10   :  { %360 = vmatpush.msrb.mxu0 %v3728_v22  ;;  %380 = vmatpush.msrb.mxu1 %v3733_v23  ;;  %v3868_v45 = vld [vmem:[%s6860_s2 + $0xf0] sm:$0xff]  ;;  %v3873_v46 = vld [vmem:[%s6860_s2 + $0xf8] sm:$0xff]  ;;  %v3886_v48 = vld [vmem:[%s6860_s2 + $0xc0] sm:$0xff] }
  0x11   :  { %400 = vmatpush.msrb.mxu2 %v3741_v24  ;;  %420 = vmatpush.msrb.mxu3 %v3746_v25  ;;  %v40_v47 = vld [vmem:[%s6859_s0 + $0x18] sm:$0xff]  ;;  %v3891_v49 = vld [vmem:[%s6860_s2 + $0xc8] sm:$0xff]  ;;  %v3899_v50 = vld [vmem:[%s6860_s2 + $0xd0] sm:$0xff] }
  0x12   :  { %361 = vmatpush.msrb.mxu0 %v3753_v26  ;;  %381 = vmatpush.msrb.mxu1 %v3758_v27  ;;  %v3904_v51 = vld [vmem:[%s6860_s2 + $0xd8] sm:$0xff]  ;;  %v3911_v52 = vld [vmem:[%s6860_s2 + $0xa0] sm:$0xff]  ;;  %v3916_v53 = vld [vmem:[%s6860_s2 + $0xa8] sm:$0xff] }
  0x13   :  { %401 = vmatpush.msrb.mxu2 %v3765_v28  ;;  %421 = vmatpush.msrb.mxu3 %v3770_v29  ;;  %v3923_v54 = vld [vmem:[%s6860_s2 + $0xb0] sm:$0xff]  ;;  %v3928_v55 = vld [vmem:[%s6860_s2 + $0xb8] sm:$0xff]  ;;  %v3935_v56 = vld [vmem:[%s6860_s2 + $0x80] sm:$0xff] }
  0x14   :  { %362 = vmatpush.msrb.mxu0 %v3777_v30  ;;  %382 = vmatpush.msrb.mxu1 %v3782_v31  ;;  %v3940_v57 = vld [vmem:[%s6860_s2 + $0x88] sm:$0xff]  ;;  %v3947_v58 = vld [vmem:[%s6860_s2 + $0x90] sm:$0xff]  ;;  %v3952_v59 = vld [vmem:[%s6860_s2 + $0x98] sm:$0xff] }
  0x15   :  { %402 = vmatpush.msrb.mxu2 %v3789_v32  ;;  %422 = vmatpush.msrb.mxu3 %v3794_v33  ;;  %v41_v60 = vld [vmem:[%s6859_s0 + $0x20] sm:$0xff]  ;;  %v3970_v62 = vld [vmem:[%s6860_s2 + $0x68] sm:$0xff]  ;;  %v3978_v63 = vld [vmem:[%s6860_s2 + $0x70] sm:$0xff] }
  0x16   :  { %3367 = vmatmul.msk.f32.gmra.mxu0 %vm63_vm0, %v39_v34  ;;  %3375 = vmatmul.msk.f32.gmra.mxu1 %vm63_vm0, %v39_v34  ;;  %v3965_v61 = vld [vmem:[%s6860_s2 + $0x60] sm:$0xff]  ;;  %v3983_v0 = vld [vmem:[%s6860_s2 + $0x78] sm:$0xff]  ;;  %v3995_v2 = vld [vmem:[%s6860_s2 + $0x48] sm:$0xff] }
  0x17   :  { %3383 = vmatmul.msk.f32.gmra.mxu2 %vm63_vm0, %v39_v34  ;;  %3391 = vmatmul.msk.f32.gmra.mxu3 %vm63_vm0, %v39_v34  ;;  %v3990_v1 = vld [vmem:[%s6860_s2 + $0x40] sm:$0xff]  ;;  %v4002_v3 = vld [vmem:[%s6860_s2 + $0x50] sm:$0xff]  ;;  %v4007_v4 = vld [vmem:[%s6860_s2 + $0x58] sm:$0xff] }
  0x18   :  { %363 = vmatpush.msrb.mxu0 %v3807_v35  ;;  %383 = vmatpush.msrb.mxu1 %v3812_v36  ;;  %v4014_v5 = vld [vmem:[%s6860_s2 + $0x20] sm:$0xff]  ;;  %v4019_v6 = vld [vmem:[%s6860_s2 + $0x28] sm:$0xff]  ;;  %v4026_v7 = vld [vmem:[%s6860_s2 + $0x30] sm:$0xff] }
  0x19   :  { %403 = vmatpush.msrb.mxu2 %v3820_v37  ;;  %423 = vmatpush.msrb.mxu3 %v3825_v38  ;;  %7019 = vst [vmem:[#allocation4_spill] sm:$0xff] %v4026_v7  ;;  %v4031_v8 = vld [vmem:[%s6860_s2 + $0x38] sm:$0xff]  ;;  %v42_v21 = vld [vmem:[%s6859_s0 + $0x28] sm:$0xff]  ;;  %v4044_v34 = vld [vmem:[%s6860_s2] sm:$0xff] }
  0x1a   :  { %364 = vmatpush.msrb.mxu0 %v3832_v39  ;;  %384 = vmatpush.msrb.mxu1 %v3837_v40  ;;  %7020 = vst [vmem:[#allocation5_spill] sm:$0xff] %v4031_v8 }
  0x1b   :  { %404 = vmatpush.msrb.mxu2 %v3844_v41  ;;  %424 = vmatpush.msrb.mxu3 %v3849_v42 }
  0x1c   :  { %365 = vmatpush.msrb.mxu0 %v3856_v43  ;;  %385 = vmatpush.msrb.mxu1 %v3861_v44 }
  0x1d   :  { %405 = vmatpush.msrb.mxu2 %v3868_v45  ;;  %425 = vmatpush.msrb.mxu3 %v3873_v46 }
  0x1e   :  { %3368 = vmatmul.msk.f32.gmra.mxu0 %vm63_vm0, %v40_v47  ;;  %3376 = vmatmul.msk.f32.gmra.mxu1 %vm63_vm0, %v40_v47 }
  0x1f   :  { %3384 = vmatmul.msk.f32.gmra.mxu2 %vm63_vm0, %v40_v47  ;;  %3392 = vmatmul.msk.f32.gmra.mxu3 %vm63_vm0, %v40_v47  ;;  %v4049_v47 = vld [vmem:[%s6860_s2 + $0x8] sm:$0xff] }
  0x20   :  { %366 = vmatpush.msrb.mxu0 %v3886_v48  ;;  %386 = vmatpush.msrb.mxu1 %v3891_v49 }
  0x21   :  { %406 = vmatpush.msrb.mxu2 %v3899_v50  ;;  %426 = vmatpush.msrb.mxu3 %v3904_v51 }
  0x22   :  { %367 = vmatpush.msrb.mxu0 %v3911_v52  ;;  %387 = vmatpush.msrb.mxu1 %v3916_v53 }
  0x23   :  { %407 = vmatpush.msrb.mxu2 %v3923_v54  ;;  %427 = vmatpush.msrb.mxu3 %v3928_v55 }
  0x24   :  { %368 = vmatpush.msrb.mxu0 %v3935_v56  ;;  %388 = vmatpush.msrb.mxu1 %v3940_v57 }
  0x25   :  { %408 = vmatpush.msrb.mxu2 %v3947_v58  ;;  %428 = vmatpush.msrb.mxu3 %v3952_v59 }
  0x26   :  { %3369 = vmatmul.msk.f32.gmra.mxu0 %vm63_vm0, %v41_v60  ;;  %3377 = vmatmul.msk.f32.gmra.mxu1 %vm63_vm0, %v41_v60 }
  0x27   :  { %3385 = vmatmul.msk.f32.gmra.mxu2 %vm63_vm0, %v41_v60  ;;  %3393 = vmatmul.msk.f32.gmra.mxu3 %vm63_vm0, %v41_v60  ;;  %v4057_v60 = vld [vmem:[%s6860_s2 + $0x10] sm:$0xff] }
  0x28   :  { %369 = vmatpush.msrb.mxu0 %v3965_v61  ;;  %389 = vmatpush.msrb.mxu1 %v3970_v62 }
  0x29   :  { %409 = vmatpush.msrb.mxu2 %v3978_v63  ;;  %429 = vmatpush.msrb.mxu3 %v3983_v0 }
  0x2a   :  { %370 = vmatpush.msrb.mxu0 %v3990_v1  ;;  %390 = vmatpush.msrb.mxu1 %v3995_v2 }
  0x2b   :  { %410 = vmatpush.msrb.mxu2 %v4002_v3  ;;  %430 = vmatpush.msrb.mxu3 %v4007_v4 }
  0x2c   :  { %371 = vmatpush.msrb.mxu0 %v4014_v5  ;;  %391 = vmatpush.msrb.mxu1 %v4019_v6 }
  0x2d   :  { %411 = vmatpush.msrb.mxu2 %v4026_v7  ;;  %431 = vmatpush.msrb.mxu3 %v4031_v8  ;;  %v4062_v7 = vld [vmem:[%s6860_s2 + $0x18] sm:$0xff]  ;;  %v43_v8 = vld [vmem:[%s6859_s0 + $0x30] sm:$0xff] }
  0x2e   :  { %3370 = vmatmul.msk.f32.gmra.mxu0 %vm63_vm0, %v42_v21  ;;  %3378 = vmatmul.msk.f32.gmra.mxu1 %vm63_vm0, %v42_v21 }
  0x2f   :  { %3386 = vmatmul.msk.f32.gmra.mxu2 %vm63_vm0, %v42_v21  ;;  %3394 = vmatmul.msk.f32.gmra.mxu3 %vm63_vm0, %v42_v21  ;;  %v44_v21 = vld [vmem:[%s6859_s0 + $0x38] sm:$0xff] }
  0x30   :  { %372 = vmatpush.msrb.mxu0 %v4044_v34  ;;  %392 = vmatpush.msrb.mxu1 %v4049_v47 }
  0x31   :  { %412 = vmatpush.msrb.mxu2 %v4057_v60  ;;  %432 = vmatpush.msrb.mxu3 %v4062_v7 }
  0x32   :  { %531 = vmatpush.msra.mxu0 %v3650_v9  ;;  %551 = vmatpush.msra.mxu1 %v3655_v10 }
  0x33   :  { %571 = vmatpush.msra.mxu2 %v3662_v11  ;;  %591 = vmatpush.msra.mxu3 %v3667_v12 }
  0x34   :  { %532 = vmatpush.msra.mxu0 %v3674_v13  ;;  %552 = vmatpush.msra.mxu1 %v3679_v14 }
  0x35   :  { %572 = vmatpush.msra.mxu2 %v3686_v15  ;;  %592 = vmatpush.msra.mxu3 %v3691_v16 }
  0x36   :  { %3371 = vmatmul.msk.f32.gmra.mxu0 %vm63_vm0, %v43_v8  ;;  %3379 = vmatmul.msk.f32.gmra.mxu1 %vm63_vm0, %v43_v8 }
  0x37   :  { %3387 = vmatmul.msk.f32.gmra.mxu2 %vm63_vm0, %v43_v8  ;;  %3395 = vmatmul.msk.f32.gmra.mxu3 %vm63_vm0, %v43_v8  ;;  %v6872_v8 = vmov 0.0  }
  0x38   :  { %533 = vmatpush.msra.mxu0 %v3698_v17  ;;  %553 = vmatpush.msra.mxu1 %v3703_v18 }
  0x39   :  { %573 = vmatpush.msra.mxu2 %v3710_v19  ;;  %593 = vmatpush.msra.mxu3 %v3715_v20 }
  0x3a   :  { %534 = vmatpush.msra.mxu0 %v3728_v22  ;;  %554 = vmatpush.msra.mxu1 %v3733_v23 }
  0x3b   :  { %574 = vmatpush.msra.mxu2 %v3741_v24  ;;  %594 = vmatpush.msra.mxu3 %v3746_v25 }
  0x3c   :  { %535 = vmatpush.msra.mxu0 %v3753_v26  ;;  %555 = vmatpush.msra.mxu1 %v3758_v27 }
  0x3d   :  { %575 = vmatpush.msra.mxu2 %v3765_v28  ;;  %595 = vmatpush.msra.mxu3 %v3770_v29 }
  0x3e   :  { %3372 = vmatmul.msk.f32.gmra.mxu0 %vm63_vm0, %v44_v21  ;;  %3380 = vmatmul.msk.f32.gmra.mxu1 %vm63_vm0, %v44_v21 }
  0x3f   :  { %3388 = vmatmul.msk.f32.gmra.mxu2 %vm63_vm0, %v44_v21  ;;  %3396 = vmatmul.msk.f32.gmra.mxu3 %vm63_vm0, %v44_v21  ;;  %v7021_v21 = vld [vmem:[#allocation4_spill] sm:$0xff] }
  0x40   :  { %536 = vmatpush.msra.mxu0 %v3777_v30  ;;  %556 = vmatpush.msra.mxu1 %v3782_v31 }
  0x41   :  { %576 = vmatpush.msra.mxu2 %v3789_v32  ;;  %596 = vmatpush.msra.mxu3 %v3794_v33 }
  0x42   :  { %537 = vmatpush.msra.mxu0 %v3807_v35  ;;  %557 = vmatpush.msra.mxu1 %v3812_v36 }
  0x43   :  { %577 = vmatpush.msra.mxu2 %v3820_v37  ;;  %597 = vmatpush.msra.mxu3 %v3825_v38 }
  0x44   :  { %538 = vmatpush.msra.mxu0 %v3832_v39  ;;  %558 = vmatpush.msra.mxu1 %v3837_v40 }
  0x45   :  { %578 = vmatpush.msra.mxu2 %v3844_v41  ;;  %598 = vmatpush.msra.mxu3 %v3849_v42 }
  0x46   :  { %373 = vmatmul.f32.vlgmr.msrb.gmra.mxu0 %v6872_v8  ;;  %393 = vmatmul.f32.vlgmr.msrb.gmra.mxu1 %v6872_v8 }
  0x47   :  { %413 = vmatmul.f32.vlgmr.msrb.gmra.mxu2 %v6872_v8  ;;  %433 = vmatmul.f32.vlgmr.msrb.gmra.mxu3 %v6872_v8  ;;  %v7022_v8 = vld [vmem:[#allocation5_spill] sm:$0xff] }
  0x48   :  { %539 = vmatpush.msra.mxu0 %v3856_v43  ;;  %559 = vmatpush.msra.mxu1 %v3861_v44 }
  0x49   :  { %579 = vmatpush.msra.mxu2 %v3868_v45  ;;  %599 = vmatpush.msra.mxu3 %v3873_v46 }
  0x4a   :  { %540 = vmatpush.msra.mxu0 %v3886_v48  ;;  %560 = vmatpush.msra.mxu1 %v3891_v49 }
  0x4b   :  { %580 = vmatpush.msra.mxu2 %v3899_v50  ;;  %600 = vmatpush.msra.mxu3 %v3904_v51 }
  0x4c   :  { %541 = vmatpush.msra.mxu0 %v3911_v52  ;;  %561 = vmatpush.msra.mxu1 %v3916_v53 }
  0x4d   :  { %581 = vmatpush.msra.mxu2 %v3923_v54  ;;  %601 = vmatpush.msra.mxu3 %v3928_v55 }
  0x4e   :  { %542 = vmatpush.msra.mxu0 %v3935_v56  ;;  %562 = vmatpush.msra.mxu1 %v3940_v57 }
  0x4f   :  { %582 = vmatpush.msra.mxu2 %v3947_v58  ;;  %602 = vmatpush.msra.mxu3 %v3952_v59 }
  0x50   :  { %543 = vmatpush.msra.mxu0 %v3965_v61  ;;  %563 = vmatpush.msra.mxu1 %v3970_v62 }
  0x51   :  { %583 = vmatpush.msra.mxu2 %v3978_v63  ;;  %603 = vmatpush.msra.mxu3 %v3983_v0 }
  0x52   :  { %544 = vmatpush.msra.mxu0 %v3990_v1  ;;  %564 = vmatpush.msra.mxu1 %v3995_v2 }
  0x53   :  { %584 = vmatpush.msra.mxu2 %v4002_v3  ;;  %604 = vmatpush.msra.mxu3 %v4007_v4 }
  0x54   :  { %545 = vmatpush.msra.mxu0 %v4014_v5  ;;  %565 = vmatpush.msra.mxu1 %v4019_v6 }
  0x55   :  { %585 = vmatpush.msra.mxu2 %v7021_v21  ;;  %605 = vmatpush.msra.mxu3 %v7022_v8 }
  0x56   :  { %546 = vmatpush.msra.mxu0 %v4044_v34  ;;  %566 = vmatpush.msra.mxu1 %v4049_v47 }
  0x57   :  { %586 = vmatpush.msra.mxu2 %v4057_v60  ;;  %606 = vmatpush.msra.mxu3 %v4062_v7 }
  0x58   :  { %706 = vmatpush.msrb.mxu0 %v3650_v9  ;;  %726 = vmatpush.msrb.mxu1 %v3655_v10 }
  0x59   :  { %746 = vmatpush.msrb.mxu2 %v3662_v11  ;;  %766 = vmatpush.msrb.mxu3 %v3667_v12 }
  0x5a   :  { %707 = vmatpush.msrb.mxu0 %v3674_v13  ;;  %727 = vmatpush.msrb.mxu1 %v3679_v14 }
  0x5b   :  { %747 = vmatpush.msrb.mxu2 %v3686_v15  ;;  %767 = vmatpush.msrb.mxu3 %v3691_v16 }
  0x5c   :  { %708 = vmatpush.msrb.mxu0 %v3698_v17  ;;  %728 = vmatpush.msrb.mxu1 %v3703_v18 }
  0x5d   :  { %748 = vmatpush.msrb.mxu2 %v3710_v19  ;;  %768 = vmatpush.msrb.mxu3 %v3715_v20 }
  0x5e   :  { %709 = vmatpush.msrb.mxu0 %v3728_v22  ;;  %729 = vmatpush.msrb.mxu1 %v3733_v23 }
  0x5f   :  { %749 = vmatpush.msrb.mxu2 %v3741_v24  ;;  %769 = vmatpush.msrb.mxu3 %v3746_v25 }
  0x60   :  { %710 = vmatpush.msrb.mxu0 %v3753_v26  ;;  %730 = vmatpush.msrb.mxu1 %v3758_v27 }
  0x61   :  { %750 = vmatpush.msrb.mxu2 %v3765_v28  ;;  %770 = vmatpush.msrb.mxu3 %v3770_v29 }
  0x62   :  { %711 = vmatpush.msrb.mxu0 %v3777_v30  ;;  %731 = vmatpush.msrb.mxu1 %v3782_v31 }
  0x63   :  { %751 = vmatpush.msrb.mxu2 %v3789_v32  ;;  %771 = vmatpush.msrb.mxu3 %v3794_v33 }
  0x64   :  { %712 = vmatpush.msrb.mxu0 %v3807_v35  ;;  %732 = vmatpush.msrb.mxu1 %v3812_v36 }
  0x65   :  { %752 = vmatpush.msrb.mxu2 %v3820_v37  ;;  %772 = vmatpush.msrb.mxu3 %v3825_v38 }
  0x66   :  { %713 = vmatpush.msrb.mxu0 %v3832_v39  ;;  %733 = vmatpush.msrb.mxu1 %v3837_v40  ;;  %v53_v39 = vld [vmem:[%s6861_s3] sm:$0xf] }
  0x67   :  { %753 = vmatpush.msrb.mxu2 %v3844_v41  ;;  %773 = vmatpush.msrb.mxu3 %v3849_v42  ;;  %v4271_v42 = vperm.slane %v53_v39, 0 }
  0x68   :  { %714 = vmatpush.msrb.mxu0 %v3856_v43  ;;  %734 = vmatpush.msrb.mxu1 %v3861_v44  ;;  %v4273_v43 = vperm.slane %v53_v39, 1 }
  0x69   :  { %754 = vmatpush.msrb.mxu2 %v3868_v45  ;;  %774 = vmatpush.msrb.mxu3 %v3873_v46  ;;  %7041 = vst [vmem:[#allocation22_spill] sm:$0xff] %v4271_v42 }
  0x6a   :  { %715 = vmatpush.msrb.mxu0 %v3886_v48  ;;  %735 = vmatpush.msrb.mxu1 %v3891_v49  ;;  %7042 = vst [vmem:[#allocation23_spill] sm:$0xff] %v4273_v43 }
  0x6b   :  { %755 = vmatpush.msrb.mxu2 %v3899_v50  ;;  %775 = vmatpush.msrb.mxu3 %v3904_v51 }
  0x6c   :  { %716 = vmatpush.msrb.mxu0 %v3911_v52  ;;  %736 = vmatpush.msrb.mxu1 %v3916_v53  ;;  %v4281_v53 = vperm.slane %v53_v39, 2 }
  0x6d   :  { %756 = vmatpush.msrb.mxu2 %v3923_v54  ;;  %776 = vmatpush.msrb.mxu3 %v3928_v55  ;;  %v4283_v54 = vperm.slane %v53_v39, 3 }
  0x6e   :  { %717 = vmatpush.msrb.mxu0 %v3935_v56  ;;  %737 = vmatpush.msrb.mxu1 %v3940_v57  ;;  %7045 = vst [vmem:[#allocation26_spill] sm:$0xff] %v4281_v53 }
  0x6f   :  { %757 = vmatpush.msrb.mxu2 %v3947_v58  ;;  %777 = vmatpush.msrb.mxu3 %v3952_v59  ;;  %7046 = vst [vmem:[#allocation27_spill] sm:$0xff] %v4283_v54 }
  0x70   :  { %718 = vmatpush.msrb.mxu0 %v3965_v61  ;;  %738 = vmatpush.msrb.mxu1 %v3970_v62 }
  0x71   :  { %758 = vmatpush.msrb.mxu2 %v3978_v63  ;;  %778 = vmatpush.msrb.mxu3 %v3983_v0 }
  0x72   :  { %719 = vmatpush.msrb.mxu0 %v3990_v1  ;;  %739 = vmatpush.msrb.mxu1 %v3995_v2 }
  0x73   :  { %759 = vmatpush.msrb.mxu2 %v4002_v3  ;;  %779 = vmatpush.msrb.mxu3 %v4007_v4 }
  0x74   :  { %720 = vmatpush.msrb.mxu0 %v4014_v5  ;;  %740 = vmatpush.msrb.mxu1 %v4019_v6 }
  0x75   :  { %760 = vmatpush.msrb.mxu2 %v7021_v21  ;;  %780 = vmatpush.msrb.mxu3 %v7022_v8 }
  0x76   :  { %721 = vmatpush.msrb.mxu0 %v4044_v34  ;;  %741 = vmatpush.msrb.mxu1 %v4049_v47 }
  0x77   :  { %761 = vmatpush.msrb.mxu2 %v4057_v60  ;;  %781 = vmatpush.msrb.mxu3 %v4062_v7 }
  0x83   :  { %v105_v9 = vpop.f32.mrf.mxu0  ;;  %v146_v10 = vpop.f32.mrf.mxu1 }
  0x84   :  { %v106_v44 = vadd.f32 %v105_v9, %v4271_v42  ;;  %v147_v45 = vadd.f32 %v146_v10, %v4273_v43 }
  0x8a   :  { %v187_v11 = vpop.f32.mrf.mxu2  ;;  %v228_v12 = vpop.f32.mrf.mxu3 }
  0x8b   :  { %v4216_v13 = vpop.f32.mrf.mxu0  ;;  %v4218_v14 = vpop.f32.mrf.mxu1  ;;  %v188_v57 = vadd.f32 %v187_v11, %v4281_v53  ;;  %v229_v58 = vadd.f32 %v228_v12, %v4283_v54 }
  0x8c   :  { %v109_v12 = vadd.f32 %v4216_v13, %v4271_v42  ;;  %v150_v39 = vadd.f32 %v4218_v14, %v4273_v43  ;;  %v4317_v14 = vld [vmem:[%s6860_s2 + $0x1f8] sm:$0xff] }
  0x92   :  { %v4220_v15 = vpop.f32.mrf.mxu2  ;;  %v4222_v16 = vpop.f32.mrf.mxu3 }
  0x93   :  { %v4224_v17 = vpop.f32.mrf.mxu0  ;;  %v4226_v18 = vpop.f32.mrf.mxu1 }
  0x9a   :  { %v4228_v19 = vpop.f32.mrf.mxu2  ;;  %v4230_v20 = vpop.f32.mrf.mxu3 }
  0x9b   :  { %v4232_v22 = vpop.f32.mrf.mxu0  ;;  %v4234_v23 = vpop.f32.mrf.mxu1 }
  0x9c   :  { %7023 = vst [vmem:[#allocation4_spill] sm:$0xff] %v4232_v22  ;;  %v4635_v22 = vld [vmem:[%s6860_s2 + $0x50] sm:$0xff] }
  0x9d   :  { %7024 = vst [vmem:[#allocation5_spill] sm:$0xff] %v4234_v23  ;;  %v4630_v23 = vld [vmem:[%s6860_s2 + $0x48] sm:$0xff] }
  0x9e   :  { %7059 = vst [vmem:[#allocation40_spill] sm:$0xff] %v4630_v23 }
  0x9f   :  { %7060 = vst [vmem:[#allocation41_spill] sm:$0xff] %v4635_v22 }
  0xa2   :  { %v4236_v24 = vpop.f32.mrf.mxu2  ;;  %v4238_v25 = vpop.f32.mrf.mxu3 }
  0xa3   :  { %7025 = vst [vmem:[#allocation6_spill] sm:$0xff] %v4236_v24  ;;  %v4240_v26 = vpop.f32.mrf.mxu0  ;;  %v4242_v27 = vpop.f32.mrf.mxu1  ;;  %v4625_v24 = vld [vmem:[%s6860_s2 + $0x40] sm:$0xff] }
  0xa4   :  { %7026 = vst [vmem:[#allocation7_spill] sm:$0xff] %v4238_v25  ;;  %v4618_v25 = vld [vmem:[%s6860_s2 + $0x78] sm:$0xff] }
  0xa5   :  { %7027 = vst [vmem:[#allocation8_spill] sm:$0xff] %v4240_v26  ;;  %v4611_v26 = vld [vmem:[%s6860_s2 + $0x70] sm:$0xff] }
  0xa6   :  { %7028 = vst [vmem:[#allocation9_spill] sm:$0xff] %v4242_v27  ;;  %v4606_v27 = vld [vmem:[%s6860_s2 + $0x68] sm:$0xff] }
  0xa7   :  { %7055 = vst [vmem:[#allocation36_spill] sm:$0xff] %v4606_v27 }
  0xa8   :  { %7056 = vst [vmem:[#allocation37_spill] sm:$0xff] %v4611_v26 }
  0xa9   :  { %7057 = vst [vmem:[#allocation38_spill] sm:$0xff] %v4618_v25 }
  0xaa   :  { %v4244_v28 = vpop.f32.mrf.mxu2  ;;  %v4246_v29 = vpop.f32.mrf.mxu3  ;;  %7058 = vst [vmem:[#allocation39_spill] sm:$0xff] %v4625_v24 }
  0xab   :  { %7029 = vst [vmem:[#allocation10_spill] sm:$0xff] %v4244_v28  ;;  %v4248_v30 = vpop.f32.mrf.mxu0  ;;  %v4250_v31 = vpop.f32.mrf.mxu1  ;;  %v4601_v28 = vld [vmem:[%s6860_s2 + $0x60] sm:$0xff] }
  0xac   :  { %7030 = vst [vmem:[#allocation11_spill] sm:$0xff] %v4246_v29  ;;  %v4594_v29 = vld [vmem:[%s6860_s2 + $0x98] sm:$0xff] }
  0xad   :  { %7031 = vst [vmem:[#allocation12_spill] sm:$0xff] %v4248_v30  ;;  %v4587_v30 = vld [vmem:[%s6860_s2 + $0x90] sm:$0xff] }
  0xae   :  { %7032 = vst [vmem:[#allocation13_spill] sm:$0xff] %v4250_v31  ;;  %v4582_v31 = vld [vmem:[%s6860_s2 + $0x88] sm:$0xff] }
  0xaf   :  { %7051 = vst [vmem:[#allocation32_spill] sm:$0xff] %v4582_v31 }
  0xb0   :  { %7052 = vst [vmem:[#allocation33_spill] sm:$0xff] %v4587_v30 }
  0xb1   :  { %7053 = vst [vmem:[#allocation34_spill] sm:$0xff] %v4594_v29 }
  0xb2   :  { %v4252_v32 = vpop.f32.mrf.mxu2  ;;  %v4254_v33 = vpop.f32.mrf.mxu3  ;;  %7054 = vst [vmem:[#allocation35_spill] sm:$0xff] %v4601_v28 }
  0xb3   :  { %7033 = vst [vmem:[#allocation14_spill] sm:$0xff] %v4252_v32  ;;  %v4256_v35 = vpop.f32.mrf.mxu0  ;;  %v4258_v36 = vpop.f32.mrf.mxu1  ;;  %v4577_v32 = vld [vmem:[%s6860_s2 + $0x80] sm:$0xff] }
  0xb4   :  { %7034 = vst [vmem:[#allocation15_spill] sm:$0xff] %v4254_v33  ;;  %v4570_v33 = vld [vmem:[%s6860_s2 + $0xb8] sm:$0xff] }
  0xb5   :  { %7035 = vst [vmem:[#allocation16_spill] sm:$0xff] %v4256_v35  ;;  %v4563_v35 = vld [vmem:[%s6860_s2 + $0xb0] sm:$0xff] }
  0xb6   :  { %7036 = vst [vmem:[#allocation17_spill] sm:$0xff] %v4258_v36  ;;  %v4558_v36 = vld [vmem:[%s6860_s2 + $0xa8] sm:$0xff] }
  0xb7   :  { %7049 = vst [vmem:[#allocation30_spill] sm:$0xff] %v4570_v33 }
  0xb8   :  { %7050 = vst [vmem:[#allocation31_spill] sm:$0xff] %v4577_v32 }
  0xba   :  { %v4260_v37 = vpop.f32.mrf.mxu2  ;;  %v4262_v38 = vpop.f32.mrf.mxu3 }
  0xbb   :  { %7037 = vst [vmem:[#allocation18_spill] sm:$0xff] %v4260_v37  ;;  %v4267_v40 = vpop.f32.mrf.mxu0  ;;  %v4269_v41 = vpop.f32.mrf.mxu1  ;;  %v4553_v37 = vld [vmem:[%s6860_s2 + $0xa0] sm:$0xff] }
  0xbc   :  { %7038 = vst [vmem:[#allocation19_spill] sm:$0xff] %v4262_v38  ;;  %v4546_v38 = vld [vmem:[%s6860_s2 + $0xd8] sm:$0xff] }
  0xbd   :  { %7039 = vst [vmem:[#allocation20_spill] sm:$0xff] %v4267_v40  ;;  %v4529_v40 = vld [vmem:[%s6860_s2 + $0xc0] sm:$0xff] }
  0xbe   :  { %7040 = vst [vmem:[#allocation21_spill] sm:$0xff] %v4269_v41  ;;  %v4522_v41 = vld [vmem:[%s6860_s2 + $0xf8] sm:$0xff] }
  0xc2   :  { %v4277_v46 = vpop.f32.mrf.mxu2  ;;  %v4279_v48 = vpop.f32.mrf.mxu3 }
  0xc3   :  { %7043 = vst [vmem:[#allocation24_spill] sm:$0xff] %v4277_v46  ;;  %v374_v49 = vpop.f32.mrf.mxu0  ;;  %v394_v50 = vpop.f32.mrf.mxu1  ;;  %v4515_v46 = vld [vmem:[%s6860_s2 + $0xf0] sm:$0xff] }
  0xc4   :  { %7044 = vst [vmem:[#allocation25_spill] sm:$0xff] %v4279_v48  ;;  %v437_v51 = vadd.f32 %v374_v49, %v106_v44  ;;  %v438_v52 = vadd.f32 %v394_v50, %v147_v45  ;;  %v4300_v44 = vld [vmem:[%s6860_s2 + $0x1e0] sm:$0xff]  ;;  %v4305_v45 = vld [vmem:[%s6860_s2 + $0x1e8] sm:$0xff]  ;;  %v4310_v49 = vld [vmem:[%s6860_s2 + $0x1f0] sm:$0xff] }
  0xc5   :  { %v4510_v48 = vld [vmem:[%s6860_s2 + $0xe8] sm:$0xff] }
  0xc6   :  { %v441_v55 = vmul.f32 0.5, %v437_v51  ;;  %v445_v56 = vmul.f32 0.5, %v438_v52 }
  0xc8   :  { %3409 = vtanh.f32 %v441_v55 }
  0xc9   :  { %3411 = vtanh.f32 %v445_v56 }
  0xca   :  { %v414_v59 = vpop.f32.mrf.mxu2  ;;  %v434_v61 = vpop.f32.mrf.mxu3 }
  0xcb   :  { %v439_v62 = vadd.f32 %v414_v59, %v188_v57  ;;  %v440_v63 = vadd.f32 %v434_v61, %v229_v58  ;;  %v191_v57 = vadd.f32 %v4220_v15, %v4281_v53  ;;  %v232_v58 = vadd.f32 %v4222_v16, %v4283_v54 }
  0xcd   :  { %3413 = vtanh.f32 %v439_v62  ;;  %v450_v0 = vmul.f32 0.5, %v440_v63 }
  0xce   :  { %v3410_v1 = vpop.eup %3409 }
  0xcf   :  { %v3412_v2 = vpop.eup %3411  ;;  %v443_v3 = vmul.f32 0.5, %v3410_v1  ;;  %3415 = vtanh.f32 %v450_v0 }
  0xd0   :  { %v447_v4 = vmul.f32 0.5, %v3412_v2 }
  0xd1   :  { %v444_v5 = vadd.f32 0.5, %v443_v3 }
  0xd2   :  { %v448_v6 = vadd.f32 0.5, %v447_v4 }
  0xd3   :  { %v3414_v7 = vpop.eup %3413 }
  0xd4   :  { %v454_v34 = vmul.f32 0.0, %v448_v6  ;;  %v455_v47 = vmul.f32 %v3414_v7, %v444_v5 }
  0xd5   :  { %v3416_v60 = vpop.eup %3415 }
  0xd6   :  { %v456_v8 = vadd.f32 %v455_v47, %v454_v34  ;;  %v452_v21 = vmul.f32 0.5, %v3416_v60 }
  0xd8   :  { %3417 = vtanh.f32 %v456_v8  ;;  %v453_v9 = vadd.f32 0.5, %v452_v21 }
  0xde   :  { %v3418_v10 = vpop.eup %3417 }
  0xdf   :  { %v4287_v11 = vmul.f32 %v3418_v10, %v453_v9 }
  0xe1   :  { %7047 = vst [vmem:[#allocation28_spill] sm:$0xff] %v4287_v11  ;;  %547 = vmatmul.f32.vlgmr.msra.gmra.mxu0 %v4287_v11  ;;  %567 = vmatmul.f32.vlgmr.msra.gmra.mxu1 %v4287_v11 }
  0xe2   :  { %587 = vmatmul.f32.vlgmr.msra.gmra.mxu2 %v4287_v11  ;;  %607 = vmatmul.f32.vlgmr.msra.gmra.mxu3 %v4287_v11  ;;  %v4539_v11 = vld [vmem:[%s6860_s2 + $0xd0] sm:$0xff] }
  0xe3   :  { %881 = vmatpush.msra.mxu0 %v4300_v44  ;;  %901 = vmatpush.msra.mxu1 %v4305_v45 }
  0xe4   :  { %921 = vmatpush.msra.mxu2 %v4310_v49  ;;  %941 = vmatpush.msra.mxu3 %v4317_v14 }
 0x15e   :  { %v548_v50 = vpop.f32.mrf.mxu0  ;;  %v568_v13 = vpop.f32.mrf.mxu1 }
 0x15f   :  { %v611_v51 = vadd.f32 %v548_v50, %v109_v12  ;;  %v612_v52 = vadd.f32 %v568_v13, %v150_v39  ;;  %v4342_v12 = vld [vmem:[%s6860_s2 + $0x1c8] sm:$0xff]  ;;  %v4347_v39 = vld [vmem:[%s6860_s2 + $0x1d0] sm:$0xff]  ;;  %v4354_v50 = vld [vmem:[%s6860_s2 + $0x1d8] sm:$0xff] }
 0x160   :  { %902 = vmatpush.msra.mxu1 %v4342_v12  ;;  %922 = vmatpush.msra.mxu2 %v4347_v39  ;;  %v4361_v13 = vld [vmem:[%s6860_s2 + $0x1a0] sm:$0xff] }
 0x161   :  { %v615_v55 = vmul.f32 0.5, %v611_v51  ;;  %v619_v56 = vmul.f32 0.5, %v612_v52  ;;  %942 = vmatpush.msra.mxu3 %v4354_v50  ;;  %v4366_v51 = vld [vmem:[%s6860_s2 + $0x1a8] sm:$0xff]  ;;  %v4371_v52 = vld [vmem:[%s6860_s2 + $0x1b0] sm:$0xff] }
 0x162   :  { %903 = vmatpush.msra.mxu1 %v4366_v51  ;;  %923 = vmatpush.msra.mxu2 %v4371_v52 }
 0x163   :  { %3419 = vtanh.f32 %v615_v55  ;;  %v4378_v55 = vld [vmem:[%s6860_s2 + $0x1b8] sm:$0xff] }
 0x164   :  { %3421 = vtanh.f32 %v619_v56  ;;  %943 = vmatpush.msra.mxu3 %v4378_v55  ;;  %v4385_v56 = vld [vmem:[%s6860_s2 + $0x180] sm:$0xff] }
 0x165   :  { %v588_v59 = vpop.f32.mrf.mxu2  ;;  %v608_v61 = vpop.f32.mrf.mxu3 }
 0x166   :  { %v613_v62 = vadd.f32 %v588_v59, %v191_v57  ;;  %v614_v63 = vadd.f32 %v608_v61, %v232_v58  ;;  %v4390_v57 = vld [vmem:[%s6860_s2 + $0x188] sm:$0xff]  ;;  %v4395_v58 = vld [vmem:[%s6860_s2 + $0x190] sm:$0xff]  ;;  %v4402_v59 = vld [vmem:[%s6860_s2 + $0x198] sm:$0xff] }
 0x167   :  { %904 = vmatpush.msra.mxu1 %v4390_v57  ;;  %924 = vmatpush.msra.mxu2 %v4395_v58  ;;  %v4409_v61 = vld [vmem:[%s6860_s2 + $0x160] sm:$0xff] }
 0x168   :  { %3423 = vtanh.f32 %v613_v62  ;;  %v624_v0 = vmul.f32 0.5, %v614_v63  ;;  %944 = vmatpush.msra.mxu3 %v4402_v59  ;;  %v4414_v62 = vld [vmem:[%s6860_s2 + $0x168] sm:$0xff]  ;;  %v4419_v63 = vld [vmem:[%s6860_s2 + $0x170] sm:$0xff] }
 0x169   :  { %v3420_v1 = vpop.eup %3419  ;;  %905 = vmatpush.msra.mxu1 %v4414_v62  ;;  %925 = vmatpush.msra.mxu2 %v4419_v63 }
 0x16a   :  { %v3422_v2 = vpop.eup %3421  ;;  %v617_v3 = vmul.f32 0.5, %v3420_v1  ;;  %3425 = vtanh.f32 %v624_v0  ;;  %v4426_v0 = vld [vmem:[%s6860_s2 + $0x178] sm:$0xff]  ;;  %v4433_v1 = vld [vmem:[%s6860_s2 + $0x140] sm:$0xff] }
 0x16b   :  { %v621_v4 = vmul.f32 0.5, %v3422_v2  ;;  %945 = vmatpush.msra.mxu3 %v4426_v0  ;;  %v4438_v2 = vld [vmem:[%s6860_s2 + $0x148] sm:$0xff] }
 0x16c   :  { %v618_v5 = vadd.f32 0.5, %v617_v3  ;;  %v4443_v3 = vld [vmem:[%s6860_s2 + $0x150] sm:$0xff]  ;;  %906 = vmatpush.msra.mxu1 %v4438_v2 }
 0x16d   :  { %v622_v6 = vadd.f32 0.5, %v621_v4  ;;  %v4450_v4 = vld [vmem:[%s6860_s2 + $0x158] sm:$0xff]  ;;  %926 = vmatpush.msra.mxu2 %v4443_v3 }
 0x16e   :  { %v3424_v7 = vpop.eup %3423  ;;  %946 = vmatpush.msra.mxu3 %v4450_v4 }
 0x16f   :  { %v628_v34 = vmul.f32 %v622_v6, %v456_v8  ;;  %v629_v15 = vmul.f32 %v3424_v7, %v618_v5  ;;  %v4337_v8 = vld [vmem:[%s6860_s2 + $0x1c0] sm:$0xff]  ;;  %v4462_v6 = vld [vmem:[%s6860_s2 + $0x128] sm:$0xff]  ;;  %v4467_v7 = vld [vmem:[%s6860_s2 + $0x130] sm:$0xff] }
 0x170   :  { %v3426_v47 = vpop.eup %3425  ;;  %882 = vmatpush.msra.mxu0 %v4337_v8  ;;  %v4457_v5 = vld [vmem:[%s6860_s2 + $0x120] sm:$0xff]  ;;  %907 = vmatpush.msra.mxu1 %v4462_v6 }
 0x171   :  { %v4325_v60 = vadd.f32 %v629_v15, %v628_v34  ;;  %v626_v16 = vmul.f32 0.5, %v3426_v47  ;;  %v4474_v34 = vld [vmem:[%s6860_s2 + $0x138] sm:$0xff]  ;;  %927 = vmatpush.msra.mxu2 %v4467_v7  ;;  %v4481_v15 = vld [vmem:[%s6860_s2 + $0x100] sm:$0xff]  ;;  %v4486_v47 = vld [vmem:[%s6860_s2 + $0x108] sm:$0xff] }
 0x172   :  { %883 = vmatpush.msra.mxu0 %v4361_v13  ;;  %947 = vmatpush.msra.mxu3 %v4474_v34 }
 0x173   :  { %3427 = vtanh.f32 %v4325_v60  ;;  %v627_v21 = vadd.f32 0.5, %v626_v16  ;;  %v4491_v16 = vld [vmem:[%s6860_s2 + $0x110] sm:$0xff]  ;;  %908 = vmatpush.msra.mxu1 %v4486_v47 }
 0x174   :  { %884 = vmatpush.msra.mxu0 %v4385_v56  ;;  %928 = vmatpush.msra.mxu2 %v4491_v16 }
 0x175   :  { %909 = vmatpush.msra.mxu1 %v4510_v48 }
 0x176   :  { %885 = vmatpush.msra.mxu0 %v4409_v61  ;;  %929 = vmatpush.msra.mxu2 %v4515_v46 }
 0x178   :  { %886 = vmatpush.msra.mxu0 %v4433_v1  ;;  %930 = vmatpush.msra.mxu2 %v4539_v11 }
 0x179   :  { %v3428_v9 = vpop.eup %3427 }
 0x17a   :  { %v4328_v10 = vmul.f32 %v3428_v9, %v627_v21  ;;  %887 = vmatpush.msra.mxu0 %v4457_v5  ;;  %v4498_v21 = vld [vmem:[%s6860_s2 + $0x118] sm:$0xff]  ;;  %v4505_v9 = vld [vmem:[%s6860_s2 + $0xe0] sm:$0xff]  ;;  %931 = vmatpush.msra.mxu2 %v4563_v35 }
 0x17b   :  { %948 = vmatpush.msra.mxu3 %v4498_v21 }
 0x17c   :  { %7048 = vst [vmem:[#allocation29_spill] sm:$0xff] %v4328_v10  ;;  %722 = vmatmul.f32.vlgmr.msrb.gmra.mxu0 %v4328_v10  ;;  %742 = vmatmul.f32.vlgmr.msrb.gmra.mxu1 %v4328_v10 }
 0x17d   :  { %762 = vmatmul.f32.vlgmr.msrb.gmra.mxu2 %v4328_v10  ;;  %782 = vmatmul.f32.vlgmr.msrb.gmra.mxu3 %v4328_v10  ;;  %v4534_v10 = vld [vmem:[%s6860_s2 + $0xc8] sm:$0xff] }
 0x17e   :  { %888 = vmatpush.msra.mxu0 %v4481_v15  ;;  %949 = vmatpush.msra.mxu3 %v4522_v41 }
 0x17f   :  { %910 = vmatpush.msra.mxu1 %v4534_v10  ;;  %932 = vmatpush.msra.mxu2 %v4587_v30 }
 0x180   :  { %889 = vmatpush.msra.mxu0 %v4505_v9  ;;  %950 = vmatpush.msra.mxu3 %v4546_v38 }
 0x181   :  { %911 = vmatpush.msra.mxu1 %v4558_v36  ;;  %933 = vmatpush.msra.mxu2 %v4611_v26  ;;  %v4649_v26 = vld [vmem:[%s6860_s2 + $0x20] sm:$0xff] }
 0x182   :  { %890 = vmatpush.msra.mxu0 %v4529_v40  ;;  %951 = vmatpush.msra.mxu3 %v4570_v33  ;;  %7062 = vst [vmem:[#allocation43_spill] sm:$0xff] %v4649_v26 }
 0x183   :  { %912 = vmatpush.msra.mxu1 %v4582_v31  ;;  %934 = vmatpush.msra.mxu2 %v4635_v22  ;;  %v4673_v22 = vld [vmem:[%s6860_s2] sm:$0xff] }
 0x184   :  { %891 = vmatpush.msra.mxu0 %v4553_v37  ;;  %952 = vmatpush.msra.mxu3 %v4594_v29  ;;  %7066 = vst [vmem:[#allocation47_spill] sm:$0xff] %v4673_v22 }
 0x185   :  { %913 = vmatpush.msra.mxu1 %v4606_v27  ;;  %v153_v27 = vadd.f32 %v4226_v18, %v4273_v43 }
 0x186   :  { %892 = vmatpush.msra.mxu0 %v4577_v32  ;;  %953 = vmatpush.msra.mxu3 %v4618_v25  ;;  %v4642_v25 = vld [vmem:[%s6860_s2 + $0x58] sm:$0xff] }
 0x187   :  { %914 = vmatpush.msra.mxu1 %v4630_v23  ;;  %7061 = vst [vmem:[#allocation42_spill] sm:$0xff] %v4642_v25  ;;  %v4659_v23 = vld [vmem:[%s6860_s2 + $0x30] sm:$0xff] }
 0x188   :  { %893 = vmatpush.msra.mxu0 %v4601_v28  ;;  %954 = vmatpush.msra.mxu3 %v4642_v25  ;;  %7064 = vst [vmem:[#allocation45_spill] sm:$0xff] %v4659_v23  ;;  %v4666_v25 = vld [vmem:[%s6860_s2 + $0x38] sm:$0xff] }
 0x189   :  { %7065 = vst [vmem:[#allocation46_spill] sm:$0xff] %v4666_v25  ;;  %935 = vmatpush.msra.mxu2 %v4659_v23  ;;  %v112_v23 = vadd.f32 %v4224_v17, %v4271_v42 }
 0x18a   :  { %894 = vmatpush.msra.mxu0 %v4625_v24  ;;  %v4654_v24 = vld [vmem:[%s6860_s2 + $0x28] sm:$0xff]  ;;  %955 = vmatpush.msra.mxu3 %v4666_v25  ;;  %v4690_v25 = vld [vmem:[%s6860_s2 + $0x18] sm:$0xff] }
 0x18b   :  { %7063 = vst [vmem:[#allocation44_spill] sm:$0xff] %v4654_v24  ;;  %915 = vmatpush.msra.mxu1 %v4654_v24  ;;  %v4683_v24 = vld [vmem:[%s6860_s2 + $0x10] sm:$0xff] }
 0x18c   :  { %895 = vmatpush.msra.mxu0 %v4649_v26  ;;  %v4678_v26 = vld [vmem:[%s6860_s2 + $0x8] sm:$0xff]  ;;  %7068 = vst [vmem:[#allocation49_spill] sm:$0xff] %v4683_v24  ;;  %936 = vmatpush.msra.mxu2 %v4683_v24 }
 0x18d   :  { %7067 = vst [vmem:[#allocation48_spill] sm:$0xff] %v4678_v26  ;;  %916 = vmatpush.msra.mxu1 %v4678_v26  ;;  %956 = vmatpush.msra.mxu3 %v4690_v25 }
 0x18e   :  { %896 = vmatpush.msra.mxu0 %v4673_v22  ;;  %7069 = vst [vmem:[#allocation50_spill] sm:$0xff] %v4690_v25  ;;  %1096 = vmatpush.msrb.mxu2 %v4310_v49 }
 0x18f   :  { %1076 = vmatpush.msrb.mxu1 %v4305_v45  ;;  %1116 = vmatpush.msrb.mxu3 %v4317_v14  ;;  %v7082_v42 = vld [vmem:[#allocation45_spill] sm:$0xff] }
 0x190   :  { %1056 = vmatpush.msrb.mxu0 %v4300_v44  ;;  %1097 = vmatpush.msrb.mxu2 %v4347_v39 }
 0x191   :  { %1077 = vmatpush.msrb.mxu1 %v4342_v12  ;;  %1117 = vmatpush.msrb.mxu3 %v4354_v50 }
 0x192   :  { %1057 = vmatpush.msrb.mxu0 %v4337_v8  ;;  %1098 = vmatpush.msrb.mxu2 %v4371_v52 }
 0x193   :  { %1078 = vmatpush.msrb.mxu1 %v4366_v51  ;;  %1118 = vmatpush.msrb.mxu3 %v4378_v55 }
 0x194   :  { %1058 = vmatpush.msrb.mxu0 %v4361_v13  ;;  %1099 = vmatpush.msrb.mxu2 %v4395_v58 }
 0x195   :  { %1079 = vmatpush.msrb.mxu1 %v4390_v57  ;;  %1119 = vmatpush.msrb.mxu3 %v4402_v59 }
 0x196   :  { %1059 = vmatpush.msrb.mxu0 %v4385_v56  ;;  %1100 = vmatpush.msrb.mxu2 %v4419_v63 }
 0x197   :  { %1080 = vmatpush.msrb.mxu1 %v4414_v62  ;;  %1120 = vmatpush.msrb.mxu3 %v4426_v0 }
 0x198   :  { %1060 = vmatpush.msrb.mxu0 %v4409_v61  ;;  %1101 = vmatpush.msrb.mxu2 %v4443_v3 }
 0x199   :  { %1081 = vmatpush.msrb.mxu1 %v4438_v2  ;;  %1121 = vmatpush.msrb.mxu3 %v4450_v4 }
 0x19a   :  { %1061 = vmatpush.msrb.mxu0 %v4433_v1  ;;  %1102 = vmatpush.msrb.mxu2 %v4467_v7 }
 0x19b   :  { %1082 = vmatpush.msrb.mxu1 %v4462_v6  ;;  %1122 = vmatpush.msrb.mxu3 %v4474_v34 }
 0x19c   :  { %1062 = vmatpush.msrb.mxu0 %v4457_v5  ;;  %1103 = vmatpush.msrb.mxu2 %v4491_v16 }
 0x19d   :  { %1083 = vmatpush.msrb.mxu1 %v4486_v47  ;;  %1123 = vmatpush.msrb.mxu3 %v4498_v21 }
 0x19e   :  { %1063 = vmatpush.msrb.mxu0 %v4481_v15  ;;  %1104 = vmatpush.msrb.mxu2 %v4515_v46 }
 0x19f   :  { %1084 = vmatpush.msrb.mxu1 %v4510_v48  ;;  %1124 = vmatpush.msrb.mxu3 %v4522_v41 }
 0x1a0   :  { %1064 = vmatpush.msrb.mxu0 %v4505_v9  ;;  %1105 = vmatpush.msrb.mxu2 %v4539_v11 }
 0x1a1   :  { %1085 = vmatpush.msrb.mxu1 %v4534_v10  ;;  %1125 = vmatpush.msrb.mxu3 %v4546_v38 }
 0x1a2   :  { %1065 = vmatpush.msrb.mxu0 %v4529_v40  ;;  %1106 = vmatpush.msrb.mxu2 %v4563_v35 }
 0x1a3   :  { %1086 = vmatpush.msrb.mxu1 %v4558_v36  ;;  %1126 = vmatpush.msrb.mxu3 %v4570_v33 }
 0x1a4   :  { %1066 = vmatpush.msrb.mxu0 %v4553_v37  ;;  %1107 = vmatpush.msrb.mxu2 %v4587_v30 }
 0x1a5   :  { %1087 = vmatpush.msrb.mxu1 %v4582_v31  ;;  %1127 = vmatpush.msrb.mxu3 %v4594_v29 }
 0x1a6   :  { %1067 = vmatpush.msrb.mxu0 %v4577_v32 }
 0x1f9   :  { %v723_v26 = vpop.f32.mrf.mxu0  ;;  %v743_v22 = vpop.f32.mrf.mxu1 }
 0x1fa   :  { %v786_v28 = vadd.f32 %v723_v26, %v112_v23  ;;  %v787_v24 = vadd.f32 %v743_v22, %v153_v27  ;;  %v194_v22 = vadd.f32 %v4228_v19, %v4281_v53  ;;  %v235_v23 = vadd.f32 %v4230_v20, %v4283_v54  ;;  %v7079_v54 = vld [vmem:[#allocation43_spill] sm:$0xff]  ;;  %v7080_v53 = vld [vmem:[#allocation44_spill] sm:$0xff] }
 0x1fc   :  { %v790_v17 = vmul.f32 0.5, %v786_v28  ;;  %v794_v18 = vmul.f32 0.5, %v787_v24 }
 0x1fe   :  { %3429 = vtanh.f32 %v790_v17 }
 0x1ff   :  { %3431 = vtanh.f32 %v794_v18 }
 0x200   :  { %v763_v24 = vpop.f32.mrf.mxu2  ;;  %v783_v26 = vpop.f32.mrf.mxu3 }
 0x201   :  { %v788_v27 = vadd.f32 %v763_v24, %v194_v22  ;;  %v789_v28 = vadd.f32 %v783_v26, %v235_v23 }
 0x203   :  { %3433 = vtanh.f32 %v788_v27  ;;  %v799_v19 = vmul.f32 0.5, %v789_v28 }
 0x204   :  { %v3430_v20 = vpop.eup %3429 }
 0x205   :  { %v3432_v17 = vpop.eup %3431  ;;  %v792_v18 = vmul.f32 0.5, %v3430_v20  ;;  %3435 = vtanh.f32 %v799_v19 }
 0x206   :  { %v796_v22 = vmul.f32 0.5, %v3432_v17  ;;  %v7071_v17 = vld [vmem:[#allocation35_spill] sm:$0xff] }
 0x207   :  { %v793_v23 = vadd.f32 0.5, %v792_v18  ;;  %1068 = vmatpush.msrb.mxu0 %v7071_v17  ;;  %v7072_v18 = vld [vmem:[#allocation36_spill] sm:$0xff] }
 0x208   :  { %v797_v24 = vadd.f32 0.5, %v796_v22  ;;  %1088 = vmatpush.msrb.mxu1 %v7072_v18  ;;  %v7073_v22 = vld [vmem:[#allocation37_spill] sm:$0xff] }
 0x209   :  { %v3434_v26 = vpop.eup %3433  ;;  %1108 = vmatpush.msrb.mxu2 %v7073_v22  ;;  %v7083_v22 = vld [vmem:[#allocation46_spill] sm:$0xff] }
 0x20a   :  { %v803_v27 = vmul.f32 %v797_v24, %v4325_v60  ;;  %v804_v28 = vmul.f32 %v3434_v26, %v793_v23  ;;  %v7074_v23 = vld [vmem:[#allocation38_spill] sm:$0xff]  ;;  %v7075_v24 = vld [vmem:[#allocation39_spill] sm:$0xff]  ;;  %v7076_v26 = vld [vmem:[#allocation40_spill] sm:$0xff] }
 0x20b   :  { %v3436_v19 = vpop.eup %3435  ;;  %1128 = vmatpush.msrb.mxu3 %v7074_v23  ;;  %1069 = vmatpush.msrb.mxu0 %v7075_v24  ;;  %v7084_v23 = vld [vmem:[#allocation47_spill] sm:$0xff]  ;;  %v7085_v24 = vld [vmem:[#allocation48_spill] sm:$0xff] }
 0x20c   :  { %v4743_v20 = vadd.f32 %v804_v28, %v803_v27  ;;  %v801_v60 = vmul.f32 0.5, %v3436_v19  ;;  %1089 = vmatpush.msrb.mxu1 %v7076_v26  ;;  %v7077_v28 = vld [vmem:[#allocation41_spill] sm:$0xff]  ;;  %v7078_v19 = vld [vmem:[#allocation42_spill] sm:$0xff] }
 0x20d   :  { %1109 = vmatpush.msrb.mxu2 %v7077_v28  ;;  %1129 = vmatpush.msrb.mxu3 %v7078_v19 }
 0x20e   :  { %7070 = vst [vmem:[#allocation51_spill] sm:$0xff] %v4743_v20  ;;  %3437 = vtanh.f32 %v4743_v20  ;;  %v802_v27 = vadd.f32 0.5, %v801_v60  ;;  %1070 = vmatpush.msrb.mxu0 %v7079_v54  ;;  %1090 = vmatpush.msrb.mxu1 %v7080_v53  ;;  %v7086_v60 = vld [vmem:[#allocation49_spill] sm:$0xff] }
 0x20f   :  { %1110 = vmatpush.msrb.mxu2 %v7082_v42  ;;  %1130 = vmatpush.msrb.mxu3 %v7083_v22 }
 0x210   :  { %1071 = vmatpush.msrb.mxu0 %v7084_v23  ;;  %1091 = vmatpush.msrb.mxu1 %v7085_v24 }
 0x211   :  { %1111 = vmatpush.msrb.mxu2 %v7086_v60  ;;  %1131 = vmatpush.msrb.mxu3 %v4690_v25 }
 0x214   :  { %v3438_v20 = vpop.eup %3437 }
 0x215   :  { %v4764_v43 = vmul.f32 %v3438_v20, %v802_v27  ;;  %v7087_v20 = vld [vmem:[#allocation37_spill] sm:$0xff]  ;;  %v7088_v27 = vld [vmem:[#allocation38_spill] sm:$0xff] }
 0x217   :  { %7081 = vst [vmem:[#allocation52_spill] sm:$0xff] %v4764_v43  ;;  %897 = vmatmul.f32.vlgmr.msra.gmra.mxu0 %v4764_v43  ;;  %917 = vmatmul.f32.vlgmr.msra.gmra.mxu1 %v4764_v43 }
 0x218   :  { %937 = vmatmul.f32.vlgmr.msra.gmra.mxu2 %v4764_v43  ;;  %957 = vmatmul.f32.vlgmr.msra.gmra.mxu3 %v4764_v43  ;;  %v7089_v43 = vld [vmem:[#allocation39_spill] sm:$0xff] }
 0x219   :  { %1231 = vmatpush.msra.mxu0 %v4300_v44  ;;  %1251 = vmatpush.msra.mxu1 %v4305_v45 }
 0x21a   :  { %1271 = vmatpush.msra.mxu2 %v4310_v49  ;;  %1291 = vmatpush.msra.mxu3 %v4317_v14 }
 0x21b   :  { %1232 = vmatpush.msra.mxu0 %v4337_v8  ;;  %1252 = vmatpush.msra.mxu1 %v4342_v12 }
 0x21c   :  { %1272 = vmatpush.msra.mxu2 %v4347_v39  ;;  %1292 = vmatpush.msra.mxu3 %v4354_v50 }
 0x21d   :  { %1233 = vmatpush.msra.mxu0 %v4361_v13  ;;  %1253 = vmatpush.msra.mxu1 %v4366_v51 }
 0x21e   :  { %1273 = vmatpush.msra.mxu2 %v4371_v52  ;;  %1293 = vmatpush.msra.mxu3 %v4378_v55 }
 0x21f   :  { %1234 = vmatpush.msra.mxu0 %v4385_v56  ;;  %1254 = vmatpush.msra.mxu1 %v4390_v57 }
 0x220   :  { %1274 = vmatpush.msra.mxu2 %v4395_v58  ;;  %1294 = vmatpush.msra.mxu3 %v4402_v59 }
 0x221   :  { %1235 = vmatpush.msra.mxu0 %v4409_v61  ;;  %1255 = vmatpush.msra.mxu1 %v4414_v62 }
 0x222   :  { %1275 = vmatpush.msra.mxu2 %v4419_v63  ;;  %1295 = vmatpush.msra.mxu3 %v4426_v0 }
 0x223   :  { %1236 = vmatpush.msra.mxu0 %v4433_v1  ;;  %1256 = vmatpush.msra.mxu1 %v4438_v2 }
 0x224   :  { %1276 = vmatpush.msra.mxu2 %v4443_v3  ;;  %1296 = vmatpush.msra.mxu3 %v4450_v4 }
 0x225   :  { %1237 = vmatpush.msra.mxu0 %v4457_v5  ;;  %1257 = vmatpush.msra.mxu1 %v4462_v6 }
 0x226   :  { %1277 = vmatpush.msra.mxu2 %v4467_v7  ;;  %1297 = vmatpush.msra.mxu3 %v4474_v34 }
 0x227   :  { %1238 = vmatpush.msra.mxu0 %v4481_v15  ;;  %1258 = vmatpush.msra.mxu1 %v4486_v47 }
 0x228   :  { %1278 = vmatpush.msra.mxu2 %v4491_v16  ;;  %1298 = vmatpush.msra.mxu3 %v4498_v21 }
 0x229   :  { %1239 = vmatpush.msra.mxu0 %v4505_v9  ;;  %1259 = vmatpush.msra.mxu1 %v4510_v48 }
 0x22a   :  { %1279 = vmatpush.msra.mxu2 %v4515_v46  ;;  %1299 = vmatpush.msra.mxu3 %v4522_v41 }
 0x22b   :  { %1240 = vmatpush.msra.mxu0 %v4529_v40  ;;  %1260 = vmatpush.msra.mxu1 %v4534_v10 }
 0x22c   :  { %1280 = vmatpush.msra.mxu2 %v4539_v11  ;;  %1300 = vmatpush.msra.mxu3 %v4546_v38 }
 0x22d   :  { %1241 = vmatpush.msra.mxu0 %v4553_v37  ;;  %1261 = vmatpush.msra.mxu1 %v4558_v36 }
 0x22e   :  { %1281 = vmatpush.msra.mxu2 %v4563_v35  ;;  %1301 = vmatpush.msra.mxu3 %v4570_v33 }
 0x22f   :  { %1242 = vmatpush.msra.mxu0 %v4577_v32  ;;  %1262 = vmatpush.msra.mxu1 %v4582_v31 }
 0x230   :  { %1282 = vmatpush.msra.mxu2 %v4587_v30  ;;  %1302 = vmatpush.msra.mxu3 %v4594_v29  ;;  %v7095_v29 = vld [vmem:[#allocation6_spill] sm:$0xff]  ;;  %v7096_v30 = vld [vmem:[#allocation27_spill] sm:$0xff] }
 0x231   :  { %1243 = vmatpush.msra.mxu0 %v7071_v17  ;;  %1263 = vmatpush.msra.mxu1 %v7072_v18 }
 0x232   :  { %1283 = vmatpush.msra.mxu2 %v7087_v20  ;;  %1303 = vmatpush.msra.mxu3 %v7088_v27  ;;  %v7093_v27 = vld [vmem:[#allocation5_spill] sm:$0xff] }
 0x233   :  { %1244 = vmatpush.msra.mxu0 %v7089_v43  ;;  %1264 = vmatpush.msra.mxu1 %v7076_v26  ;;  %v7090_v26 = vld [vmem:[#allocation22_spill] sm:$0xff] }
 0x234   :  { %1284 = vmatpush.msra.mxu2 %v7077_v28  ;;  %1304 = vmatpush.msra.mxu3 %v7078_v19  ;;  %v7091_v28 = vld [vmem:[#allocation4_spill] sm:$0xff]  ;;  %v7092_v19 = vld [vmem:[#allocation23_spill] sm:$0xff] }
 0x235   :  { %1245 = vmatpush.msra.mxu0 %v7079_v54  ;;  %1265 = vmatpush.msra.mxu1 %v7080_v53  ;;  %v115_v43 = vadd.f32 %v7091_v28, %v7090_v26  ;;  %v156_v54 = vadd.f32 %v7093_v27, %v7092_v19 }
 0x236   :  { %1285 = vmatpush.msra.mxu2 %v7082_v42  ;;  %1305 = vmatpush.msra.mxu3 %v7083_v22 }
 0x237   :  { %1246 = vmatpush.msra.mxu0 %v7084_v23  ;;  %1266 = vmatpush.msra.mxu1 %v7085_v24  ;;  %v7094_v23 = vld [vmem:[#allocation26_spill] sm:$0xff] }
 0x238   :  { %1286 = vmatpush.msra.mxu2 %v7086_v60  ;;  %1306 = vmatpush.msra.mxu3 %v4690_v25  ;;  %v197_v24 = vadd.f32 %v7095_v29, %v7094_v23  ;;  %v7097_v60 = vld [vmem:[#allocation7_spill] sm:$0xff] }
 0x239   :  { %v238_v31 = vadd.f32 %v7097_v60, %v7096_v30 }
 0x294   :  { %v898_v20 = vpop.f32.mrf.mxu0  ;;  %v918_v53 = vpop.f32.mrf.mxu1 }
 0x295   :  { %v961_v18 = vadd.f32 %v898_v20, %v115_v43  ;;  %v962_v42 = vadd.f32 %v918_v53, %v156_v54 }
 0x297   :  { %v965_v17 = vmul.f32 0.5, %v961_v18  ;;  %v969_v22 = vmul.f32 0.5, %v962_v42  ;;  %v7098_v18 = vld [vmem:[#allocation51_spill] sm:$0xff] }
 0x299   :  { %3439 = vtanh.f32 %v965_v17 }
 0x29a   :  { %3441 = vtanh.f32 %v969_v22 }
 0x29b   :  { %v938_v25 = vpop.f32.mrf.mxu2  ;;  %v958_v32 = vpop.f32.mrf.mxu3 }
 0x29c   :  { %v963_v28 = vadd.f32 %v938_v25, %v197_v24  ;;  %v964_v26 = vadd.f32 %v958_v32, %v238_v31 }
 0x29e   :  { %3443 = vtanh.f32 %v963_v28  ;;  %v974_v27 = vmul.f32 0.5, %v964_v26 }
 0x29f   :  { %v3440_v19 = vpop.eup %3439 }
 0x2a0   :  { %v3442_v33 = vpop.eup %3441  ;;  %v967_v43 = vmul.f32 0.5, %v3440_v19  ;;  %3445 = vtanh.f32 %v974_v27 }
 0x2a1   :  { %v971_v53 = vmul.f32 0.5, %v3442_v33  ;;  %v7099_v33 = vld [vmem:[#allocation30_spill] sm:$0xff] }
 0x2a2   :  { %v968_v42 = vadd.f32 0.5, %v967_v43 }
 0x2a3   :  { %v972_v54 = vadd.f32 0.5, %v971_v53 }
 0x2a4   :  { %v3444_v17 = vpop.eup %3443 }
 0x2a5   :  { %v978_v29 = vmul.f32 %v972_v54, %v7098_v18  ;;  %v979_v20 = vmul.f32 %v3444_v17, %v968_v42 }
 0x2a6   :  { %v3446_v23 = vpop.eup %3445 }
 0x2a7   :  { %v4849_v60 = vadd.f32 %v979_v20, %v978_v29  ;;  %v976_v25 = vmul.f32 0.5, %v3446_v23 }
 0x2a9   :  { %3447 = vtanh.f32 %v4849_v60  ;;  %v977_v31 = vadd.f32 0.5, %v976_v25 }
 0x2af   :  { %v3448_v32 = vpop.eup %3447 }
 0x2b0   :  { %v4852_v22 = vmul.f32 %v3448_v32, %v977_v31  ;;  %v7128_v31 = vld [vmem:[#allocation13_spill] sm:$0xff] }
 0x2b2   :  { %1072 = vmatmul.f32.vlgmr.msrb.gmra.mxu0 %v4852_v22  ;;  %1092 = vmatmul.f32.vlgmr.msrb.gmra.mxu1 %v4852_v22 }
 0x2b3   :  { %1112 = vmatmul.f32.vlgmr.msrb.gmra.mxu2 %v4852_v22  ;;  %1132 = vmatmul.f32.vlgmr.msrb.gmra.mxu3 %v4852_v22 }
 0x2b4   :  { %1406 = vmatpush.msrb.mxu0 %v4300_v44  ;;  %1426 = vmatpush.msrb.mxu1 %v4305_v45  ;;  %v7104_v44 = vld [vmem:[#allocation35_spill] sm:$0xff]  ;;  %v7110_v45 = vld [vmem:[#allocation41_spill] sm:$0xff] }
 0x2b5   :  { %1446 = vmatpush.msrb.mxu2 %v4310_v49  ;;  %1466 = vmatpush.msrb.mxu3 %v4317_v14  ;;  %v7111_v49 = vld [vmem:[#allocation42_spill] sm:$0xff]  ;;  %v7112_v14 = vld [vmem:[#allocation43_spill] sm:$0xff] }
 0x2b6   :  { %1407 = vmatpush.msrb.mxu0 %v4337_v8  ;;  %1427 = vmatpush.msrb.mxu1 %v4342_v12  ;;  %v7114_v8 = vld [vmem:[#allocation45_spill] sm:$0xff]  ;;  %v7115_v12 = vld [vmem:[#allocation46_spill] sm:$0xff] }
 0x2b7   :  { %1447 = vmatpush.msrb.mxu2 %v4347_v39  ;;  %1467 = vmatpush.msrb.mxu3 %v4354_v50  ;;  %v7116_v39 = vld [vmem:[#allocation47_spill] sm:$0xff]  ;;  %v7117_v50 = vld [vmem:[#allocation48_spill] sm:$0xff] }
 0x2b8   :  { %1408 = vmatpush.msrb.mxu0 %v4361_v13  ;;  %1428 = vmatpush.msrb.mxu1 %v4366_v51  ;;  %v7118_v13 = vld [vmem:[#allocation49_spill] sm:$0xff]  ;;  %v7119_v51 = vld [vmem:[#allocation50_spill] sm:$0xff] }
 0x2b9   :  { %1448 = vmatpush.msrb.mxu2 %v4371_v52  ;;  %1468 = vmatpush.msrb.mxu3 %v4378_v55  ;;  %v7120_v52 = vld [vmem:[#allocation22_spill] sm:$0xff]  ;;  %v7121_v55 = vld [vmem:[#allocation8_spill] sm:$0xff] }
 0x2ba   :  { %1409 = vmatpush.msrb.mxu0 %v4385_v56  ;;  %1429 = vmatpush.msrb.mxu1 %v4390_v57  ;;  %v118_v56 = vadd.f32 %v7121_v55, %v7120_v52  ;;  %v7122_v57 = vld [vmem:[#allocation23_spill] sm:$0xff] }
 0x2bb   :  { %1449 = vmatpush.msrb.mxu2 %v4395_v58  ;;  %1469 = vmatpush.msrb.mxu3 %v4402_v59  ;;  %v7123_v58 = vld [vmem:[#allocation9_spill] sm:$0xff]  ;;  %v162_v32 = vadd.f32 %v7128_v31, %v7122_v57  ;;  %v1568_v55 = vld [vmem:[%s6860_s2 + $0x198] sm:$0xff] }
 0x2bc   :  { %1410 = vmatpush.msrb.mxu0 %v4409_v61  ;;  %1430 = vmatpush.msrb.mxu1 %v4414_v62  ;;  %v159_v59 = vadd.f32 %v7123_v58, %v7122_v57  ;;  %v1562_v58 = vld [vmem:[%s6860_s2 + $0x168] sm:$0xff]  ;;  %v1548_v31 = vld [vmem:[%s6860_s2 + $0xf8] sm:$0xff] }
 0x2bd   :  { %1450 = vmatpush.msrb.mxu2 %v4419_v63  ;;  %1470 = vmatpush.msrb.mxu3 %v4426_v0 }
 0x2be   :  { %1411 = vmatpush.msrb.mxu0 %v4433_v1  ;;  %1431 = vmatpush.msrb.mxu1 %v4438_v2 }
 0x2bf   :  { %1451 = vmatpush.msrb.mxu2 %v4443_v3  ;;  %1471 = vmatpush.msrb.mxu3 %v4450_v4  ;;  %v7124_v3 = vld [vmem:[#allocation26_spill] sm:$0xff] }
 0x2c0   :  { %1412 = vmatpush.msrb.mxu0 %v4457_v5  ;;  %1432 = vmatpush.msrb.mxu1 %v4462_v6  ;;  %v7125_v4 = vld [vmem:[#allocation10_spill] sm:$0xff]  ;;  %v7126_v6 = vld [vmem:[#allocation11_spill] sm:$0xff] }
 0x2c1   :  { %1452 = vmatpush.msrb.mxu2 %v4467_v7  ;;  %1472 = vmatpush.msrb.mxu3 %v4474_v34  ;;  %v200_v5 = vadd.f32 %v7125_v4, %v7124_v3  ;;  %v241_v7 = vadd.f32 %v7126_v6, %v7096_v30  ;;  %v1558_v6 = vld [vmem:[%s6860_s2 + $0x148] sm:$0xff] }
 0x2c2   :  { %1413 = vmatpush.msrb.mxu0 %v4481_v15  ;;  %1433 = vmatpush.msrb.mxu1 %v4486_v47 }
 0x2c3   :  { %1453 = vmatpush.msrb.mxu2 %v4491_v16  ;;  %1473 = vmatpush.msrb.mxu3 %v4498_v21 }
 0x2c4   :  { %1414 = vmatpush.msrb.mxu0 %v4505_v9  ;;  %1434 = vmatpush.msrb.mxu1 %v4510_v48  ;;  %v7100_v48 = vld [vmem:[#allocation31_spill] sm:$0xff] }
 0x2c5   :  { %1454 = vmatpush.msrb.mxu2 %v4515_v46  ;;  %1474 = vmatpush.msrb.mxu3 %v4522_v41  ;;  %v7101_v46 = vld [vmem:[#allocation32_spill] sm:$0xff]  ;;  %v7102_v41 = vld [vmem:[#allocation33_spill] sm:$0xff] }
 0x2c6   :  { %1415 = vmatpush.msrb.mxu0 %v4529_v40  ;;  %1435 = vmatpush.msrb.mxu1 %v4534_v10  ;;  %v7103_v40 = vld [vmem:[#allocation34_spill] sm:$0xff]  ;;  %v7113_v10 = vld [vmem:[#allocation44_spill] sm:$0xff] }
 0x2c7   :  { %1455 = vmatpush.msrb.mxu2 %v4539_v11  ;;  %1475 = vmatpush.msrb.mxu3 %v4546_v38  ;;  %v7105_v11 = vld [vmem:[#allocation36_spill] sm:$0xff]  ;;  %v7106_v38 = vld [vmem:[#allocation37_spill] sm:$0xff] }
 0x2c8   :  { %1416 = vmatpush.msrb.mxu0 %v4553_v37  ;;  %1436 = vmatpush.msrb.mxu1 %v4558_v36  ;;  %v7107_v37 = vld [vmem:[#allocation38_spill] sm:$0xff]  ;;  %v7108_v36 = vld [vmem:[#allocation39_spill] sm:$0xff] }
 0x2c9   :  { %1456 = vmatpush.msrb.mxu2 %v4563_v35  ;;  %1476 = vmatpush.msrb.mxu3 %v7099_v33  ;;  %v7109_v35 = vld [vmem:[#allocation40_spill] sm:$0xff] }
 0x2ca   :  { %1417 = vmatpush.msrb.mxu0 %v7100_v48  ;;  %1437 = vmatpush.msrb.mxu1 %v7101_v46  ;;  %v1577_v33 = vld [vmem:[%s6860_s2 + $0x1e0] sm:$0xff]  ;;  %v1578_v48 = vld [vmem:[%s6860_s2 + $0x1e8] sm:$0xff]  ;;  %v1579_v46 = vld [vmem:[%s6860_s2 + $0x1f0] sm:$0xff] }
 0x2cb   :  { %1457 = vmatpush.msrb.mxu2 %v7102_v41  ;;  %1477 = vmatpush.msrb.mxu3 %v7103_v40 }
 0x2cc   :  { %1418 = vmatpush.msrb.mxu0 %v7104_v44  ;;  %1438 = vmatpush.msrb.mxu1 %v7105_v11  ;;  %v1580_v44 = vld [vmem:[%s6860_s2 + $0x1f8] sm:$0xff]  ;;  %v1573_v11 = vld [vmem:[%s6860_s2 + $0x1c0] sm:$0xff] }
 0x2cd   :  { %1458 = vmatpush.msrb.mxu2 %v7106_v38  ;;  %1478 = vmatpush.msrb.mxu3 %v7107_v37  ;;  %v1574_v38 = vld [vmem:[%s6860_s2 + $0x1c8] sm:$0xff] }
 0x2ce   :  { %1419 = vmatpush.msrb.mxu0 %v7108_v36  ;;  %1439 = vmatpush.msrb.mxu1 %v7109_v35  ;;  %v1575_v35 = vld [vmem:[%s6860_s2 + $0x1d0] sm:$0xff] }
 0x2cf   :  { %1459 = vmatpush.msrb.mxu2 %v7110_v45  ;;  %1479 = vmatpush.msrb.mxu3 %v7111_v49  ;;  %v1576_v45 = vld [vmem:[%s6860_s2 + $0x1d8] sm:$0xff]  ;;  %v1569_v49 = vld [vmem:[%s6860_s2 + $0x1a0] sm:$0xff] }
 0x2d0   :  { %1420 = vmatpush.msrb.mxu0 %v7112_v14  ;;  %1440 = vmatpush.msrb.mxu1 %v7113_v10  ;;  %v1570_v14 = vld [vmem:[%s6860_s2 + $0x1a8] sm:$0xff]  ;;  %v1571_v10 = vld [vmem:[%s6860_s2 + $0x1b0] sm:$0xff] }
 0x2d1   :  { %1460 = vmatpush.msrb.mxu2 %v7114_v8  ;;  %1480 = vmatpush.msrb.mxu3 %v7115_v12  ;;  %v1572_v8 = vld [vmem:[%s6860_s2 + $0x1b8] sm:$0xff] }
 0x2d2   :  { %1421 = vmatpush.msrb.mxu0 %v7116_v39  ;;  %1441 = vmatpush.msrb.mxu1 %v7117_v50  ;;  %v1565_v50 = vld [vmem:[%s6860_s2 + $0x180] sm:$0xff] }
 0x2d3   :  { %1461 = vmatpush.msrb.mxu2 %v7118_v13  ;;  %1481 = vmatpush.msrb.mxu3 %v7119_v51  ;;  %v1566_v13 = vld [vmem:[%s6860_s2 + $0x188] sm:$0xff]  ;;  %v1567_v51 = vld [vmem:[%s6860_s2 + $0x190] sm:$0xff] }
 0x32f   :  { %v1073_v61 = vpop.f32.mrf.mxu0  ;;  %v1093_v62 = vpop.f32.mrf.mxu1 }
 0x330   :  { %v1136_v63 = vadd.f32 %v1073_v61, %v118_v56  ;;  %v1137_v0 = vadd.f32 %v1093_v62, %v159_v59  ;;  %v1561_v56 = vld [vmem:[%s6860_s2 + $0x160] sm:$0xff]  ;;  %v7129_v59 = vld [vmem:[#allocation14_spill] sm:$0xff]  ;;  %v7130_v62 = vld [vmem:[#allocation15_spill] sm:$0xff] }
 0x331   :  { %v203_v61 = vadd.f32 %v7129_v59, %v7124_v3  ;;  %v1525_v59 = vld [vmem:[%s6860_s2 + $0x40] sm:$0xff] }
 0x332   :  { %v1140_v1 = vmul.f32 0.5, %v1136_v63  ;;  %v1144_v2 = vmul.f32 0.5, %v1137_v0  ;;  %v244_v63 = vadd.f32 %v7130_v62, %v7096_v30  ;;  %v1563_v0 = vld [vmem:[%s6860_s2 + $0x170] sm:$0xff] }
 0x333   :  { %v1527_v62 = vld [vmem:[%s6860_s2 + $0x50] sm:$0xff] }
 0x334   :  { %3449 = vtanh.f32 %v1140_v1  ;;  %v1564_v1 = vld [vmem:[%s6860_s2 + $0x178] sm:$0xff] }
 0x335   :  { %3451 = vtanh.f32 %v1144_v2 }
 0x336   :  { %v1113_v34 = vpop.f32.mrf.mxu2  ;;  %v1133_v15 = vpop.f32.mrf.mxu3 }
 0x337   :  { %v1138_v47 = vadd.f32 %v1113_v34, %v200_v5  ;;  %v1139_v16 = vadd.f32 %v1133_v15, %v241_v7  ;;  %v1557_v5 = vld [vmem:[%s6860_s2 + $0x140] sm:$0xff]  ;;  %v1559_v15 = vld [vmem:[%s6860_s2 + $0x150] sm:$0xff] }
 0x339   :  { %3453 = vtanh.f32 %v1138_v47  ;;  %v1149_v21 = vmul.f32 0.5, %v1139_v16  ;;  %v1560_v47 = vld [vmem:[%s6860_s2 + $0x158] sm:$0xff]  ;;  %v1553_v16 = vld [vmem:[%s6860_s2 + $0x120] sm:$0xff] }
 0x33a   :  { %v3450_v9 = vpop.eup %3449 }
 0x33b   :  { %v3452_v23 = vpop.eup %3451  ;;  %v1142_v24 = vmul.f32 0.5, %v3450_v9  ;;  %3455 = vtanh.f32 %v1149_v21  ;;  %v1554_v21 = vld [vmem:[%s6860_s2 + $0x128] sm:$0xff] }
 0x33c   :  { %v1146_v26 = vmul.f32 0.5, %v3452_v23  ;;  %v1555_v23 = vld [vmem:[%s6860_s2 + $0x130] sm:$0xff] }
 0x33d   :  { %v1143_v19 = vadd.f32 0.5, %v1142_v24  ;;  %v1556_v24 = vld [vmem:[%s6860_s2 + $0x138] sm:$0xff] }
 0x33e   :  { %v1147_v28 = vadd.f32 0.5, %v1146_v26 }
 0x33f   :  { %v3454_v27 = vpop.eup %3453 }
 0x340   :  { %v1153_v43 = vmul.f32 %v1147_v28, %v4849_v60  ;;  %v1154_v53 = vmul.f32 %v3454_v27, %v1143_v19  ;;  %v7127_v60 = vld [vmem:[#allocation12_spill] sm:$0xff]  ;;  %v1550_v28 = vld [vmem:[%s6860_s2 + $0x108] sm:$0xff] }
 0x341   :  { %v3456_v42 = vpop.eup %3455  ;;  %v121_v25 = vadd.f32 %v7127_v60, %v7120_v52  ;;  %v1549_v19 = vld [vmem:[%s6860_s2 + $0x100] sm:$0xff] }
 0x342   :  { %v4931_v54 = vadd.f32 %v1154_v53, %v1153_v43  ;;  %v1151_v17 = vmul.f32 0.5, %v3456_v42  ;;  %v1551_v53 = vld [vmem:[%s6860_s2 + $0x110] sm:$0xff]  ;;  %v1552_v42 = vld [vmem:[%s6860_s2 + $0x118] sm:$0xff] }
 0x344   :  { %3457 = vtanh.f32 %v4931_v54  ;;  %v1152_v18 = vadd.f32 0.5, %v1151_v17 }
 0x34a   :  { %v3458_v29 = vpop.eup %3457 }
 0x34b   :  { %v4934_v20 = vmul.f32 %v3458_v29, %v1152_v18  ;;  %v1545_v18 = vld [vmem:[%s6860_s2 + $0xe0] sm:$0xff]  ;;  %v1546_v29 = vld [vmem:[%s6860_s2 + $0xe8] sm:$0xff] }
 0x34d   :  { %1247 = vmatmul.f32.vlgmr.msra.gmra.mxu0 %v4934_v20  ;;  %1267 = vmatmul.f32.vlgmr.msra.gmra.mxu1 %v4934_v20 }
 0x34e   :  { %1287 = vmatmul.f32.vlgmr.msra.gmra.mxu2 %v4934_v20  ;;  %1307 = vmatmul.f32.vlgmr.msra.gmra.mxu3 %v4934_v20 }
 0x34f   :  { %1581 = vmatpush.msra.mxu0 %v1577_v33  ;;  %1601 = vmatpush.msra.mxu1 %v1578_v48  ;;  %v1541_v33 = vld [vmem:[%s6860_s2 + $0xc0] sm:$0xff]  ;;  %v1542_v48 = vld [vmem:[%s6860_s2 + $0xc8] sm:$0xff] }
 0x350   :  { %1621 = vmatpush.msra.mxu2 %v1579_v46  ;;  %1641 = vmatpush.msra.mxu3 %v1580_v44 }
 0x351   :  { %1582 = vmatpush.msra.mxu0 %v1573_v11  ;;  %1602 = vmatpush.msra.mxu1 %v1574_v38  ;;  %v1537_v38 = vld [vmem:[%s6860_s2 + $0xa0] sm:$0xff] }
 0x352   :  { %1622 = vmatpush.msra.mxu2 %v1575_v35  ;;  %1642 = vmatpush.msra.mxu3 %v1576_v45 }
 0x353   :  { %1583 = vmatpush.msra.mxu0 %v1569_v49  ;;  %1603 = vmatpush.msra.mxu1 %v1570_v14  ;;  %v1533_v49 = vld [vmem:[%s6860_s2 + $0x80] sm:$0xff]  ;;  %v1534_v14 = vld [vmem:[%s6860_s2 + $0x88] sm:$0xff] }
 0x354   :  { %1623 = vmatpush.msra.mxu2 %v1571_v10  ;;  %1643 = vmatpush.msra.mxu3 %v1572_v8  ;;  %v1535_v10 = vld [vmem:[%s6860_s2 + $0x90] sm:$0xff]  ;;  %v1536_v8 = vld [vmem:[%s6860_s2 + $0x98] sm:$0xff] }
 0x355   :  { %1584 = vmatpush.msra.mxu0 %v1565_v50  ;;  %1604 = vmatpush.msra.mxu1 %v1566_v13  ;;  %v1531_v13 = vld [vmem:[%s6860_s2 + $0x70] sm:$0xff] }
 0x356   :  { %1624 = vmatpush.msra.mxu2 %v1567_v51  ;;  %1644 = vmatpush.msra.mxu3 %v1568_v55  ;;  %v1532_v51 = vld [vmem:[%s6860_s2 + $0x78] sm:$0xff] }
 0x357   :  { %1585 = vmatpush.msra.mxu0 %v1561_v56  ;;  %1605 = vmatpush.msra.mxu1 %v1562_v58 }
 0x358   :  { %1625 = vmatpush.msra.mxu2 %v1563_v0  ;;  %1645 = vmatpush.msra.mxu3 %v1564_v1  ;;  %v1521_v0 = vld [vmem:[%s6860_s2 + $0x20] sm:$0xff]  ;;  %v1522_v1 = vld [vmem:[%s6860_s2 + $0x28] sm:$0xff] }
 0x359   :  { %1586 = vmatpush.msra.mxu0 %v1557_v5  ;;  %1606 = vmatpush.msra.mxu1 %v1558_v6  ;;  %v1517_v5 = vld [vmem:[%s6860_s2] sm:$0xff]  ;;  %v1518_v6 = vld [vmem:[%s6860_s2 + $0x8] sm:$0xff] }
 0x35a   :  { %1626 = vmatpush.msra.mxu2 %v1559_v15  ;;  %1646 = vmatpush.msra.mxu3 %v1560_v47  ;;  %v1755_v15 = vld [vmem:[%s6862_s4 + $0x1e0] sm:$0xff]  ;;  %v1756_v47 = vld [vmem:[%s6862_s4 + $0x1e8] sm:$0xff] }
 0x35b   :  { %1587 = vmatpush.msra.mxu0 %v1553_v16  ;;  %1607 = vmatpush.msra.mxu1 %v1554_v21  ;;  %v1757_v16 = vld [vmem:[%s6862_s4 + $0x1f0] sm:$0xff]  ;;  %v1758_v21 = vld [vmem:[%s6862_s4 + $0x1f8] sm:$0xff] }
 0x35c   :  { %1627 = vmatpush.msra.mxu2 %v1555_v23  ;;  %1647 = vmatpush.msra.mxu3 %v1556_v24  ;;  %v1752_v23 = vld [vmem:[%s6862_s4 + $0x1c8] sm:$0xff]  ;;  %v1753_v24 = vld [vmem:[%s6862_s4 + $0x1d0] sm:$0xff] }
 0x35d   :  { %1588 = vmatpush.msra.mxu0 %v1549_v19  ;;  %1608 = vmatpush.msra.mxu1 %v1550_v28  ;;  %v1747_v19 = vld [vmem:[%s6862_s4 + $0x1a0] sm:$0xff]  ;;  %v1748_v28 = vld [vmem:[%s6862_s4 + $0x1a8] sm:$0xff] }
 0x35e   :  { %1628 = vmatpush.msra.mxu2 %v1551_v53  ;;  %1648 = vmatpush.msra.mxu3 %v1552_v42  ;;  %v1743_v53 = vld [vmem:[%s6862_s4 + $0x180] sm:$0xff]  ;;  %v1744_v42 = vld [vmem:[%s6862_s4 + $0x188] sm:$0xff] }
 0x35f   :  { %1589 = vmatpush.msra.mxu0 %v1545_v18  ;;  %1609 = vmatpush.msra.mxu1 %v1546_v29  ;;  %v1746_v18 = vld [vmem:[%s6862_s4 + $0x198] sm:$0xff]  ;;  %v1739_v29 = vld [vmem:[%s6862_s4 + $0x160] sm:$0xff] }
 0x360   :  { %1649 = vmatpush.msra.mxu3 %v1548_v31  ;;  %v1742_v31 = vld [vmem:[%s6862_s4 + $0x178] sm:$0xff] }
 0x361   :  { %1590 = vmatpush.msra.mxu0 %v1541_v33  ;;  %1610 = vmatpush.msra.mxu1 %v1542_v48  ;;  %v1736_v33 = vld [vmem:[%s6862_s4 + $0x148] sm:$0xff]  ;;  %v1737_v48 = vld [vmem:[%s6862_s4 + $0x150] sm:$0xff] }
 0x363   :  { %1591 = vmatpush.msra.mxu0 %v1537_v38  ;;  %v1727_v38 = vld [vmem:[%s6862_s4 + $0x100] sm:$0xff] }
 0x365   :  { %1592 = vmatpush.msra.mxu0 %v1533_v49  ;;  %v1724_v49 = vld [vmem:[%s6862_s4 + $0xe8] sm:$0xff] }
 0x3ca   :  { %v1248_v41 = vpop.f32.mrf.mxu0  ;;  %v1268_v40 = vpop.f32.mrf.mxu1 }
 0x3cb   :  { %v1311_v37 = vadd.f32 %v1248_v41, %v121_v25  ;;  %v1312_v36 = vadd.f32 %v1268_v40, %v162_v32  ;;  %v1547_v25 = vld [vmem:[%s6860_s2 + $0xf0] sm:$0xff]  ;;  %v1544_v40 = vld [vmem:[%s6860_s2 + $0xd8] sm:$0xff] }
 0x3cc   :  { %v1543_v41 = vld [vmem:[%s6860_s2 + $0xd0] sm:$0xff]  ;;  %1629 = vmatpush.msra.mxu2 %v1547_v25  ;;  %1650 = vmatpush.msra.mxu3 %v1544_v40  ;;  %v1732_v40 = vld [vmem:[%s6862_s4 + $0x128] sm:$0xff] }
 0x3cd   :  { %v1315_v12 = vmul.f32 0.5, %v1311_v37  ;;  %v1319_v39 = vmul.f32 0.5, %v1312_v36  ;;  %v1538_v37 = vld [vmem:[%s6860_s2 + $0xa8] sm:$0xff]  ;;  %v1539_v36 = vld [vmem:[%s6860_s2 + $0xb0] sm:$0xff] }
 0x3ce   :  { %1630 = vmatpush.msra.mxu2 %v1543_v41  ;;  %1611 = vmatpush.msra.mxu1 %v1538_v37  ;;  %v1741_v25 = vld [vmem:[%s6862_s4 + $0x170] sm:$0xff]  ;;  %v1731_v41 = vld [vmem:[%s6862_s4 + $0x120] sm:$0xff]  ;;  %v1728_v37 = vld [vmem:[%s6862_s4 + $0x108] sm:$0xff] }
 0x3cf   :  { %3459 = vtanh.f32 %v1315_v12  ;;  %v1529_v12 = vld [vmem:[%s6860_s2 + $0x60] sm:$0xff] }
 0x3d0   :  { %3461 = vtanh.f32 %v1319_v39  ;;  %1631 = vmatpush.msra.mxu2 %v1539_v36  ;;  %v1530_v39 = vld [vmem:[%s6860_s2 + $0x68] sm:$0xff]  ;;  %1612 = vmatpush.msra.mxu1 %v1534_v14  ;;  %v1729_v36 = vld [vmem:[%s6862_s4 + $0x110] sm:$0xff] }
 0x3d1   :  { %v1288_v2 = vpop.f32.mrf.mxu2  ;;  %v1308_v4 = vpop.f32.mrf.mxu3  ;;  %1593 = vmatpush.msra.mxu0 %v1529_v12  ;;  %v1725_v14 = vld [vmem:[%s6862_s4 + $0xf0] sm:$0xff]  ;;  %v1720_v12 = vld [vmem:[%s6862_s4 + $0xc8] sm:$0xff] }
 0x3d2   :  { %v1313_v7 = vadd.f32 %v1288_v2, %v203_v61  ;;  %v1314_v34 = vadd.f32 %v1308_v4, %v244_v63  ;;  %1632 = vmatpush.msra.mxu2 %v1535_v10  ;;  %1613 = vmatpush.msra.mxu1 %v1530_v39  ;;  %v1526_v61 = vld [vmem:[%s6860_s2 + $0x48] sm:$0xff]  ;;  %v1528_v63 = vld [vmem:[%s6860_s2 + $0x58] sm:$0xff]  ;;  %v1523_v2 = vld [vmem:[%s6860_s2 + $0x30] sm:$0xff] }
 0x3d3   :  { %1594 = vmatpush.msra.mxu0 %v1525_v59  ;;  %v1524_v4 = vld [vmem:[%s6860_s2 + $0x38] sm:$0xff]  ;;  %v1721_v39 = vld [vmem:[%s6862_s4 + $0xd0] sm:$0xff]  ;;  %v1711_v59 = vld [vmem:[%s6862_s4 + $0x80] sm:$0xff] }
 0x3d4   :  { %3463 = vtanh.f32 %v1313_v7  ;;  %v1324_v9 = vmul.f32 0.5, %v1314_v34  ;;  %1633 = vmatpush.msra.mxu2 %v1531_v13  ;;  %1614 = vmatpush.msra.mxu1 %v1526_v61  ;;  %v1519_v7 = vld [vmem:[%s6860_s2 + $0x10] sm:$0xff]  ;;  %v1520_v34 = vld [vmem:[%s6860_s2 + $0x18] sm:$0xff]  ;;  %v1715_v13 = vld [vmem:[%s6862_s4 + $0xa0] sm:$0xff] }
 0x3d5   :  { %v3460_v26 = vpop.eup %3459  ;;  %1595 = vmatpush.msra.mxu0 %v1521_v0  ;;  %v1726_v10 = vld [vmem:[%s6862_s4 + $0xf8] sm:$0xff]  ;;  %v1712_v61 = vld [vmem:[%s6862_s4 + $0x88] sm:$0xff]  ;;  %v7131_v0 = vld [vmem:[#allocation16_spill] sm:$0xff] }
 0x3d6   :  { %v3462_v27 = vpop.eup %3461  ;;  %v1317_v43 = vmul.f32 0.5, %v3460_v26  ;;  %3465 = vtanh.f32 %v1324_v9  ;;  %1634 = vmatpush.msra.mxu2 %v1527_v62  ;;  %1615 = vmatpush.msra.mxu1 %v1522_v1  ;;  %v1751_v9 = vld [vmem:[%s6862_s4 + $0x1c0] sm:$0xff]  ;;  %v1754_v26 = vld [vmem:[%s6862_s4 + $0x1d8] sm:$0xff]  ;;  %v1713_v62 = vld [vmem:[%s6862_s4 + $0x90] sm:$0xff]  ;;  %v124_v1 = vadd.f32 %v7131_v0, %v7120_v52 }
 0x3d7   :  { %v1321_v17 = vmul.f32 0.5, %v3462_v27  ;;  %1596 = vmatpush.msra.mxu0 %v1517_v5  ;;  %v1749_v27 = vld [vmem:[%s6862_s4 + $0x1b0] sm:$0xff]  ;;  %v1707_v5 = vld [vmem:[%s6862_s4 + $0x60] sm:$0xff]  ;;  %v5397_v0 = vld [vmem:[%s6863_s5 + $0x1c8] sm:$0xff] }
 0x3d8   :  { %v1318_v60 = vadd.f32 0.5, %v1317_v43  ;;  %1635 = vmatpush.msra.mxu2 %v1523_v2  ;;  %1616 = vmatpush.msra.mxu1 %v1518_v6  ;;  %v1750_v43 = vld [vmem:[%s6862_s4 + $0x1b8] sm:$0xff]  ;;  %v7132_v2 = vld [vmem:[#allocation17_spill] sm:$0xff] }
 0x3d9   :  { %v1322_v32 = vadd.f32 0.5, %v1321_v17  ;;  %v1745_v17 = vld [vmem:[%s6862_s4 + $0x190] sm:$0xff]  ;;  %v1708_v6 = vld [vmem:[%s6862_s4 + $0x68] sm:$0xff] }
 0x3da   :  { %v3464_v46 = vpop.eup %3463  ;;  %1636 = vmatpush.msra.mxu2 %v1519_v7  ;;  %v1709_v7 = vld [vmem:[%s6862_s4 + $0x70] sm:$0xff] }
 0x3db   :  { %v1328_v44 = vmul.f32 %v1322_v32, %v4931_v54  ;;  %v1329_v11 = vmul.f32 %v3464_v46, %v1318_v60  ;;  %v1540_v54 = vld [vmem:[%s6860_s2 + $0xb8] sm:$0xff]  ;;  %v1740_v60 = vld [vmem:[%s6862_s4 + $0x168] sm:$0xff]  ;;  %v1735_v32 = vld [vmem:[%s6862_s4 + $0x140] sm:$0xff] }
 0x3dc   :  { %v3466_v35 = vpop.eup %3465  ;;  %1651 = vmatpush.msra.mxu3 %v1540_v54  ;;  %v1738_v46 = vld [vmem:[%s6862_s4 + $0x158] sm:$0xff] }
 0x3dd   :  { %v5081_v45 = vadd.f32 %v1329_v11, %v1328_v44  ;;  %v1326_v50 = vmul.f32 0.5, %v3466_v35  ;;  %v1733_v44 = vld [vmem:[%s6862_s4 + $0x130] sm:$0xff]  ;;  %v1734_v11 = vld [vmem:[%s6862_s4 + $0x138] sm:$0xff]  ;;  %v1723_v35 = vld [vmem:[%s6862_s4 + $0xe0] sm:$0xff] }
 0x3de   :  { %1652 = vmatpush.msra.mxu3 %v1536_v8  ;;  %v1730_v54 = vld [vmem:[%s6862_s4 + $0x118] sm:$0xff]  ;;  %v1719_v8 = vld [vmem:[%s6862_s4 + $0xc0] sm:$0xff] }
 0x3df   :  { %3467 = vtanh.f32 %v5081_v45  ;;  %v1327_v55 = vadd.f32 0.5, %v1326_v50  ;;  %v1722_v50 = vld [vmem:[%s6862_s4 + $0xd8] sm:$0xff] }
 0x3e0   :  { %1653 = vmatpush.msra.mxu3 %v1532_v51  ;;  %v1716_v51 = vld [vmem:[%s6862_s4 + $0xa8] sm:$0xff] }
 0x3e2   :  { %1654 = vmatpush.msra.mxu3 %v1528_v63  ;;  %v1714_v63 = vld [vmem:[%s6862_s4 + $0x98] sm:$0xff] }
 0x3e4   :  { %1655 = vmatpush.msra.mxu3 %v1524_v4  ;;  %v165_v4 = vadd.f32 %v7132_v2, %v7122_v57  ;;  %v5408_v2 = vld [vmem:[%s6863_s5 + $0x1f8] sm:$0xff] }
 0x3e5   :  { %v3468_v56 = vpop.eup %3467 }
 0x3e6   :  { %v5108_v58 = vmul.f32 %v3468_v56, %v1327_v55  ;;  %1656 = vmatpush.msra.mxu3 %v1520_v34  ;;  %v1717_v55 = vld [vmem:[%s6862_s4 + $0xb0] sm:$0xff]  ;;  %v1718_v56 = vld [vmem:[%s6862_s4 + $0xb8] sm:$0xff] }
 0x3e8   :  { %1422 = vmatmul.f32.vlgmr.msrb.gmra.mxu0 %v5108_v58  ;;  %1442 = vmatmul.f32.vlgmr.msrb.gmra.mxu1 %v5108_v58 }
 0x3e9   :  { %1462 = vmatmul.f32.vlgmr.msrb.gmra.mxu2 %v5108_v58  ;;  %1482 = vmatmul.f32.vlgmr.msrb.gmra.mxu3 %v5108_v58 }
 0x3ea   :  { %1769 = vmatpush.msrb.mxu0 %v1755_v15  ;;  %1810 = vmatpush.msrb.mxu1 %v1756_v47  ;;  %v1710_v47 = vld [vmem:[%s6862_s4 + $0x78] sm:$0xff] }
 0x3eb   :  { %1851 = vmatpush.msrb.mxu2 %v1757_v16  ;;  %1892 = vmatpush.msrb.mxu3 %v1758_v21  ;;  %v1703_v16 = vld [vmem:[%s6862_s4 + $0x40] sm:$0xff]  ;;  %v1704_v21 = vld [vmem:[%s6862_s4 + $0x48] sm:$0xff] }
 0x3ec   :  { %1770 = vmatpush.msrb.mxu0 %v1751_v9  ;;  %1811 = vmatpush.msrb.mxu1 %v1752_v23 }
 0x3ed   :  { %1852 = vmatpush.msrb.mxu2 %v1753_v24  ;;  %1893 = vmatpush.msrb.mxu3 %v1754_v26  ;;  %v1705_v24 = vld [vmem:[%s6862_s4 + $0x50] sm:$0xff]  ;;  %v1706_v26 = vld [vmem:[%s6862_s4 + $0x58] sm:$0xff] }
 0x3ee   :  { %1771 = vmatpush.msrb.mxu0 %v1747_v19  ;;  %1812 = vmatpush.msrb.mxu1 %v1748_v28  ;;  %v1699_v19 = vld [vmem:[%s6862_s4 + $0x20] sm:$0xff]  ;;  %v1700_v28 = vld [vmem:[%s6862_s4 + $0x28] sm:$0xff] }
 0x3ef   :  { %1853 = vmatpush.msrb.mxu2 %v1749_v27  ;;  %1894 = vmatpush.msrb.mxu3 %v1750_v43  ;;  %v1701_v27 = vld [vmem:[%s6862_s4 + $0x30] sm:$0xff]  ;;  %v1702_v43 = vld [vmem:[%s6862_s4 + $0x38] sm:$0xff] }
 0x3f0   :  { %1772 = vmatpush.msrb.mxu0 %v1743_v53  ;;  %1813 = vmatpush.msrb.mxu1 %v1744_v42 }
 0x3f1   :  { %1854 = vmatpush.msrb.mxu2 %v1745_v17  ;;  %1895 = vmatpush.msrb.mxu3 %v1746_v18  ;;  %v1695_v17 = vld [vmem:[%s6862_s4] sm:$0xff]  ;;  %v1696_v18 = vld [vmem:[%s6862_s4 + $0x8] sm:$0xff] }
 0x3f2   :  { %1773 = vmatpush.msrb.mxu0 %v1739_v29  ;;  %1814 = vmatpush.msrb.mxu1 %v1740_v60  ;;  %v1697_v29 = vld [vmem:[%s6862_s4 + $0x10] sm:$0xff]  ;;  %v1698_v60 = vld [vmem:[%s6862_s4 + $0x18] sm:$0xff] }
 0x3f3   :  { %1855 = vmatpush.msrb.mxu2 %v1741_v25  ;;  %1896 = vmatpush.msrb.mxu3 %v1742_v31  ;;  %v7133_v25 = vld [vmem:[#allocation18_spill] sm:$0xff] }
 0x3f4   :  { %1774 = vmatpush.msrb.mxu0 %v1735_v32  ;;  %1815 = vmatpush.msrb.mxu1 %v1736_v33  ;;  %v206_v31 = vadd.f32 %v7133_v25, %v7124_v3  ;;  %v7134_v32 = vld [vmem:[#allocation19_spill] sm:$0xff]  ;;  %v5587_v25 = vld [vmem:[%s6863_s5 + $0xf0] sm:$0xff] }
 0x3f5   :  { %1856 = vmatpush.msrb.mxu2 %v1737_v48  ;;  %1897 = vmatpush.msrb.mxu3 %v1738_v46  ;;  %v247_v33 = vadd.f32 %v7134_v32, %v7096_v30  ;;  %v5601_v32 = vld [vmem:[%s6863_s5 + $0xf8] sm:$0xff] }
 0x3f6   :  { %1775 = vmatpush.msrb.mxu0 %v1731_v41  ;;  %1816 = vmatpush.msrb.mxu1 %v1732_v40 }
 0x3f7   :  { %1857 = vmatpush.msrb.mxu2 %v1733_v44  ;;  %1898 = vmatpush.msrb.mxu3 %v1734_v11 }
 0x3f8   :  { %1776 = vmatpush.msrb.mxu0 %v1727_v38  ;;  %1817 = vmatpush.msrb.mxu1 %v1728_v37 }
 0x3f9   :  { %1858 = vmatpush.msrb.mxu2 %v1729_v36  ;;  %1899 = vmatpush.msrb.mxu3 %v1730_v54 }
 0x3fa   :  { %1777 = vmatpush.msrb.mxu0 %v1723_v35  ;;  %1818 = vmatpush.msrb.mxu1 %v1724_v49 }
 0x3fb   :  { %1859 = vmatpush.msrb.mxu2 %v1725_v14  ;;  %1900 = vmatpush.msrb.mxu3 %v1726_v10 }
 0x3fc   :  { %1778 = vmatpush.msrb.mxu0 %v1719_v8  ;;  %1819 = vmatpush.msrb.mxu1 %v1720_v12 }
 0x3fd   :  { %1860 = vmatpush.msrb.mxu2 %v1721_v39  ;;  %1901 = vmatpush.msrb.mxu3 %v1722_v50 }
 0x3fe   :  { %1779 = vmatpush.msrb.mxu0 %v1715_v13  ;;  %1820 = vmatpush.msrb.mxu1 %v1716_v51 }
 0x3ff   :  { %1861 = vmatpush.msrb.mxu2 %v1717_v55  ;;  %1902 = vmatpush.msrb.mxu3 %v1718_v56  ;;  %v7136_v55 = vld [vmem:[#allocation29_spill] sm:$0xff]  ;;  %v7137_v56 = vld [vmem:[#allocation52_spill] sm:$0xff] }
 0x400   :  { %1780 = vmatpush.msrb.mxu0 %v1711_v59  ;;  %1821 = vmatpush.msrb.mxu1 %v1712_v61  ;;  %v5375_v59 = vld [vmem:[%s6863_s5 + $0x1e0] sm:$0xff]  ;;  %v5380_v61 = vld [vmem:[%s6863_s5 + $0x1e8] sm:$0xff] }
 0x401   :  { %1862 = vmatpush.msrb.mxu2 %v1713_v62  ;;  %1903 = vmatpush.msrb.mxu3 %v1714_v63  ;;  %v5385_v62 = vld [vmem:[%s6863_s5 + $0x1f0] sm:$0xff]  ;;  %v5392_v63 = vld [vmem:[%s6863_s5 + $0x1c0] sm:$0xff] }
 0x402   :  { %1781 = vmatpush.msrb.mxu0 %v1707_v5  ;;  %1822 = vmatpush.msrb.mxu1 %v1708_v6  ;;  %v5418_v5 = vld [vmem:[%s6863_s5 + $0x1a8] sm:$0xff]  ;;  %v5425_v6 = vld [vmem:[%s6863_s5 + $0x1b0] sm:$0xff] }
 0x403   :  { %1863 = vmatpush.msrb.mxu2 %v1709_v7  ;;  %1904 = vmatpush.msrb.mxu3 %v1710_v47  ;;  %v5430_v7 = vld [vmem:[%s6863_s5 + $0x1d8] sm:$0xff]  ;;  %v5453_v47 = vld [vmem:[%s6863_s5 + $0x190] sm:$0xff] }
 0x404   :  { %1782 = vmatpush.msrb.mxu0 %v1703_v16  ;;  %1823 = vmatpush.msrb.mxu1 %v1704_v21  ;;  %v5458_v16 = vld [vmem:[%s6863_s5 + $0x1b8] sm:$0xff]  ;;  %v5465_v21 = vld [vmem:[%s6863_s5 + $0x160] sm:$0xff] }
 0x405   :  { %1864 = vmatpush.msrb.mxu2 %v1705_v24  ;;  %1905 = vmatpush.msrb.mxu3 %v1706_v26  ;;  %v5489_v24 = vld [vmem:[%s6863_s5 + $0x140] sm:$0xff]  ;;  %v5494_v26 = vld [vmem:[%s6863_s5 + $0x148] sm:$0xff] }
 0x406   :  { %1783 = vmatpush.msrb.mxu0 %v1699_v19  ;;  %1824 = vmatpush.msrb.mxu1 %v1700_v28  ;;  %v5501_v19 = vld [vmem:[%s6863_s5 + $0x150] sm:$0xff]  ;;  %v5506_v28 = vld [vmem:[%s6863_s5 + $0x178] sm:$0xff] }
 0x407   :  { %1865 = vmatpush.msrb.mxu2 %v1701_v27  ;;  %1906 = vmatpush.msrb.mxu3 %v1702_v43  ;;  %v5517_v27 = vld [vmem:[%s6863_s5 + $0x120] sm:$0xff]  ;;  %v5522_v43 = vld [vmem:[%s6863_s5 + $0x128] sm:$0xff] }
 0x408   :  { %1784 = vmatpush.msrb.mxu0 %v1695_v17  ;;  %1825 = vmatpush.msrb.mxu1 %v1696_v18  ;;  %v5558_v17 = vld [vmem:[%s6863_s5 + $0x108] sm:$0xff]  ;;  %v5570_v18 = vld [vmem:[%s6863_s5 + $0x138] sm:$0xff] }
 0x409   :  { %1866 = vmatpush.msrb.mxu2 %v1697_v29  ;;  %1907 = vmatpush.msrb.mxu3 %v1698_v60  ;;  %v5575_v29 = vld [vmem:[%s6863_s5 + $0xe0] sm:$0xff]  ;;  %v5580_v60 = vld [vmem:[%s6863_s5 + $0xe8] sm:$0xff] }
 0x465   :  { %v1423_v34 = vpop.f32.mrf.mxu0  ;;  %v1443_v15 = vpop.f32.mrf.mxu1 }
 0x466   :  { %v1486_v9 = vadd.f32 %v1423_v34, %v124_v1  ;;  %v1487_v23 = vadd.f32 %v1443_v15, %v165_v4  ;;  %v5402_v1 = vld [vmem:[%s6863_s5 + $0x1d0] sm:$0xff]  ;;  %v5413_v4 = vld [vmem:[%s6863_s5 + $0x1a0] sm:$0xff]  ;;  %v5446_v15 = vld [vmem:[%s6863_s5 + $0x188] sm:$0xff] }
 0x467   :  { %v5441_v34 = vld [vmem:[%s6863_s5 + $0x180] sm:$0xff] }
 0x468   :  { %v1490_v53 = vmul.f32 0.5, %v1486_v9  ;;  %v1494_v42 = vmul.f32 0.5, %v1487_v23  ;;  %v5470_v9 = vld [vmem:[%s6863_s5 + $0x168] sm:$0xff]  ;;  %v5477_v23 = vld [vmem:[%s6863_s5 + $0x170] sm:$0xff] }
 0x46a   :  { %3469 = vtanh.f32 %v1490_v53  ;;  %v5529_v53 = vld [vmem:[%s6863_s5 + $0x130] sm:$0xff] }
 0x46b   :  { %3471 = vtanh.f32 %v1494_v42  ;;  %v5534_v42 = vld [vmem:[%s6863_s5 + $0x158] sm:$0xff] }
 0x46c   :  { %v1463_v48 = vpop.f32.mrf.mxu2  ;;  %v1483_v46 = vpop.f32.mrf.mxu3 }
 0x46d   :  { %v1488_v41 = vadd.f32 %v1463_v48, %v206_v31  ;;  %v1489_v40 = vadd.f32 %v1483_v46, %v247_v33  ;;  %v5594_v31 = vld [vmem:[%s6863_s5 + $0x118] sm:$0xff]  ;;  %v5607_v33 = vld [vmem:[%s6863_s5 + $0xc0] sm:$0xff]  ;;  %v5612_v48 = vld [vmem:[%s6863_s5 + $0xc8] sm:$0xff] }
 0x46e   :  { %v5617_v46 = vld [vmem:[%s6863_s5 + $0xd0] sm:$0xff] }
 0x46f   :  { %3473 = vtanh.f32 %v1488_v41  ;;  %v1499_v44 = vmul.f32 0.5, %v1489_v40  ;;  %v5624_v41 = vld [vmem:[%s6863_s5 + $0xd8] sm:$0xff]  ;;  %v5630_v40 = vld [vmem:[%s6863_s5 + $0xa0] sm:$0xff] }
 0x470   :  { %v3470_v11 = vpop.eup %3469 }
 0x471   :  { %v3472_v38 = vpop.eup %3471  ;;  %v1492_v37 = vmul.f32 0.5, %v3470_v11  ;;  %3475 = vtanh.f32 %v1499_v44  ;;  %v5635_v44 = vld [vmem:[%s6863_s5 + $0xa8] sm:$0xff]  ;;  %v5640_v11 = vld [vmem:[%s6863_s5 + $0xb0] sm:$0xff] }
 0x472   :  { %v1496_v36 = vmul.f32 0.5, %v3472_v38  ;;  %v5648_v38 = vld [vmem:[%s6863_s5 + $0xb8] sm:$0xff] }
 0x473   :  { %v1493_v54 = vadd.f32 0.5, %v1492_v37  ;;  %v5654_v37 = vld [vmem:[%s6863_s5 + $0x80] sm:$0xff] }
 0x474   :  { %v1497_v35 = vadd.f32 0.5, %v1496_v36  ;;  %v5659_v36 = vld [vmem:[%s6863_s5 + $0x88] sm:$0xff] }
 0x475   :  { %v3474_v49 = vpop.eup %3473 }
 0x476   :  { %v1503_v14 = vmul.f32 %v1497_v35, %v5081_v45  ;;  %v1504_v10 = vmul.f32 %v3474_v49, %v1493_v54  ;;  %v7135_v45 = vld [vmem:[#allocation28_spill] sm:$0xff]  ;;  %v5664_v54 = vld [vmem:[%s6863_s5 + $0x90] sm:$0xff]  ;;  %v5672_v35 = vld [vmem:[%s6863_s5 + $0x98] sm:$0xff] }
 0x477   :  { %v3476_v8 = vpop.eup %3475  ;;  %7138 = vst [vmem:[#allocation4_spill] sm:$0xff] %v5672_v35  ;;  %v5678_v49 = vld [vmem:[%s6863_s5 + $0x60] sm:$0xff] }
 0x478   :  { %v5351_v12 = vadd.f32 %v1504_v10, %v1503_v14  ;;  %v1501_v39 = vmul.f32 0.5, %v3476_v8  ;;  %7139 = vst [vmem:[#allocation5_spill] sm:$0xff] %v5678_v49  ;;  %v5683_v14 = vld [vmem:[%s6863_s5 + $0x68] sm:$0xff]  ;;  %v5688_v10 = vld [vmem:[%s6863_s5 + $0x70] sm:$0xff]  ;;  %v7142_v8 = vld [vmem:[#allocation20_spill] sm:$0xff] }
 0x479   :  { %7140 = vst [vmem:[#allocation6_spill] sm:$0xff] %v5683_v14 }
 0x47a   :  { %3477 = vtanh.f32 %v5351_v12  ;;  %v1502_v50 = vadd.f32 0.5, %v1501_v39  ;;  %7141 = vst [vmem:[#allocation27_spill] sm:$0xff] %v5688_v10  ;;  %v127_v39 = vadd.f32 %v7142_v8, %v7120_v52  ;;  %v5710_v52 = vld [vmem:[%s6863_s5 + $0x50] sm:$0xff]  ;;  %v5721_v8 = vld [vmem:[%s6863_s5 + $0x20] sm:$0xff] }
 0x47b   :  { %7146 = vst [vmem:[#allocation30_spill] sm:$0xff] %v5710_v52 }
 0x47c   :  { %7147 = vst [vmem:[#allocation31_spill] sm:$0xff] %v5721_v8 }
 0x480   :  { %v3478_v13 = vpop.eup %3477 }
 0x481   :  { %v5354_v51 = vmul.f32 %v3478_v13, %v1502_v50  ;;  %v7143_v50 = vld [vmem:[#allocation21_spill] sm:$0xff] }
 0x482   :  { %v168_v13 = vadd.f32 %v7143_v50, %v7122_v57  ;;  %v5726_v50 = vld [vmem:[%s6863_s5 + $0x28] sm:$0xff] }
 0x483   :  { %1597 = vmatmul.f32.vlgmr.msra.gmra.mxu0 %v5354_v51  ;;  %1617 = vmatmul.f32.vlgmr.msra.gmra.mxu1 %v5354_v51  ;;  %7148 = vst [vmem:[#allocation32_spill] sm:$0xff] %v5726_v50 }
 0x484   :  { %1637 = vmatmul.f32.vlgmr.msra.gmra.mxu2 %v5354_v51  ;;  %1657 = vmatmul.f32.vlgmr.msra.gmra.mxu3 %v5354_v51 }
 0x485   :  { %2037 = vmatpush.msra.mxu0 %v5375_v59  ;;  %2057 = vmatpush.msra.mxu1 %v5380_v61 }
 0x486   :  { %2077 = vmatpush.msra.mxu2 %v5385_v62  ;;  %2097 = vmatpush.msra.mxu3 %v5408_v2 }
 0x487   :  { %2038 = vmatpush.msra.mxu0 %v5392_v63  ;;  %2058 = vmatpush.msra.mxu1 %v5397_v0 }
 0x488   :  { %2078 = vmatpush.msra.mxu2 %v5402_v1  ;;  %2098 = vmatpush.msra.mxu3 %v5430_v7 }
 0x489   :  { %2039 = vmatpush.msra.mxu0 %v5413_v4  ;;  %2059 = vmatpush.msra.mxu1 %v5418_v5 }
 0x48a   :  { %2079 = vmatpush.msra.mxu2 %v5425_v6  ;;  %2099 = vmatpush.msra.mxu3 %v5458_v16 }
 0x48b   :  { %1785 = vmatmul.f32.vlgmr.msrb.gmra.mxu0 %v7135_v45  ;;  %1826 = vmatmul.f32.vlgmr.msrb.gmra.mxu1 %v7135_v45 }
 0x48c   :  { %1867 = vmatmul.f32.vlgmr.msrb.gmra.mxu2 %v7135_v45  ;;  %1908 = vmatmul.f32.vlgmr.msrb.gmra.mxu3 %v7135_v45  ;;  %v5705_v45 = vld [vmem:[%s6863_s5 + $0x48] sm:$0xff] }
 0x48d   :  { %2040 = vmatpush.msra.mxu0 %v5441_v34  ;;  %2060 = vmatpush.msra.mxu1 %v5446_v15  ;;  %7145 = vst [vmem:[#allocation51_spill] sm:$0xff] %v5705_v45 }
 0x48e   :  { %2080 = vmatpush.msra.mxu2 %v5453_v47 }
 0x48f   :  { %2041 = vmatpush.msra.mxu0 %v5465_v21  ;;  %2061 = vmatpush.msra.mxu1 %v5470_v9 }
 0x490   :  { %2081 = vmatpush.msra.mxu2 %v5477_v23 }
 0x491   :  { %2042 = vmatpush.msra.mxu0 %v5489_v24  ;;  %2062 = vmatpush.msra.mxu1 %v5494_v26 }
 0x492   :  { %2082 = vmatpush.msra.mxu2 %v5501_v19 }
 0x493   :  { %1788 = vmatmul.f32.gmra.mxu0 %v7136_v55  ;;  %1829 = vmatmul.f32.gmra.mxu1 %v7136_v55 }
 0x494   :  { %1870 = vmatmul.f32.gmra.mxu2 %v7136_v55  ;;  %1911 = vmatmul.f32.gmra.mxu3 %v7136_v55 }
 0x495   :  { %2043 = vmatpush.msra.mxu0 %v5517_v27  ;;  %2063 = vmatpush.msra.mxu1 %v5522_v43 }
 0x496   :  { %2083 = vmatpush.msra.mxu2 %v5529_v53 }
 0x497   :  { %2064 = vmatpush.msra.mxu1 %v5558_v17 }
 0x499   :  { %2065 = vmatpush.msra.mxu1 %v5580_v60 }
 0x49b   :  { %1791 = vmatmul.f32.gmra.mxu0 %v7137_v56  ;;  %1832 = vmatmul.f32.gmra.mxu1 %v7137_v56 }
 0x49c   :  { %1873 = vmatmul.f32.gmra.mxu2 %v7137_v56  ;;  %1914 = vmatmul.f32.gmra.mxu3 %v7137_v56  ;;  %v5716_v56 = vld [vmem:[%s6863_s5 + $0x78] sm:$0xff] }
 0x49d   :  { %2066 = vmatpush.msra.mxu1 %v5612_v48 }
 0x49f   :  { %2067 = vmatpush.msra.mxu1 %v5635_v44 }
 0x4a1   :  { %2068 = vmatpush.msra.mxu1 %v5659_v36 }
 0x4a3   :  { %1794 = vmatmul.f32.gmra.mxu0 %v4852_v22  ;;  %1835 = vmatmul.f32.gmra.mxu1 %v4852_v22 }
 0x4a4   :  { %1876 = vmatmul.f32.gmra.mxu2 %v4852_v22  ;;  %1917 = vmatmul.f32.gmra.mxu3 %v4852_v22  ;;  %v5482_v22 = vld [vmem:[%s6863_s5 + $0x198] sm:$0xff] }
 0x4a5   :  { %2100 = vmatpush.msra.mxu3 %v5482_v22  ;;  %2069 = vmatpush.msra.mxu1 %v5683_v14 }
 0x4a7   :  { %2101 = vmatpush.msra.mxu3 %v5506_v28  ;;  %2070 = vmatpush.msra.mxu1 %v5705_v45  ;;  %v5762_v45 = vld [vmem:[%s6863_s5 + $0x38] sm:$0xff] }
 0x4a9   :  { %2102 = vmatpush.msra.mxu3 %v5534_v42  ;;  %2071 = vmatpush.msra.mxu1 %v5726_v50 }
 0x4ab   :  { %1797 = vmatmul.f32.gmra.mxu0 %v4934_v20  ;;  %1838 = vmatmul.f32.gmra.mxu1 %v4934_v20 }
 0x4ac   :  { %1879 = vmatmul.f32.gmra.mxu2 %v4934_v20  ;;  %1920 = vmatmul.f32.gmra.mxu3 %v4934_v20  ;;  %v5553_v20 = vld [vmem:[%s6863_s5 + $0x100] sm:$0xff] }
 0x4ad   :  { %2044 = vmatpush.msra.mxu0 %v5553_v20  ;;  %2103 = vmatpush.msra.mxu3 %v5570_v18 }
 0x4af   :  { %2045 = vmatpush.msra.mxu0 %v5575_v29  ;;  %2104 = vmatpush.msra.mxu3 %v5594_v31 }
 0x4b1   :  { %2105 = vmatpush.msra.mxu3 %v5601_v32  ;;  %2046 = vmatpush.msra.mxu0 %v5607_v33 }
 0x4b3   :  { %1800 = vmatmul.f32.gmra.mxu0 %v5108_v58  ;;  %1841 = vmatmul.f32.gmra.mxu1 %v5108_v58 }
 0x4b4   :  { %1882 = vmatmul.f32.gmra.mxu2 %v5108_v58  ;;  %1923 = vmatmul.f32.gmra.mxu3 %v5108_v58  ;;  %v5563_v58 = vld [vmem:[%s6863_s5 + $0x110] sm:$0xff] }
 0x4b5   :  { %2084 = vmatpush.msra.mxu2 %v5563_v58  ;;  %2106 = vmatpush.msra.mxu3 %v5624_v41 }
 0x4b6   :  { %2047 = vmatpush.msra.mxu0 %v5630_v40 }
 0x4b7   :  { %2085 = vmatpush.msra.mxu2 %v5587_v25  ;;  %2107 = vmatpush.msra.mxu3 %v5648_v38 }
 0x4b8   :  { %2048 = vmatpush.msra.mxu0 %v5654_v37 }
 0x4b9   :  { %2086 = vmatpush.msra.mxu2 %v5617_v46  ;;  %2108 = vmatpush.msra.mxu3 %v5672_v35  ;;  %v5738_v35 = vld [vmem:[%s6863_s5 + $0x58] sm:$0xff] }
 0x4ba   :  { %2049 = vmatpush.msra.mxu0 %v5678_v49 }
 0x4bb   :  { %1803 = vmatmul.f32.gmra.mxu0 %v5354_v51  ;;  %1844 = vmatmul.f32.gmra.mxu1 %v5354_v51 }
 0x4bc   :  { %1885 = vmatmul.f32.gmra.mxu2 %v5354_v51  ;;  %1926 = vmatmul.f32.gmra.mxu3 %v5354_v51  ;;  %v5700_v51 = vld [vmem:[%s6863_s5 + $0x40] sm:$0xff] }
 0x4bd   :  { %2087 = vmatpush.msra.mxu2 %v5640_v11  ;;  %7144 = vst [vmem:[#allocation7_spill] sm:$0xff] %v5700_v51  ;;  %2050 = vmatpush.msra.mxu0 %v5700_v51 }
 0x4be   :  { %2109 = vmatpush.msra.mxu3 %v5716_v56 }
 0x4bf   :  { %2088 = vmatpush.msra.mxu2 %v5664_v54  ;;  %2051 = vmatpush.msra.mxu0 %v5721_v8  ;;  %v7153_v8 = vld [vmem:[#allocation25_spill] sm:$0xff] }
 0x4c0   :  { %2110 = vmatpush.msra.mxu3 %v5738_v35  ;;  %v250_v51 = vadd.f32 %v7153_v8, %v7096_v30 }
 0x4c1   :  { %2089 = vmatpush.msra.mxu2 %v5688_v10  ;;  %v5733_v10 = vld [vmem:[%s6863_s5 + $0x30] sm:$0xff] }
 0x4c2   :  { %7149 = vst [vmem:[#allocation33_spill] sm:$0xff] %v5733_v10  ;;  %2111 = vmatpush.msra.mxu3 %v5762_v45 }
 0x4c3   :  { %2090 = vmatpush.msra.mxu2 %v5710_v52  ;;  %v5757_v52 = vld [vmem:[%s6863_s5 + $0x10] sm:$0xff] }
 0x4c5   :  { %2091 = vmatpush.msra.mxu2 %v5733_v10 }
 0x4c7   :  { %2092 = vmatpush.msra.mxu2 %v5757_v52 }
 0x4c9   :  { %2248 = vmatpush.msrb.mxu2 %v5385_v62 }
 0x4cb   :  { %2249 = vmatpush.msrb.mxu2 %v5402_v1 }
 0x4cd   :  { %2250 = vmatpush.msrb.mxu2 %v5425_v6 }
 0x4cf   :  { %2251 = vmatpush.msrb.mxu2 %v5453_v47 }
 0x4d1   :  { %2252 = vmatpush.msrb.mxu2 %v5477_v23 }
 0x4d3   :  { %2253 = vmatpush.msrb.mxu2 %v5501_v19 }
 0x4d5   :  { %2254 = vmatpush.msrb.mxu2 %v5529_v53 }
 0x4d7   :  { %2255 = vmatpush.msrb.mxu2 %v5563_v58 }
 0x4d9   :  { %2256 = vmatpush.msrb.mxu2 %v5587_v25 }
 0x4db   :  { %2257 = vmatpush.msrb.mxu2 %v5617_v46 }
 0x4dd   :  { %2258 = vmatpush.msrb.mxu2 %v5640_v11 }
 0x4df   :  { %2259 = vmatpush.msrb.mxu2 %v5664_v54 }
 0x500   :  { %v1598_v57 = vpop.f32.mrf.mxu0  ;;  %v1618_v55 = vpop.f32.mrf.mxu1 }
 0x501   :  { %v1661_v14 = vadd.f32 %v1598_v57, %v127_v39  ;;  %v1662_v49 = vadd.f32 %v1618_v55, %v168_v13  ;;  %v5745_v39 = vld [vmem:[%s6863_s5] sm:$0xff]  ;;  %v5750_v13 = vld [vmem:[%s6863_s5 + $0x8] sm:$0xff] }
 0x502   :  { %7150 = vst [vmem:[#allocation34_spill] sm:$0xff] %v5745_v39  ;;  %2052 = vmatpush.msra.mxu0 %v5745_v39  ;;  %2072 = vmatpush.msra.mxu1 %v5750_v13 }
 0x503   :  { %7151 = vst [vmem:[#allocation35_spill] sm:$0xff] %v5750_v13  ;;  %v1665_v57 = vmul.f32 0.5, %v1661_v14  ;;  %v1669_v55 = vmul.f32 0.5, %v1662_v49  ;;  %v5771_v49 = vld [vmem:[%s6863_s5 + $0x18] sm:$0xff]  ;;  %v7152_v14 = vld [vmem:[#allocation24_spill] sm:$0xff] }
 0x504   :  { %v209_v50 = vadd.f32 %v7152_v14, %v7124_v3  ;;  %2208 = vmatpush.msrb.mxu0 %v5375_v59  ;;  %2228 = vmatpush.msrb.mxu1 %v5380_v61 }
 0x505   :  { %3479 = vtanh.f32 %v1665_v57  ;;  %2112 = vmatpush.msra.mxu3 %v5771_v49 }
 0x506   :  { %3481 = vtanh.f32 %v1669_v55  ;;  %2209 = vmatpush.msrb.mxu0 %v5392_v63  ;;  %2229 = vmatpush.msrb.mxu1 %v5397_v0 }
 0x507   :  { %v1638_v57 = vpop.f32.mrf.mxu2  ;;  %v1658_v39 = vpop.f32.mrf.mxu3  ;;  %2268 = vmatpush.msrb.mxu3 %v5408_v2 }
 0x508   :  { %v1663_v13 = vadd.f32 %v1638_v57, %v209_v50  ;;  %v1664_v10 = vadd.f32 %v1658_v39, %v250_v51  ;;  %2210 = vmatpush.msrb.mxu0 %v5413_v4  ;;  %2230 = vmatpush.msrb.mxu1 %v5418_v5 }
 0x509   :  { %2269 = vmatpush.msrb.mxu3 %v5430_v7 }
 0x50a   :  { %3483 = vtanh.f32 %v1663_v13  ;;  %v1674_v30 = vmul.f32 0.5, %v1664_v10  ;;  %2211 = vmatpush.msrb.mxu0 %v5441_v34  ;;  %2231 = vmatpush.msrb.mxu1 %v5446_v15 }
 0x50b   :  { %v3480_v3 = vpop.eup %3479  ;;  %2270 = vmatpush.msrb.mxu3 %v5458_v16 }
 0x50c   :  { %v3482_v51 = vpop.eup %3481  ;;  %v1667_v8 = vmul.f32 0.5, %v3480_v3  ;;  %3485 = vtanh.f32 %v1674_v30  ;;  %2212 = vmatpush.msrb.mxu0 %v5465_v21  ;;  %2232 = vmatpush.msrb.mxu1 %v5470_v9 }
 0x50d   :  { %v1671_v50 = vmul.f32 0.5, %v3482_v51  ;;  %2271 = vmatpush.msrb.mxu3 %v5482_v22 }
 0x50e   :  { %v1668_v10 = vadd.f32 0.5, %v1667_v8  ;;  %2213 = vmatpush.msrb.mxu0 %v5489_v24  ;;  %2233 = vmatpush.msrb.mxu1 %v5494_v26 }
 0x50f   :  { %v1672_v39 = vadd.f32 0.5, %v1671_v50  ;;  %2272 = vmatpush.msrb.mxu3 %v5506_v28  ;;  %v7154_v50 = vld [vmem:[#allocation4_spill] sm:$0xff] }
 0x510   :  { %v3484_v13 = vpop.eup %3483  ;;  %2214 = vmatpush.msrb.mxu0 %v5517_v27  ;;  %2234 = vmatpush.msrb.mxu1 %v5522_v43 }
 0x511   :  { %v1678_v55 = vmul.f32 %v1672_v39, %v5351_v12  ;;  %v1679_v14 = vmul.f32 %v3484_v13, %v1668_v10  ;;  %2273 = vmatpush.msrb.mxu3 %v5534_v42  ;;  %v7155_v10 = vld [vmem:[#allocation5_spill] sm:$0xff]  ;;  %v7156_v39 = vld [vmem:[#allocation6_spill] sm:$0xff]  ;;  %v7157_v13 = vld [vmem:[#allocation27_spill] sm:$0xff] }
 0x512   :  { %v3486_v57 = vpop.eup %3485  ;;  %2215 = vmatpush.msrb.mxu0 %v5553_v20  ;;  %2235 = vmatpush.msrb.mxu1 %v5558_v17 }
 0x513   :  { %v1680_v30 = vadd.f32 %v1679_v14, %v1678_v55  ;;  %2274 = vmatpush.msrb.mxu3 %v5570_v18  ;;  %v1676_v12 = vmul.f32 0.5, %v3486_v57  ;;  %2260 = vmatpush.msrb.mxu2 %v7157_v13  ;;  %v7158_v55 = vld [vmem:[#allocation7_spill] sm:$0xff]  ;;  %v7160_v57 = vld [vmem:[#allocation30_spill] sm:$0xff] }
 0x514   :  { %2216 = vmatpush.msrb.mxu0 %v5575_v29  ;;  %2236 = vmatpush.msrb.mxu1 %v5580_v60  ;;  %v7159_v14 = vld [vmem:[#allocation51_spill] sm:$0xff] }
 0x515   :  { %3487 = vtanh.f32 %v1680_v30  ;;  %1686 = vst [vmem:[%s6864_s9] sm:$0xff] %v1680_v30  ;;  %2275 = vmatpush.msrb.mxu3 %v5594_v31  ;;  %v1677_v3 = vadd.f32 0.5, %v1676_v12  ;;  %2261 = vmatpush.msrb.mxu2 %v7160_v57  ;;  %v7161_v30 = vmov 0.0   ;;  %v7162_v12 = vld [vmem:[#allocation31_spill] sm:$0xff] }
 0x516   :  { %2217 = vmatpush.msrb.mxu0 %v5607_v33  ;;  %2237 = vmatpush.msrb.mxu1 %v5612_v48  ;;  %v7166_v57 = vld [vmem:[#allocation35_spill] sm:$0xff] }
 0x517   :  { %2276 = vmatpush.msrb.mxu3 %v5601_v32 }
 0x518   :  { %2218 = vmatpush.msrb.mxu0 %v5630_v40  ;;  %2238 = vmatpush.msrb.mxu1 %v5635_v44 }
 0x519   :  { %2277 = vmatpush.msrb.mxu3 %v5624_v41 }
 0x51a   :  { %2219 = vmatpush.msrb.mxu0 %v5654_v37  ;;  %2239 = vmatpush.msrb.mxu1 %v5659_v36 }
 0x51b   :  { %v3488_v51 = vpop.eup %3487  ;;  %2278 = vmatpush.msrb.mxu3 %v5648_v38 }
 0x51c   :  { %v1682_v8 = vmul.f32 %v3488_v51, %v1677_v3  ;;  %2220 = vmatpush.msrb.mxu0 %v7155_v10  ;;  %2240 = vmatpush.msrb.mxu1 %v7156_v39  ;;  %v7163_v3 = vld [vmem:[#allocation32_spill] sm:$0xff]  ;;  %v7164_v51 = vld [vmem:[#allocation33_spill] sm:$0xff] }
 0x51d   :  { %2279 = vmatpush.msrb.mxu3 %v7154_v50  ;;  %2262 = vmatpush.msrb.mxu2 %v7164_v51 }
 0x51e   :  { %1685 = vst [vmem:[%s6865_s8] sm:$0xff] %v1682_v8  ;;  %1806 = vmatmul.f32.gmra.mxu0 %v1682_v8  ;;  %1847 = vmatmul.f32.gmra.mxu1 %v1682_v8 }
 0x51f   :  { %1888 = vmatmul.f32.gmra.mxu2 %v1682_v8  ;;  %1929 = vmatmul.f32.gmra.mxu3 %v1682_v8  ;;  %v7165_v8 = vld [vmem:[#allocation34_spill] sm:$0xff] }
 0x520   :  { %2280 = vmatpush.msrb.mxu3 %v5716_v56  ;;  %2221 = vmatpush.msrb.mxu0 %v7158_v55 }
 0x521   :  { %2241 = vmatpush.msrb.mxu1 %v7159_v14  ;;  %2263 = vmatpush.msrb.mxu2 %v5757_v52 }
 0x522   :  { %2281 = vmatpush.msrb.mxu3 %v5738_v35  ;;  %2222 = vmatpush.msrb.mxu0 %v7162_v12 }
 0x523   :  { %2242 = vmatpush.msrb.mxu1 %v7163_v3 }
 0x524   :  { %2282 = vmatpush.msrb.mxu3 %v5762_v45  ;;  %2223 = vmatpush.msrb.mxu0 %v7165_v8 }
 0x525   :  { %2243 = vmatpush.msrb.mxu1 %v7166_v57 }
 0x526   :  { %2053 = vmatmul.f32.vlgmr.msra.gmra.mxu0 %v7161_v30  ;;  %2073 = vmatmul.f32.vlgmr.msra.gmra.mxu1 %v7161_v30 }
 0x527   :  { %2093 = vmatmul.f32.vlgmr.msra.gmra.mxu2 %v7161_v30  ;;  %2113 = vmatmul.f32.vlgmr.msra.gmra.mxu3 %v7161_v30 }
 0x528   :  { %2283 = vmatpush.msrb.mxu3 %v5771_v49  ;;  %2380 = vmatpush.msra.mxu0 %v5375_v59  ;;  %v7167_v59 = vld [vmem:[#allocation30_spill] sm:$0xff] }
 0x529   :  { %2400 = vmatpush.msra.mxu1 %v5380_v61  ;;  %2420 = vmatpush.msra.mxu2 %v5385_v62  ;;  %v1786_v61 = vpop.f32.mrf.mxu0  ;;  %v1827_v62 = vpop.f32.mrf.mxu1 }
 0x52a   :  { %2440 = vmatpush.msra.mxu3 %v5408_v2  ;;  %2381 = vmatpush.msra.mxu0 %v5392_v63  ;;  %v1868_v63 = vpop.f32.mrf.mxu2 }
 0x52b   :  { %2401 = vmatpush.msra.mxu1 %v5397_v0  ;;  %2421 = vmatpush.msra.mxu2 %v5402_v1  ;;  %v1909_v0 = vpop.f32.mrf.mxu3 }
 0x52c   :  { %2441 = vmatpush.msra.mxu3 %v5430_v7  ;;  %2382 = vmatpush.msra.mxu0 %v5413_v4 }
 0x52d   :  { %2402 = vmatpush.msra.mxu1 %v5418_v5  ;;  %2422 = vmatpush.msra.mxu2 %v5425_v6 }
 0x52e   :  { %2442 = vmatpush.msra.mxu3 %v5458_v16  ;;  %2383 = vmatpush.msra.mxu0 %v5441_v34 }
 0x52f   :  { %2403 = vmatpush.msra.mxu1 %v5446_v15  ;;  %2423 = vmatpush.msra.mxu2 %v5453_v47 }
 0x530   :  { %2443 = vmatpush.msra.mxu3 %v5482_v22  ;;  %2384 = vmatpush.msra.mxu0 %v5465_v21 }
 0x531   :  { %2404 = vmatpush.msra.mxu1 %v5470_v9  ;;  %2424 = vmatpush.msra.mxu2 %v5477_v23  ;;  %v5919_v1 = vpop.f32.mrf.mxu0  ;;  %v5921_v2 = vpop.f32.mrf.mxu1 }
 0x532   :  { %2444 = vmatpush.msra.mxu3 %v5506_v28  ;;  %2385 = vmatpush.msra.mxu0 %v5489_v24  ;;  %v5923_v4 = vpop.f32.mrf.mxu2 }
 0x533   :  { %2405 = vmatpush.msra.mxu1 %v5494_v26  ;;  %2425 = vmatpush.msra.mxu2 %v5501_v19  ;;  %v5925_v5 = vpop.f32.mrf.mxu3 }
 0x534   :  { %2445 = vmatpush.msra.mxu3 %v5534_v42  ;;  %2386 = vmatpush.msra.mxu0 %v5517_v27 }
 0x535   :  { %2406 = vmatpush.msra.mxu1 %v5522_v43  ;;  %2426 = vmatpush.msra.mxu2 %v5529_v53 }
 0x536   :  { %2446 = vmatpush.msra.mxu3 %v5570_v18  ;;  %2387 = vmatpush.msra.mxu0 %v5553_v20 }
 0x537   :  { %2407 = vmatpush.msra.mxu1 %v5558_v17  ;;  %2427 = vmatpush.msra.mxu2 %v5563_v58  ;;  %v1759_v58 = vld [vmem:[%s6866_s6] sm:$0xf] }
 0x538   :  { %2447 = vmatpush.msra.mxu3 %v5594_v31  ;;  %2388 = vmatpush.msra.mxu0 %v5575_v29 }
 0x539   :  { %2408 = vmatpush.msra.mxu1 %v5580_v60  ;;  %2428 = vmatpush.msra.mxu2 %v5587_v25  ;;  %v5927_v6 = vpop.f32.mrf.mxu0  ;;  %v5929_v7 = vpop.f32.mrf.mxu1  ;;  %v5974_v60 = vperm.slane %v1759_v58, 0  ;;  %v5976_v25 = vperm.slane %v1759_v58, 1 }
 0x53a   :  { %2448 = vmatpush.msra.mxu3 %v5601_v32  ;;  %2389 = vmatpush.msra.mxu0 %v5607_v33  ;;  %v5931_v34 = vpop.f32.mrf.mxu2 }
 0x53b   :  { %2409 = vmatpush.msra.mxu1 %v5612_v48  ;;  %2429 = vmatpush.msra.mxu2 %v5617_v46  ;;  %v5933_v15 = vpop.f32.mrf.mxu3  ;;  %7186 = vst [vmem:[#allocation9_spill] sm:$0xff] %v5974_v60  ;;  %v1787_v31 = vadd.f32 %v1786_v61, %v5974_v60  ;;  %v1828_v32 = vadd.f32 %v1827_v62, %v5976_v25 }
 0x53c   :  { %2449 = vmatpush.msra.mxu3 %v5624_v41  ;;  %2390 = vmatpush.msra.mxu0 %v5630_v40  ;;  %7187 = vst [vmem:[#allocation26_spill] sm:$0xff] %v5976_v25 }
 0x53d   :  { %2410 = vmatpush.msra.mxu1 %v5635_v44  ;;  %2430 = vmatpush.msra.mxu2 %v5640_v11  ;;  %v5984_v11 = vperm.slane %v1759_v58, 2 }
 0x53e   :  { %2450 = vmatpush.msra.mxu3 %v5648_v38  ;;  %2391 = vmatpush.msra.mxu0 %v5654_v37  ;;  %v5986_v38 = vperm.slane %v1759_v58, 3  ;;  %v1790_v58 = vadd.f32 %v5919_v1, %v5974_v60 }
 0x53f   :  { %2411 = vmatpush.msra.mxu1 %v5659_v36  ;;  %2431 = vmatpush.msra.mxu2 %v5664_v54  ;;  %7190 = vst [vmem:[#allocation12_spill] sm:$0xff] %v5984_v11  ;;  %v1869_v54 = vadd.f32 %v1868_v63, %v5984_v11 }
 0x540   :  { %2451 = vmatpush.msra.mxu3 %v7154_v50  ;;  %2392 = vmatpush.msra.mxu0 %v7155_v10  ;;  %7191 = vst [vmem:[#allocation13_spill] sm:$0xff] %v5986_v38 }
 0x541   :  { %2412 = vmatpush.msra.mxu1 %v7156_v39  ;;  %2432 = vmatpush.msra.mxu2 %v7157_v13  ;;  %v5935_v47 = vpop.f32.mrf.mxu0  ;;  %v5937_v16 = vpop.f32.mrf.mxu1 }
 0x542   :  { %2452 = vmatpush.msra.mxu3 %v5716_v56  ;;  %2393 = vmatpush.msra.mxu0 %v7158_v55  ;;  %7168 = vst [vmem:[#allocation36_spill] sm:$0xff] %v5935_v47  ;;  %v5939_v21 = vpop.f32.mrf.mxu2  ;;  %v6327_v47 = vld [vmem:[%s6863_s5 + $0x48] sm:$0xff] }
 0x543   :  { %2413 = vmatpush.msra.mxu1 %v7159_v14  ;;  %2433 = vmatpush.msra.mxu2 %v7167_v59  ;;  %7169 = vst [vmem:[#allocation37_spill] sm:$0xff] %v5937_v16  ;;  %v5941_v9 = vpop.f32.mrf.mxu3  ;;  %v6322_v16 = vld [vmem:[%s6863_s5 + $0x40] sm:$0xff] }
 0x544   :  { %2453 = vmatpush.msra.mxu3 %v5738_v35  ;;  %2394 = vmatpush.msra.mxu0 %v7162_v12  ;;  %7170 = vst [vmem:[#allocation38_spill] sm:$0xff] %v5939_v21  ;;  %v1910_v35 = vadd.f32 %v1909_v0, %v5986_v38  ;;  %v6315_v21 = vld [vmem:[%s6863_s5 + $0x78] sm:$0xff] }
 0x545   :  { %2414 = vmatpush.msra.mxu1 %v7163_v3  ;;  %2434 = vmatpush.msra.mxu2 %v7164_v51  ;;  %7171 = vst [vmem:[#allocation39_spill] sm:$0xff] %v5941_v9  ;;  %v6308_v9 = vld [vmem:[%s6863_s5 + $0x70] sm:$0xff] }
 0x546   :  { %2454 = vmatpush.msra.mxu3 %v5762_v45  ;;  %2395 = vmatpush.msra.mxu0 %v7165_v8  ;;  %7199 = vst [vmem:[#allocation29_spill] sm:$0xff] %v6308_v9 }
 0x547   :  { %2415 = vmatpush.msra.mxu1 %v7166_v57  ;;  %2435 = vmatpush.msra.mxu2 %v5757_v52  ;;  %7200 = vst [vmem:[#allocation52_spill] sm:$0xff] %v6315_v21 }
 0x548   :  { %2455 = vmatpush.msra.mxu3 %v5771_v49  ;;  %7201 = vst [vmem:[#allocation20_spill] sm:$0xff] %v6322_v16 }
 0x549   :  { %v5943_v23 = vpop.f32.mrf.mxu0  ;;  %v5945_v22 = vpop.f32.mrf.mxu1  ;;  %7202 = vst [vmem:[#allocation21_spill] sm:$0xff] %v6327_v47 }
 0x54a   :  { %7172 = vst [vmem:[#allocation40_spill] sm:$0xff] %v5943_v23  ;;  %v5947_v24 = vpop.f32.mrf.mxu2  ;;  %v6303_v23 = vld [vmem:[%s6863_s5 + $0x68] sm:$0xff] }
 0x54b   :  { %7173 = vst [vmem:[#allocation41_spill] sm:$0xff] %v5945_v22  ;;  %v5949_v26 = vpop.f32.mrf.mxu3  ;;  %v6298_v22 = vld [vmem:[%s6863_s5 + $0x60] sm:$0xff] }
 0x54c   :  { %7174 = vst [vmem:[#allocation42_spill] sm:$0xff] %v5947_v24  ;;  %v6291_v24 = vld [vmem:[%s6863_s5 + $0x98] sm:$0xff] }
 0x54d   :  { %7175 = vst [vmem:[#allocation43_spill] sm:$0xff] %v5949_v26  ;;  %v6284_v26 = vld [vmem:[%s6863_s5 + $0x90] sm:$0xff] }
 0x54e   :  { %7196 = vst [vmem:[#allocation18_spill] sm:$0xff] %v6291_v24 }
 0x54f   :  { %7197 = vst [vmem:[#allocation19_spill] sm:$0xff] %v6298_v22 }
 0x550   :  { %7198 = vst [vmem:[#allocation28_spill] sm:$0xff] %v6303_v23 }
 0x551   :  { %v5951_v19 = vpop.f32.mrf.mxu0  ;;  %v5953_v28 = vpop.f32.mrf.mxu1 }
 0x552   :  { %7176 = vst [vmem:[#allocation44_spill] sm:$0xff] %v5951_v19  ;;  %v5955_v27 = vpop.f32.mrf.mxu2  ;;  %v6279_v19 = vld [vmem:[%s6863_s5 + $0x88] sm:$0xff] }
 0x553   :  { %7177 = vst [vmem:[#allocation45_spill] sm:$0xff] %v5953_v28  ;;  %v5957_v43 = vpop.f32.mrf.mxu3  ;;  %v6274_v28 = vld [vmem:[%s6863_s5 + $0x80] sm:$0xff] }
 0x554   :  { %7178 = vst [vmem:[#allocation46_spill] sm:$0xff] %v5955_v27  ;;  %v6267_v27 = vld [vmem:[%s6863_s5 + $0xb8] sm:$0xff] }
 0x555   :  { %7179 = vst [vmem:[#allocation47_spill] sm:$0xff] %v5957_v43  ;;  %v6260_v43 = vld [vmem:[%s6863_s5 + $0xb0] sm:$0xff] }
 0x556   :  { %7195 = vst [vmem:[#allocation17_spill] sm:$0xff] %v6267_v27 }
 0x559   :  { %v5959_v53 = vpop.f32.mrf.mxu0  ;;  %v5961_v42 = vpop.f32.mrf.mxu1 }
 0x55a   :  { %7180 = vst [vmem:[#allocation48_spill] sm:$0xff] %v5959_v53  ;;  %v5963_v20 = vpop.f32.mrf.mxu2  ;;  %v6255_v53 = vld [vmem:[%s6863_s5 + $0xa8] sm:$0xff] }
 0x55b   :  { %7181 = vst [vmem:[#allocation49_spill] sm:$0xff] %v5961_v42  ;;  %v5965_v17 = vpop.f32.mrf.mxu3  ;;  %v6250_v42 = vld [vmem:[%s6863_s5 + $0xa0] sm:$0xff] }
 0x55c   :  { %7182 = vst [vmem:[#allocation50_spill] sm:$0xff] %v5963_v20  ;;  %v6243_v20 = vld [vmem:[%s6863_s5 + $0xd8] sm:$0xff] }
 0x55d   :  { %7183 = vst [vmem:[#allocation22_spill] sm:$0xff] %v5965_v17  ;;  %v6236_v17 = vld [vmem:[%s6863_s5 + $0xd0] sm:$0xff] }
 0x55e   :  { %7194 = vst [vmem:[#allocation16_spill] sm:$0xff] %v6243_v20 }
 0x59b   :  { %v5970_v18 = vpop.f32.mrf.mxu0  ;;  %v5972_v29 = vpop.f32.mrf.mxu1 }
 0x59c   :  { %7184 = vst [vmem:[#allocation8_spill] sm:$0xff] %v5970_v18  ;;  %v6231_v18 = vld [vmem:[%s6863_s5 + $0xc8] sm:$0xff] }
 0x59d   :  { %7185 = vst [vmem:[#allocation23_spill] sm:$0xff] %v5972_v29  ;;  %v6226_v29 = vld [vmem:[%s6863_s5 + $0xc0] sm:$0xff] }
 0x5a2   :  { %v5980_v33 = vpop.f32.mrf.mxu2  ;;  %v5982_v48 = vpop.f32.mrf.mxu3 }
 0x5a3   :  { %7188 = vst [vmem:[#allocation10_spill] sm:$0xff] %v5980_v33  ;;  %v2054_v46 = vpop.f32.mrf.mxu0  ;;  %v2074_v41 = vpop.f32.mrf.mxu1  ;;  %v6219_v33 = vld [vmem:[%s6863_s5 + $0xf8] sm:$0xff] }
 0x5a4   :  { %7189 = vst [vmem:[#allocation11_spill] sm:$0xff] %v5982_v48  ;;  %v2117_v40 = vadd.f32 %v2054_v46, %v1787_v31  ;;  %v2118_v44 = vadd.f32 %v2074_v41, %v1828_v32  ;;  %v1831_v31 = vadd.f32 %v5921_v2, %v5976_v25  ;;  %v6000_v32 = vld [vmem:[%s6863_s5 + $0x1e0] sm:$0xff]  ;;  %v6005_v46 = vld [vmem:[%s6863_s5 + $0x1e8] sm:$0xff]  ;;  %v6010_v41 = vld [vmem:[%s6863_s5 + $0x1f0] sm:$0xff] }
 0x5a5   :  { %v6017_v2 = vld [vmem:[%s6863_s5 + $0x1f8] sm:$0xff]  ;;  %v6212_v48 = vld [vmem:[%s6863_s5 + $0xf0] sm:$0xff]  ;;  %7193 = vst [vmem:[#allocation15_spill] sm:$0xff] %v6219_v33 }
 0x5a6   :  { %v2121_v37 = vmul.f32 0.5, %v2117_v40  ;;  %v2125_v36 = vmul.f32 0.5, %v2118_v44 }
 0x5a8   :  { %3489 = vtanh.f32 %v2121_v37 }
 0x5a9   :  { %3491 = vtanh.f32 %v2125_v36 }
 0x5aa   :  { %v2094_v52 = vpop.f32.mrf.mxu2  ;;  %v2114_v56 = vpop.f32.mrf.mxu3 }
 0x5ab   :  { %v2119_v49 = vadd.f32 %v2094_v52, %v1869_v54  ;;  %v2120_v50 = vadd.f32 %v2114_v56, %v1910_v35  ;;  %v1872_v35 = vadd.f32 %v5923_v4, %v5984_v11  ;;  %v1913_v52 = vadd.f32 %v5925_v5, %v5986_v38 }
 0x5ad   :  { %3493 = vtanh.f32 %v2119_v49  ;;  %v2130_v10 = vmul.f32 0.5, %v2120_v50 }
 0x5ae   :  { %v3490_v39 = vpop.eup %3489 }
 0x5af   :  { %v3492_v13 = vpop.eup %3491  ;;  %v2123_v55 = vmul.f32 0.5, %v3490_v39  ;;  %3495 = vtanh.f32 %v2130_v10 }
 0x5b0   :  { %v2127_v14 = vmul.f32 0.5, %v3492_v13 }
 0x5b1   :  { %v2124_v57 = vadd.f32 0.5, %v2123_v55 }
 0x5b2   :  { %v2128_v30 = vadd.f32 0.5, %v2127_v14 }
 0x5b3   :  { %v3494_v12 = vpop.eup %3493 }
 0x5b4   :  { %v2134_v3 = vmul.f32 0.0, %v2128_v30  ;;  %v2135_v51 = vmul.f32 %v3494_v12, %v2124_v57 }
 0x5b5   :  { %v3496_v8 = vpop.eup %3495 }
 0x5b6   :  { %v2136_v59 = vadd.f32 %v2135_v51, %v2134_v3  ;;  %v2132_v61 = vmul.f32 0.5, %v3496_v8 }
 0x5b8   :  { %3497 = vtanh.f32 %v2136_v59  ;;  %v2133_v62 = vadd.f32 0.5, %v2132_v61 }
 0x5be   :  { %v3498_v63 = vpop.eup %3497 }
 0x5bf   :  { %v2138_v0 = vmul.f32 %v3498_v63, %v2133_v62 }
 0x5c1   :  { %2139 = vst [vmem:[%s6867_s7] sm:$0xff] %v2138_v0  ;;  %2224 = vmatmul.f32.vlgmr.msrb.gmra.mxu0 %v2138_v0  ;;  %2244 = vmatmul.f32.vlgmr.msrb.gmra.mxu1 %v2138_v0 }
 0x5c2   :  { %2264 = vmatmul.f32.vlgmr.msrb.gmra.mxu2 %v2138_v0  ;;  %2284 = vmatmul.f32.vlgmr.msrb.gmra.mxu3 %v2138_v0 }
 0x5c3   :  { %2552 = vmatpush.msrb.mxu0 %v6000_v32  ;;  %2572 = vmatpush.msrb.mxu1 %v6005_v46 }
 0x5c4   :  { %2592 = vmatpush.msrb.mxu2 %v6010_v41  ;;  %2612 = vmatpush.msrb.mxu3 %v6017_v2 }
 0x63e   :  { %v2225_v40 = vpop.f32.mrf.mxu0  ;;  %v2245_v1 = vpop.f32.mrf.mxu1 }
 0x63f   :  { %v2288_v44 = vadd.f32 %v2225_v40, %v1790_v58  ;;  %v2289_v37 = vadd.f32 %v2245_v1, %v1831_v31  ;;  %v6039_v58 = vld [vmem:[%s6863_s5 + $0x1c8] sm:$0xff]  ;;  %v6044_v31 = vld [vmem:[%s6863_s5 + $0x1d0] sm:$0xff]  ;;  %v6051_v40 = vld [vmem:[%s6863_s5 + $0x1d8] sm:$0xff] }
 0x640   :  { %2573 = vmatpush.msrb.mxu1 %v6039_v58  ;;  %2593 = vmatpush.msrb.mxu2 %v6044_v31  ;;  %v6058_v1 = vld [vmem:[%s6863_s5 + $0x1a0] sm:$0xff] }
 0x641   :  { %v2292_v36 = vmul.f32 0.5, %v2288_v44  ;;  %v2296_v54 = vmul.f32 0.5, %v2289_v37  ;;  %2613 = vmatpush.msrb.mxu3 %v6051_v40  ;;  %v6063_v44 = vld [vmem:[%s6863_s5 + $0x1a8] sm:$0xff]  ;;  %v6068_v37 = vld [vmem:[%s6863_s5 + $0x1b0] sm:$0xff] }
 0x642   :  { %2574 = vmatpush.msrb.mxu1 %v6063_v44  ;;  %2594 = vmatpush.msrb.mxu2 %v6068_v37 }
 0x643   :  { %3499 = vtanh.f32 %v2292_v36  ;;  %v6075_v36 = vld [vmem:[%s6863_s5 + $0x1b8] sm:$0xff] }
 0x644   :  { %3501 = vtanh.f32 %v2296_v54  ;;  %2614 = vmatpush.msrb.mxu3 %v6075_v36  ;;  %v6082_v54 = vld [vmem:[%s6863_s5 + $0x180] sm:$0xff] }
 0x645   :  { %v2265_v56 = vpop.f32.mrf.mxu2  ;;  %v2285_v49 = vpop.f32.mrf.mxu3 }
 0x646   :  { %v2290_v50 = vadd.f32 %v2265_v56, %v1872_v35  ;;  %v2291_v10 = vadd.f32 %v2285_v49, %v1913_v52  ;;  %v6087_v35 = vld [vmem:[%s6863_s5 + $0x188] sm:$0xff]  ;;  %v6092_v52 = vld [vmem:[%s6863_s5 + $0x190] sm:$0xff]  ;;  %v6099_v56 = vld [vmem:[%s6863_s5 + $0x198] sm:$0xff] }
 0x647   :  { %2575 = vmatpush.msrb.mxu1 %v6087_v35  ;;  %2595 = vmatpush.msrb.mxu2 %v6092_v52  ;;  %v6106_v49 = vld [vmem:[%s6863_s5 + $0x160] sm:$0xff] }
 0x648   :  { %3503 = vtanh.f32 %v2290_v50  ;;  %v2301_v39 = vmul.f32 0.5, %v2291_v10  ;;  %2615 = vmatpush.msrb.mxu3 %v6099_v56  ;;  %v6111_v50 = vld [vmem:[%s6863_s5 + $0x168] sm:$0xff]  ;;  %v6116_v10 = vld [vmem:[%s6863_s5 + $0x170] sm:$0xff] }
 0x649   :  { %v3500_v13 = vpop.eup %3499  ;;  %2576 = vmatpush.msrb.mxu1 %v6111_v50  ;;  %2596 = vmatpush.msrb.mxu2 %v6116_v10 }
 0x64a   :  { %v3502_v55 = vpop.eup %3501  ;;  %v2294_v14 = vmul.f32 0.5, %v3500_v13  ;;  %3505 = vtanh.f32 %v2301_v39  ;;  %v6123_v39 = vld [vmem:[%s6863_s5 + $0x178] sm:$0xff]  ;;  %v6130_v13 = vld [vmem:[%s6863_s5 + $0x140] sm:$0xff] }
 0x64b   :  { %v2298_v57 = vmul.f32 0.5, %v3502_v55  ;;  %2616 = vmatpush.msrb.mxu3 %v6123_v39  ;;  %v6135_v55 = vld [vmem:[%s6863_s5 + $0x148] sm:$0xff] }
 0x64c   :  { %v2295_v30 = vadd.f32 0.5, %v2294_v14  ;;  %v6140_v14 = vld [vmem:[%s6863_s5 + $0x150] sm:$0xff]  ;;  %2577 = vmatpush.msrb.mxu1 %v6135_v55 }
 0x64d   :  { %v2299_v12 = vadd.f32 0.5, %v2298_v57  ;;  %v6147_v57 = vld [vmem:[%s6863_s5 + $0x158] sm:$0xff]  ;;  %2597 = vmatpush.msrb.mxu2 %v6140_v14 }
 0x64e   :  { %v3504_v3 = vpop.eup %3503  ;;  %2617 = vmatpush.msrb.mxu3 %v6147_v57 }
 0x64f   :  { %v2305_v51 = vmul.f32 %v2299_v12, %v2136_v59  ;;  %v2306_v4 = vmul.f32 %v3504_v3, %v2295_v30  ;;  %v6034_v59 = vld [vmem:[%s6863_s5 + $0x1c0] sm:$0xff]  ;;  %v6159_v12 = vld [vmem:[%s6863_s5 + $0x128] sm:$0xff]  ;;  %v6164_v3 = vld [vmem:[%s6863_s5 + $0x130] sm:$0xff] }
 0x650   :  { %v3506_v8 = vpop.eup %3505  ;;  %2553 = vmatpush.msrb.mxu0 %v6034_v59  ;;  %v6154_v30 = vld [vmem:[%s6863_s5 + $0x120] sm:$0xff]  ;;  %2578 = vmatpush.msrb.mxu1 %v6159_v12 }
 0x651   :  { %v6025_v61 = vadd.f32 %v2306_v4, %v2305_v51  ;;  %v2303_v5 = vmul.f32 0.5, %v3506_v8  ;;  %v6171_v51 = vld [vmem:[%s6863_s5 + $0x138] sm:$0xff]  ;;  %2598 = vmatpush.msrb.mxu2 %v6164_v3  ;;  %v6178_v4 = vld [vmem:[%s6863_s5 + $0x100] sm:$0xff]  ;;  %v6183_v8 = vld [vmem:[%s6863_s5 + $0x108] sm:$0xff] }
 0x652   :  { %2554 = vmatpush.msrb.mxu0 %v6058_v1  ;;  %2618 = vmatpush.msrb.mxu3 %v6171_v51 }
 0x653   :  { %3507 = vtanh.f32 %v6025_v61  ;;  %v2304_v62 = vadd.f32 0.5, %v2303_v5  ;;  %v6188_v5 = vld [vmem:[%s6863_s5 + $0x110] sm:$0xff]  ;;  %2579 = vmatpush.msrb.mxu1 %v6183_v8 }
 0x654   :  { %2555 = vmatpush.msrb.mxu0 %v6082_v54  ;;  %2599 = vmatpush.msrb.mxu2 %v6188_v5 }
 0x656   :  { %2556 = vmatpush.msrb.mxu0 %v6106_v49  ;;  %2600 = vmatpush.msrb.mxu2 %v6212_v48 }
 0x658   :  { %2557 = vmatpush.msrb.mxu0 %v6130_v13  ;;  %2601 = vmatpush.msrb.mxu2 %v6236_v17 }
 0x659   :  { %v3508_v63 = vpop.eup %3507 }
 0x65a   :  { %v2309_v0 = vmul.f32 %v3508_v63, %v2304_v62  ;;  %2558 = vmatpush.msrb.mxu0 %v6154_v30  ;;  %v6195_v62 = vld [vmem:[%s6863_s5 + $0x118] sm:$0xff]  ;;  %v6202_v63 = vld [vmem:[%s6863_s5 + $0xe0] sm:$0xff]  ;;  %2602 = vmatpush.msrb.mxu2 %v6260_v43 }
 0x65b   :  { %7192 = vst [vmem:[#allocation14_spill] sm:$0xff] %v6195_v62  ;;  %2619 = vmatpush.msrb.mxu3 %v6195_v62 }
 0x65c   :  { %3399 = vst [vmem:[%s6867_s7 + $0x8] sm:$0xff] %v2309_v0  ;;  %2396 = vmatmul.f32.vlgmr.msra.gmra.mxu0 %v2309_v0  ;;  %2416 = vmatmul.f32.vlgmr.msra.gmra.mxu1 %v2309_v0 }
 0x65d   :  { %2436 = vmatmul.f32.vlgmr.msra.gmra.mxu2 %v2309_v0  ;;  %2456 = vmatmul.f32.vlgmr.msra.gmra.mxu3 %v2309_v0  ;;  %v6207_v0 = vld [vmem:[%s6863_s5 + $0xe8] sm:$0xff] }
 0x65e   :  { %2559 = vmatpush.msrb.mxu0 %v6178_v4  ;;  %2580 = vmatpush.msrb.mxu1 %v6207_v0 }
 0x65f   :  { %2620 = vmatpush.msrb.mxu3 %v6219_v33  ;;  %2603 = vmatpush.msrb.mxu2 %v6284_v26 }
 0x660   :  { %2560 = vmatpush.msrb.mxu0 %v6202_v63  ;;  %2581 = vmatpush.msrb.mxu1 %v6231_v18 }
 0x661   :  { %2621 = vmatpush.msrb.mxu3 %v6243_v20  ;;  %2604 = vmatpush.msrb.mxu2 %v6308_v9  ;;  %v6346_v9 = vld [vmem:[%s6863_s5 + $0x20] sm:$0xff] }
 0x662   :  { %2561 = vmatpush.msrb.mxu0 %v6226_v29  ;;  %2582 = vmatpush.msrb.mxu1 %v6255_v53  ;;  %7205 = vst [vmem:[#allocation4_spill] sm:$0xff] %v6346_v9 }
 0x663   :  { %2622 = vmatpush.msrb.mxu3 %v6267_v27 }
 0x664   :  { %2562 = vmatpush.msrb.mxu0 %v6250_v42  ;;  %2583 = vmatpush.msrb.mxu1 %v6279_v19 }
 0x665   :  { %2623 = vmatpush.msrb.mxu3 %v6291_v24 }
 0x666   :  { %2563 = vmatpush.msrb.mxu0 %v6274_v28  ;;  %2584 = vmatpush.msrb.mxu1 %v6303_v23  ;;  %v6332_v23 = vld [vmem:[%s6863_s5 + $0x50] sm:$0xff] }
 0x667   :  { %2624 = vmatpush.msrb.mxu3 %v6315_v21  ;;  %7203 = vst [vmem:[#allocation24_spill] sm:$0xff] %v6332_v23  ;;  %v6339_v21 = vld [vmem:[%s6863_s5 + $0x58] sm:$0xff]  ;;  %2605 = vmatpush.msrb.mxu2 %v6332_v23  ;;  %v6370_v23 = vld [vmem:[%s6863_s5 + $0x8] sm:$0xff] }
 0x668   :  { %2564 = vmatpush.msrb.mxu0 %v6298_v22  ;;  %2585 = vmatpush.msrb.mxu1 %v6327_v47  ;;  %7204 = vst [vmem:[#allocation25_spill] sm:$0xff] %v6339_v21  ;;  %v6356_v47 = vld [vmem:[%s6863_s5 + $0x30] sm:$0xff] }
 0x669   :  { %2625 = vmatpush.msrb.mxu3 %v6339_v21  ;;  %7207 = vst [vmem:[#allocation6_spill] sm:$0xff] %v6356_v47  ;;  %2606 = vmatpush.msrb.mxu2 %v6356_v47  ;;  %v6365_v21 = vld [vmem:[%s6863_s5] sm:$0xff]  ;;  %v1793_v47 = vadd.f32 %v5927_v6, %v5974_v60 }
 0x66a   :  { %2565 = vmatpush.msrb.mxu0 %v6322_v16  ;;  %v6351_v16 = vld [vmem:[%s6863_s5 + $0x28] sm:$0xff]  ;;  %7208 = vst [vmem:[#allocation27_spill] sm:$0xff] %v6365_v21 }
 0x66b   :  { %7206 = vst [vmem:[#allocation5_spill] sm:$0xff] %v6351_v16  ;;  %2586 = vmatpush.msrb.mxu1 %v6351_v16  ;;  %2626 = vmatpush.msrb.mxu3 %v5762_v45  ;;  %v6382_v45 = vld [vmem:[%s6863_s5 + $0x18] sm:$0xff]  ;;  %v1834_v16 = vadd.f32 %v5929_v7, %v5976_v25 }
 0x66c   :  { %2566 = vmatpush.msrb.mxu0 %v6346_v9  ;;  %7209 = vst [vmem:[#allocation7_spill] sm:$0xff] %v6370_v23  ;;  %v6375_v9 = vld [vmem:[%s6863_s5 + $0x10] sm:$0xff] }
 0x66d   :  { %7210 = vst [vmem:[#allocation51_spill] sm:$0xff] %v6375_v9  ;;  %2587 = vmatpush.msrb.mxu1 %v6370_v23  ;;  %2607 = vmatpush.msrb.mxu2 %v6375_v9 }
 0x66e   :  { %2567 = vmatpush.msrb.mxu0 %v6365_v21  ;;  %2627 = vmatpush.msrb.mxu3 %v6382_v45 }
 0x66f   :  { %2744 = vmatpush.msra.mxu1 %v6005_v46  ;;  %2764 = vmatpush.msra.mxu2 %v6010_v41 }
 0x670   :  { %2724 = vmatpush.msra.mxu0 %v6000_v32  ;;  %2784 = vmatpush.msra.mxu3 %v6017_v2 }
 0x671   :  { %2745 = vmatpush.msra.mxu1 %v6039_v58  ;;  %2765 = vmatpush.msra.mxu2 %v6044_v31 }
 0x672   :  { %2725 = vmatpush.msra.mxu0 %v6034_v59  ;;  %2785 = vmatpush.msra.mxu3 %v6051_v40 }
 0x673   :  { %2746 = vmatpush.msra.mxu1 %v6063_v44  ;;  %2766 = vmatpush.msra.mxu2 %v6068_v37 }
 0x674   :  { %2726 = vmatpush.msra.mxu0 %v6058_v1  ;;  %2786 = vmatpush.msra.mxu3 %v6075_v36 }
 0x675   :  { %2747 = vmatpush.msra.mxu1 %v6087_v35  ;;  %2767 = vmatpush.msra.mxu2 %v6092_v52 }
 0x676   :  { %2727 = vmatpush.msra.mxu0 %v6082_v54  ;;  %2787 = vmatpush.msra.mxu3 %v6099_v56 }
 0x677   :  { %2748 = vmatpush.msra.mxu1 %v6111_v50  ;;  %2768 = vmatpush.msra.mxu2 %v6116_v10 }
 0x678   :  { %2728 = vmatpush.msra.mxu0 %v6106_v49  ;;  %2788 = vmatpush.msra.mxu3 %v6123_v39 }
 0x679   :  { %2749 = vmatpush.msra.mxu1 %v6135_v55  ;;  %2769 = vmatpush.msra.mxu2 %v6140_v14 }
 0x67a   :  { %2729 = vmatpush.msra.mxu0 %v6130_v13  ;;  %2789 = vmatpush.msra.mxu3 %v6147_v57 }
 0x67b   :  { %2750 = vmatpush.msra.mxu1 %v6159_v12  ;;  %2770 = vmatpush.msra.mxu2 %v6164_v3 }
 0x67c   :  { %2730 = vmatpush.msra.mxu0 %v6154_v30  ;;  %2790 = vmatpush.msra.mxu3 %v6171_v51 }
 0x67d   :  { %2751 = vmatpush.msra.mxu1 %v6183_v8  ;;  %2771 = vmatpush.msra.mxu2 %v6188_v5 }
 0x67e   :  { %2731 = vmatpush.msra.mxu0 %v6178_v4  ;;  %2791 = vmatpush.msra.mxu3 %v6195_v62  ;;  %v7223_v62 = vld [vmem:[#allocation27_spill] sm:$0xff] }
 0x67f   :  { %2752 = vmatpush.msra.mxu1 %v6207_v0  ;;  %2772 = vmatpush.msra.mxu2 %v6212_v48 }
 0x680   :  { %2732 = vmatpush.msra.mxu0 %v6202_v63  ;;  %2792 = vmatpush.msra.mxu3 %v6219_v33  ;;  %v7222_v33 = vld [vmem:[#allocation6_spill] sm:$0xff] }
 0x681   :  { %2753 = vmatpush.msra.mxu1 %v6231_v18  ;;  %2773 = vmatpush.msra.mxu2 %v6236_v17 }
 0x682   :  { %2733 = vmatpush.msra.mxu0 %v6226_v29  ;;  %2793 = vmatpush.msra.mxu3 %v6243_v20 }
 0x683   :  { %2754 = vmatpush.msra.mxu1 %v6255_v53  ;;  %2774 = vmatpush.msra.mxu2 %v6260_v43 }
 0x684   :  { %2734 = vmatpush.msra.mxu0 %v6250_v42  ;;  %2794 = vmatpush.msra.mxu3 %v6267_v27 }
 0x685   :  { %2755 = vmatpush.msra.mxu1 %v6279_v19  ;;  %2775 = vmatpush.msra.mxu2 %v6284_v26 }
 0x686   :  { %2735 = vmatpush.msra.mxu0 %v6274_v28  ;;  %2795 = vmatpush.msra.mxu3 %v6291_v24  ;;  %v7221_v24 = vld [vmem:[#allocation5_spill] sm:$0xff] }
 0x6d9   :  { %v2397_v23 = vpop.f32.mrf.mxu0  ;;  %v2417_v21 = vpop.f32.mrf.mxu1 }
 0x6da   :  { %v2460_v22 = vadd.f32 %v2397_v23, %v1793_v47  ;;  %v2461_v9 = vadd.f32 %v2417_v21, %v1834_v16  ;;  %v1875_v47 = vadd.f32 %v5931_v34, %v5984_v11  ;;  %v1916_v16 = vadd.f32 %v5933_v15, %v5986_v38 }
 0x6dc   :  { %v2464_v6 = vmul.f32 0.5, %v2460_v22  ;;  %v2468_v7 = vmul.f32 0.5, %v2461_v9 }
 0x6de   :  { %3509 = vtanh.f32 %v2464_v6 }
 0x6df   :  { %3511 = vtanh.f32 %v2468_v7 }
 0x6e0   :  { %v2437_v21 = vpop.f32.mrf.mxu2  ;;  %v2457_v9 = vpop.f32.mrf.mxu3 }
 0x6e1   :  { %v2462_v23 = vadd.f32 %v2437_v21, %v1875_v47  ;;  %v2463_v22 = vadd.f32 %v2457_v9, %v1916_v16 }
 0x6e3   :  { %3513 = vtanh.f32 %v2462_v23  ;;  %v2473_v34 = vmul.f32 0.5, %v2463_v22 }
 0x6e4   :  { %v3510_v15 = vpop.eup %3509 }
 0x6e5   :  { %v3512_v6 = vpop.eup %3511  ;;  %v2466_v7 = vmul.f32 0.5, %v3510_v15  ;;  %3515 = vtanh.f32 %v2473_v34 }
 0x6e6   :  { %v2470_v47 = vmul.f32 0.5, %v3512_v6  ;;  %v7212_v6 = vld [vmem:[#allocation19_spill] sm:$0xff] }
 0x6e7   :  { %v2467_v16 = vadd.f32 0.5, %v2466_v7  ;;  %2736 = vmatpush.msra.mxu0 %v7212_v6  ;;  %v7213_v7 = vld [vmem:[#allocation28_spill] sm:$0xff] }
 0x6e8   :  { %v2471_v21 = vadd.f32 0.5, %v2470_v47  ;;  %2756 = vmatpush.msra.mxu1 %v7213_v7  ;;  %v7214_v47 = vld [vmem:[#allocation29_spill] sm:$0xff] }
 0x6e9   :  { %v3514_v9 = vpop.eup %3513  ;;  %2776 = vmatpush.msra.mxu2 %v7214_v47 }
 0x6ea   :  { %v2477_v23 = vmul.f32 %v2471_v21, %v6025_v61  ;;  %v2478_v22 = vmul.f32 %v3514_v9, %v2467_v16  ;;  %v7215_v16 = vld [vmem:[#allocation52_spill] sm:$0xff]  ;;  %v7217_v9 = vld [vmem:[#allocation21_spill] sm:$0xff] }
 0x6eb   :  { %v3516_v34 = vpop.eup %3515  ;;  %2796 = vmatpush.msra.mxu3 %v7215_v16  ;;  %v7216_v21 = vld [vmem:[#allocation20_spill] sm:$0xff]  ;;  %2757 = vmatpush.msra.mxu1 %v7217_v9  ;;  %v7224_v16 = vld [vmem:[#allocation7_spill] sm:$0xff] }
 0x6ec   :  { %v6435_v15 = vadd.f32 %v2478_v22, %v2477_v23  ;;  %v2475_v61 = vmul.f32 0.5, %v3516_v34  ;;  %2737 = vmatpush.msra.mxu0 %v7216_v21  ;;  %v7218_v22 = vld [vmem:[#allocation24_spill] sm:$0xff]  ;;  %v7219_v34 = vld [vmem:[#allocation25_spill] sm:$0xff] }
 0x6ed   :  { %2777 = vmatpush.msra.mxu2 %v7218_v22  ;;  %2797 = vmatpush.msra.mxu3 %v7219_v34 }
 0x6ee   :  { %7211 = vst [vmem:[#allocation31_spill] sm:$0xff] %v6435_v15  ;;  %3517 = vtanh.f32 %v6435_v15  ;;  %v2476_v23 = vadd.f32 0.5, %v2475_v61  ;;  %v7220_v15 = vld [vmem:[#allocation4_spill] sm:$0xff]  ;;  %2758 = vmatpush.msra.mxu1 %v7221_v24  ;;  %v7225_v61 = vld [vmem:[#allocation51_spill] sm:$0xff] }
 0x6ef   :  { %2738 = vmatpush.msra.mxu0 %v7220_v15  ;;  %2778 = vmatpush.msra.mxu2 %v7222_v33 }
 0x6f0   :  { %2759 = vmatpush.msra.mxu1 %v7224_v16 }
 0x6f1   :  { %2739 = vmatpush.msra.mxu0 %v7223_v62  ;;  %2779 = vmatpush.msra.mxu2 %v7225_v61 }
 0x6f4   :  { %v3518_v27 = vpop.eup %3517 }
 0x6f5   :  { %v2481_v20 = vmul.f32 %v3518_v27, %v2476_v23  ;;  %v6514_v27 = vld [vmem:[%s6863_s5 + $0x38] sm:$0xff] }
 0x6f6   :  { %2798 = vmatpush.msra.mxu3 %v6514_v27 }
 0x6f7   :  { %3400 = vst [vmem:[%s6867_s7 + $0x10] sm:$0xff] %v2481_v20  ;;  %2568 = vmatmul.f32.vlgmr.msrb.gmra.mxu0 %v2481_v20  ;;  %2588 = vmatmul.f32.vlgmr.msrb.gmra.mxu1 %v2481_v20 }
 0x6f8   :  { %2608 = vmatmul.f32.vlgmr.msrb.gmra.mxu2 %v2481_v20  ;;  %2628 = vmatmul.f32.vlgmr.msrb.gmra.mxu3 %v2481_v20  ;;  %v7226_v20 = vld [vmem:[#allocation36_spill] sm:$0xff] }
 0x6f9   :  { %2896 = vmatpush.msrb.mxu0 %v6000_v32  ;;  %2916 = vmatpush.msrb.mxu1 %v6005_v46  ;;  %v1796_v23 = vadd.f32 %v7226_v20, %v5974_v60  ;;  %v7229_v20 = vld [vmem:[#allocation39_spill] sm:$0xff] }
 0x6fa   :  { %2936 = vmatpush.msrb.mxu2 %v6010_v41  ;;  %2799 = vmatpush.msra.mxu3 %v6382_v45  ;;  %v1919_v60 = vadd.f32 %v7229_v20, %v5986_v38  ;;  %v7231_v20 = vld [vmem:[#allocation15_spill] sm:$0xff] }
 0x6fb   :  { %2897 = vmatpush.msrb.mxu0 %v6034_v59  ;;  %2917 = vmatpush.msrb.mxu1 %v6039_v58 }
 0x6fc   :  { %2937 = vmatpush.msrb.mxu2 %v6044_v31  ;;  %2956 = vmatpush.msrb.mxu3 %v6017_v2 }
 0x6fd   :  { %2898 = vmatpush.msrb.mxu0 %v6058_v1  ;;  %2918 = vmatpush.msrb.mxu1 %v6063_v44 }
 0x6fe   :  { %2938 = vmatpush.msrb.mxu2 %v6068_v37  ;;  %2957 = vmatpush.msrb.mxu3 %v6051_v40 }
 0x6ff   :  { %2899 = vmatpush.msrb.mxu0 %v6082_v54  ;;  %2919 = vmatpush.msrb.mxu1 %v6087_v35 }
 0x700   :  { %2939 = vmatpush.msrb.mxu2 %v6092_v52  ;;  %2958 = vmatpush.msrb.mxu3 %v6075_v36 }
 0x701   :  { %2900 = vmatpush.msrb.mxu0 %v6106_v49  ;;  %2920 = vmatpush.msrb.mxu1 %v6111_v50 }
 0x702   :  { %2940 = vmatpush.msrb.mxu2 %v6116_v10  ;;  %2959 = vmatpush.msrb.mxu3 %v6099_v56 }
 0x703   :  { %2901 = vmatpush.msrb.mxu0 %v6130_v13  ;;  %2921 = vmatpush.msrb.mxu1 %v6135_v55 }
 0x704   :  { %2941 = vmatpush.msrb.mxu2 %v6140_v14  ;;  %2960 = vmatpush.msrb.mxu3 %v6123_v39 }
 0x705   :  { %2902 = vmatpush.msrb.mxu0 %v6154_v30  ;;  %2922 = vmatpush.msrb.mxu1 %v6159_v12 }
 0x706   :  { %2942 = vmatpush.msrb.mxu2 %v6164_v3  ;;  %2961 = vmatpush.msrb.mxu3 %v6147_v57 }
 0x707   :  { %2903 = vmatpush.msrb.mxu0 %v6178_v4  ;;  %2923 = vmatpush.msrb.mxu1 %v6183_v8 }
 0x708   :  { %2943 = vmatpush.msrb.mxu2 %v6188_v5  ;;  %2962 = vmatpush.msrb.mxu3 %v6171_v51 }
 0x709   :  { %2904 = vmatpush.msrb.mxu0 %v6202_v63  ;;  %2924 = vmatpush.msrb.mxu1 %v6207_v0 }
 0x70a   :  { %2944 = vmatpush.msrb.mxu2 %v6212_v48 }
 0x70b   :  { %2905 = vmatpush.msrb.mxu0 %v6226_v29  ;;  %2925 = vmatpush.msrb.mxu1 %v6231_v18 }
 0x70c   :  { %2945 = vmatpush.msrb.mxu2 %v6236_v17 }
 0x70d   :  { %2906 = vmatpush.msrb.mxu0 %v6250_v42  ;;  %2926 = vmatpush.msrb.mxu1 %v6255_v53 }
 0x70e   :  { %2946 = vmatpush.msrb.mxu2 %v6260_v43 }
 0x70f   :  { %2907 = vmatpush.msrb.mxu0 %v6274_v28  ;;  %2927 = vmatpush.msrb.mxu1 %v6279_v19 }
 0x710   :  { %2947 = vmatpush.msrb.mxu2 %v6284_v26 }
 0x711   :  { %2908 = vmatpush.msrb.mxu0 %v7212_v6  ;;  %2928 = vmatpush.msrb.mxu1 %v7213_v7 }
 0x712   :  { %2948 = vmatpush.msrb.mxu2 %v7214_v47 }
 0x713   :  { %2909 = vmatpush.msrb.mxu0 %v7216_v21  ;;  %2929 = vmatpush.msrb.mxu1 %v7217_v9  ;;  %v7228_v21 = vld [vmem:[#allocation38_spill] sm:$0xff] }
 0x714   :  { %2949 = vmatpush.msrb.mxu2 %v7218_v22  ;;  %v1878_v47 = vadd.f32 %v7228_v21, %v5984_v11  ;;  %v7230_v21 = vld [vmem:[#allocation14_spill] sm:$0xff] }
 0x715   :  { %2910 = vmatpush.msrb.mxu0 %v7220_v15  ;;  %2930 = vmatpush.msrb.mxu1 %v7221_v24 }
 0x716   :  { %2950 = vmatpush.msrb.mxu2 %v7222_v33  ;;  %2963 = vmatpush.msrb.mxu3 %v7230_v21 }
 0x717   :  { %2911 = vmatpush.msrb.mxu0 %v7223_v62  ;;  %2931 = vmatpush.msrb.mxu1 %v7224_v16  ;;  %v7227_v62 = vld [vmem:[#allocation37_spill] sm:$0xff] }
 0x718   :  { %2951 = vmatpush.msrb.mxu2 %v7225_v61  ;;  %v1837_v33 = vadd.f32 %v7227_v62, %v5976_v25  ;;  %2964 = vmatpush.msrb.mxu3 %v7231_v20 }
 0x774   :  { %v2569_v16 = vpop.f32.mrf.mxu0  ;;  %v2589_v24 = vpop.f32.mrf.mxu1 }
 0x775   :  { %v2632_v61 = vadd.f32 %v2569_v16, %v1796_v23  ;;  %v2633_v15 = vadd.f32 %v2589_v24, %v1837_v33 }
 0x777   :  { %v2636_v22 = vmul.f32 0.5, %v2632_v61  ;;  %v2640_v9 = vmul.f32 0.5, %v2633_v15 }
 0x779   :  { %3519 = vtanh.f32 %v2636_v22 }
 0x77a   :  { %3521 = vtanh.f32 %v2640_v9 }
 0x77b   :  { %v2609_v62 = vpop.f32.mrf.mxu2  ;;  %v2629_v25 = vpop.f32.mrf.mxu3 }
 0x77c   :  { %v2634_v16 = vadd.f32 %v2609_v62, %v1878_v47  ;;  %v2635_v24 = vadd.f32 %v2629_v25, %v1919_v60  ;;  %v7232_v47 = vld [vmem:[#allocation16_spill] sm:$0xff]  ;;  %v7233_v60 = vld [vmem:[#allocation31_spill] sm:$0xff] }
 0x77d   :  { %2965 = vmatpush.msrb.mxu3 %v7232_v47 }
 0x77e   :  { %3523 = vtanh.f32 %v2634_v16  ;;  %v2645_v33 = vmul.f32 0.5, %v2635_v24  ;;  %v7234_v16 = vld [vmem:[#allocation17_spill] sm:$0xff] }
 0x77f   :  { %v3520_v15 = vpop.eup %3519  ;;  %2966 = vmatpush.msrb.mxu3 %v7234_v16 }
 0x780   :  { %v3522_v22 = vpop.eup %3521  ;;  %v2638_v61 = vmul.f32 0.5, %v3520_v15  ;;  %3525 = vtanh.f32 %v2645_v33  ;;  %v7235_v15 = vld [vmem:[#allocation18_spill] sm:$0xff] }
 0x781   :  { %v2642_v23 = vmul.f32 0.5, %v3522_v22  ;;  %2967 = vmatpush.msrb.mxu3 %v7235_v15  ;;  %v7236_v22 = vld [vmem:[#allocation52_spill] sm:$0xff] }
 0x782   :  { %v2639_v9 = vadd.f32 0.5, %v2638_v61 }
 0x783   :  { %v2643_v38 = vadd.f32 0.5, %v2642_v23  ;;  %2968 = vmatpush.msrb.mxu3 %v7236_v22 }
 0x784   :  { %v3524_v11 = vpop.eup %3523 }
 0x785   :  { %v2649_v25 = vmul.f32 %v2643_v38, %v7233_v60  ;;  %v2650_v62 = vmul.f32 %v3524_v11, %v2639_v9  ;;  %2969 = vmatpush.msrb.mxu3 %v7219_v34  ;;  %v7247_v11 = vld [vmem:[#allocation51_spill] sm:$0xff] }
 0x786   :  { %v3526_v24 = vpop.eup %3525 }
 0x787   :  { %v6538_v7 = vadd.f32 %v2650_v62, %v2649_v25  ;;  %v2647_v33 = vmul.f32 0.5, %v3526_v24  ;;  %2970 = vmatpush.msrb.mxu3 %v6514_v27  ;;  %v3236_v25 = vld [vmem:[%s6863_s5 + $0x1e0] sm:$0xff]  ;;  %v3237_v62 = vld [vmem:[%s6863_s5 + $0x1e8] sm:$0xff] }
 0x789   :  { %3527 = vtanh.f32 %v6538_v7  ;;  %v2648_v61 = vadd.f32 0.5, %v2647_v33  ;;  %2971 = vmatpush.msrb.mxu3 %v6382_v45  ;;  %v3239_v33 = vld [vmem:[%s6863_s5 + $0x1f8] sm:$0xff] }
 0x78f   :  { %v3528_v23 = vpop.eup %3527 }
 0x790   :  { %v2653_v38 = vmul.f32 %v3528_v23, %v2648_v61 }
 0x792   :  { %3401 = vst [vmem:[%s6867_s7 + $0x18] sm:$0xff] %v2653_v38  ;;  %2740 = vmatmul.f32.vlgmr.msra.gmra.mxu0 %v2653_v38  ;;  %2760 = vmatmul.f32.vlgmr.msra.gmra.mxu1 %v2653_v38 }
 0x793   :  { %2780 = vmatmul.f32.vlgmr.msra.gmra.mxu2 %v2653_v38  ;;  %2800 = vmatmul.f32.vlgmr.msra.gmra.mxu3 %v2653_v38 }
 0x794   :  { %3068 = vmatpush.msra.mxu0 %v6000_v32  ;;  %3088 = vmatpush.msra.mxu1 %v6005_v46  ;;  %v7248_v32 = vld [vmem:[#allocation9_spill] sm:$0xff]  ;;  %v7249_v46 = vld [vmem:[#allocation40_spill] sm:$0xff] }
 0x795   :  { %3108 = vmatpush.msra.mxu2 %v6010_v41  ;;  %3128 = vmatpush.msra.mxu3 %v6017_v2  ;;  %v1799_v41 = vadd.f32 %v7249_v46, %v7248_v32  ;;  %v7250_v2 = vld [vmem:[#allocation26_spill] sm:$0xff] }
 0x796   :  { %3069 = vmatpush.msra.mxu0 %v6034_v59  ;;  %3089 = vmatpush.msra.mxu1 %v6039_v58  ;;  %v7251_v59 = vld [vmem:[#allocation41_spill] sm:$0xff] }
 0x797   :  { %3109 = vmatpush.msra.mxu2 %v6044_v31  ;;  %3129 = vmatpush.msra.mxu3 %v6051_v40  ;;  %v1840_v58 = vadd.f32 %v7251_v59, %v7250_v2 }
 0x798   :  { %3070 = vmatpush.msra.mxu0 %v6058_v1  ;;  %3090 = vmatpush.msra.mxu1 %v6063_v44 }
 0x799   :  { %3110 = vmatpush.msra.mxu2 %v6068_v37  ;;  %3130 = vmatpush.msra.mxu3 %v6075_v36 }
 0x79a   :  { %3071 = vmatpush.msra.mxu0 %v6082_v54  ;;  %3091 = vmatpush.msra.mxu1 %v6087_v35  ;;  %v7252_v54 = vld [vmem:[#allocation12_spill] sm:$0xff]  ;;  %v7253_v35 = vld [vmem:[#allocation42_spill] sm:$0xff] }
 0x79b   :  { %3111 = vmatpush.msra.mxu2 %v6092_v52  ;;  %3131 = vmatpush.msra.mxu3 %v6099_v56  ;;  %v1881_v52 = vadd.f32 %v7253_v35, %v7252_v54  ;;  %v7254_v56 = vld [vmem:[#allocation13_spill] sm:$0xff] }
 0x79c   :  { %3072 = vmatpush.msra.mxu0 %v6106_v49  ;;  %3092 = vmatpush.msra.mxu1 %v6111_v50  ;;  %v7255_v49 = vld [vmem:[#allocation43_spill] sm:$0xff] }
 0x79d   :  { %3112 = vmatpush.msra.mxu2 %v6116_v10  ;;  %3132 = vmatpush.msra.mxu3 %v6123_v39  ;;  %v1922_v50 = vadd.f32 %v7255_v49, %v7254_v56 }
 0x79e   :  { %3073 = vmatpush.msra.mxu0 %v6130_v13  ;;  %3093 = vmatpush.msra.mxu1 %v6135_v55 }
 0x79f   :  { %3113 = vmatpush.msra.mxu2 %v6140_v14  ;;  %3133 = vmatpush.msra.mxu3 %v6147_v57 }
 0x7a0   :  { %3074 = vmatpush.msra.mxu0 %v6154_v30  ;;  %3094 = vmatpush.msra.mxu1 %v6159_v12 }
 0x7a1   :  { %3114 = vmatpush.msra.mxu2 %v6164_v3  ;;  %3134 = vmatpush.msra.mxu3 %v6171_v51 }
 0x7a2   :  { %3075 = vmatpush.msra.mxu0 %v6178_v4  ;;  %3095 = vmatpush.msra.mxu1 %v6183_v8 }
 0x7a3   :  { %3115 = vmatpush.msra.mxu2 %v6188_v5  ;;  %3135 = vmatpush.msra.mxu3 %v7230_v21 }
 0x7a4   :  { %3076 = vmatpush.msra.mxu0 %v6202_v63  ;;  %3096 = vmatpush.msra.mxu1 %v6207_v0 }
 0x7a5   :  { %3116 = vmatpush.msra.mxu2 %v6212_v48  ;;  %3136 = vmatpush.msra.mxu3 %v7231_v20  ;;  %v7246_v48 = vld [vmem:[#allocation7_spill] sm:$0xff]  ;;  %v7256_v20 = vld [vmem:[#allocation44_spill] sm:$0xff] }
 0x7a6   :  { %3077 = vmatpush.msra.mxu0 %v6226_v29  ;;  %3097 = vmatpush.msra.mxu1 %v6231_v18  ;;  %v7238_v18 = vld [vmem:[#allocation29_spill] sm:$0xff]  ;;  %v7245_v29 = vld [vmem:[#allocation27_spill] sm:$0xff] }
 0x7a7   :  { %3117 = vmatpush.msra.mxu2 %v6236_v17  ;;  %3137 = vmatpush.msra.mxu3 %v7232_v47  ;;  %v7237_v17 = vld [vmem:[#allocation28_spill] sm:$0xff]  ;;  %v1802_v47 = vadd.f32 %v7256_v20, %v7248_v32  ;;  %v3213_v20 = vld [vmem:[%s6863_s5 + $0x128] sm:$0xff] }
 0x7a8   :  { %3078 = vmatpush.msra.mxu0 %v6250_v42  ;;  %3098 = vmatpush.msra.mxu1 %v6255_v53  ;;  %v7239_v53 = vld [vmem:[#allocation20_spill] sm:$0xff] }
 0x7a9   :  { %3118 = vmatpush.msra.mxu2 %v6260_v43  ;;  %3138 = vmatpush.msra.mxu3 %v7234_v16  ;;  %v7240_v43 = vld [vmem:[#allocation21_spill] sm:$0xff]  ;;  %v7241_v42 = vld [vmem:[#allocation24_spill] sm:$0xff]  ;;  %v3238_v16 = vld [vmem:[%s6863_s5 + $0x1f0] sm:$0xff] }
 0x7aa   :  { %3079 = vmatpush.msra.mxu0 %v6274_v28  ;;  %3099 = vmatpush.msra.mxu1 %v6279_v19  ;;  %v7242_v19 = vld [vmem:[#allocation4_spill] sm:$0xff]  ;;  %v7244_v28 = vld [vmem:[#allocation6_spill] sm:$0xff] }
 0x7ab   :  { %3119 = vmatpush.msra.mxu2 %v6284_v26  ;;  %3139 = vmatpush.msra.mxu3 %v7235_v15  ;;  %v7243_v26 = vld [vmem:[#allocation5_spill] sm:$0xff] }
 0x7ac   :  { %3080 = vmatpush.msra.mxu0 %v7212_v6  ;;  %3100 = vmatpush.msra.mxu1 %v7237_v17  ;;  %v7258_v17 = vld [vmem:[#allocation46_spill] sm:$0xff] }
 0x7ad   :  { %3120 = vmatpush.msra.mxu2 %v7238_v18  ;;  %3140 = vmatpush.msra.mxu3 %v7236_v22  ;;  %v1884_v18 = vadd.f32 %v7258_v17, %v7252_v54  ;;  %v3203_v17 = vld [vmem:[%s6863_s5 + $0xd8] sm:$0xff] }
 0x7ae   :  { %3081 = vmatpush.msra.mxu0 %v7239_v53  ;;  %3101 = vmatpush.msra.mxu1 %v7240_v43  ;;  %v7259_v53 = vld [vmem:[#allocation47_spill] sm:$0xff] }
 0x7af   :  { %3121 = vmatpush.msra.mxu2 %v7241_v42  ;;  %3141 = vmatpush.msra.mxu3 %v7219_v34  ;;  %v1925_v43 = vadd.f32 %v7259_v53, %v7254_v56  ;;  %v3197_v53 = vld [vmem:[%s6863_s5 + $0xa8] sm:$0xff] }
 0x7b0   :  { %3082 = vmatpush.msra.mxu0 %v7242_v19  ;;  %3102 = vmatpush.msra.mxu1 %v7243_v26 }
 0x7b1   :  { %3122 = vmatpush.msra.mxu2 %v7244_v28  ;;  %3142 = vmatpush.msra.mxu3 %v6514_v27 }
 0x7b2   :  { %3083 = vmatpush.msra.mxu0 %v7245_v29  ;;  %3103 = vmatpush.msra.mxu1 %v7246_v48 }
 0x7b3   :  { %3123 = vmatpush.msra.mxu2 %v7247_v11  ;;  %3143 = vmatpush.msra.mxu3 %v6382_v45 }
 0x80f   :  { %v2741_v31 = vpop.f32.mrf.mxu0  ;;  %v2761_v40 = vpop.f32.mrf.mxu1 }
 0x810   :  { %v2804_v1 = vadd.f32 %v2741_v31, %v1799_v41  ;;  %v2805_v44 = vadd.f32 %v2761_v40, %v1840_v58 }
 0x812   :  { %v2808_v37 = vmul.f32 0.5, %v2804_v1  ;;  %v2812_v36 = vmul.f32 0.5, %v2805_v44 }
 0x814   :  { %3529 = vtanh.f32 %v2808_v37 }
 0x815   :  { %3531 = vtanh.f32 %v2812_v36 }
 0x816   :  { %v2781_v10 = vpop.f32.mrf.mxu2  ;;  %v2801_v39 = vpop.f32.mrf.mxu3 }
 0x817   :  { %v2806_v13 = vadd.f32 %v2781_v10, %v1881_v52  ;;  %v2807_v55 = vadd.f32 %v2801_v39, %v1922_v50  ;;  %v3232_v50 = vld [vmem:[%s6863_s5 + $0x1c0] sm:$0xff]  ;;  %v3233_v10 = vld [vmem:[%s6863_s5 + $0x1c8] sm:$0xff]  ;;  %v3234_v39 = vld [vmem:[%s6863_s5 + $0x1d0] sm:$0xff] }
 0x819   :  { %3533 = vtanh.f32 %v2806_v13  ;;  %v2817_v14 = vmul.f32 0.5, %v2807_v55  ;;  %v3235_v13 = vld [vmem:[%s6863_s5 + $0x1d8] sm:$0xff]  ;;  %v3228_v55 = vld [vmem:[%s6863_s5 + $0x1a0] sm:$0xff] }
 0x81a   :  { %v3530_v57 = vpop.eup %3529 }
 0x81b   :  { %v3532_v30 = vpop.eup %3531  ;;  %v2810_v12 = vmul.f32 0.5, %v3530_v57  ;;  %3535 = vtanh.f32 %v2817_v14  ;;  %v3229_v14 = vld [vmem:[%s6863_s5 + $0x1a8] sm:$0xff]  ;;  %v3230_v57 = vld [vmem:[%s6863_s5 + $0x1b0] sm:$0xff] }
 0x81c   :  { %v2814_v3 = vmul.f32 0.5, %v3532_v30  ;;  %v3231_v30 = vld [vmem:[%s6863_s5 + $0x1b8] sm:$0xff] }
 0x81d   :  { %v2811_v51 = vadd.f32 0.5, %v2810_v12  ;;  %v3224_v12 = vld [vmem:[%s6863_s5 + $0x180] sm:$0xff] }
 0x81e   :  { %v2815_v4 = vadd.f32 0.5, %v2814_v3  ;;  %v3225_v3 = vld [vmem:[%s6863_s5 + $0x188] sm:$0xff] }
 0x81f   :  { %v3534_v8 = vpop.eup %3533 }
 0x820   :  { %v2821_v5 = vmul.f32 %v2815_v4, %v6538_v7  ;;  %v2822_v63 = vmul.f32 %v3534_v8, %v2811_v51  ;;  %v7257_v7 = vld [vmem:[#allocation45_spill] sm:$0xff]  ;;  %v3226_v51 = vld [vmem:[%s6863_s5 + $0x190] sm:$0xff]  ;;  %v3227_v4 = vld [vmem:[%s6863_s5 + $0x198] sm:$0xff] }
 0x821   :  { %v3536_v0 = vpop.eup %3535  ;;  %v1843_v60 = vadd.f32 %v7257_v7, %v7250_v2  ;;  %v3220_v8 = vld [vmem:[%s6863_s5 + $0x160] sm:$0xff]  ;;  %v3215_v7 = vld [vmem:[%s6863_s5 + $0x138] sm:$0xff] }
 0x822   :  { %v2823_v45 = vadd.f32 %v2822_v63, %v2821_v5  ;;  %v2819_v6 = vmul.f32 0.5, %v3536_v0  ;;  %v3221_v5 = vld [vmem:[%s6863_s5 + $0x168] sm:$0xff]  ;;  %v3222_v63 = vld [vmem:[%s6863_s5 + $0x170] sm:$0xff]  ;;  %v3223_v0 = vld [vmem:[%s6863_s5 + $0x178] sm:$0xff] }
 0x824   :  { %3537 = vtanh.f32 %v2823_v45  ;;  %v2820_v34 = vadd.f32 0.5, %v2819_v6  ;;  %v3217_v6 = vld [vmem:[%s6863_s5 + $0x148] sm:$0xff] }
 0x82a   :  { %v3538_v21 = vpop.eup %3537 }
 0x82b   :  { %v2825_v9 = vmul.f32 %v3538_v21, %v2820_v34  ;;  %v3218_v34 = vld [vmem:[%s6863_s5 + $0x150] sm:$0xff]  ;;  %v3219_v21 = vld [vmem:[%s6863_s5 + $0x158] sm:$0xff] }
 0x82d   :  { %3402 = vst [vmem:[%s6867_s7 + $0x20] sm:$0xff] %v2825_v9  ;;  %2912 = vmatmul.f32.vlgmr.msrb.gmra.mxu0 %v2825_v9  ;;  %2932 = vmatmul.f32.vlgmr.msrb.gmra.mxu1 %v2825_v9 }
 0x82e   :  { %2952 = vmatmul.f32.vlgmr.msrb.gmra.mxu2 %v2825_v9  ;;  %2972 = vmatmul.f32.vlgmr.msrb.gmra.mxu3 %v2825_v9  ;;  %v3212_v9 = vld [vmem:[%s6863_s5 + $0x120] sm:$0xff] }
 0x82f   :  { %3240 = vmatpush.msrb.mxu0 %v3236_v25  ;;  %3260 = vmatpush.msrb.mxu1 %v3237_v62  ;;  %v3209_v25 = vld [vmem:[%s6863_s5 + $0x108] sm:$0xff]  ;;  %v3210_v62 = vld [vmem:[%s6863_s5 + $0x110] sm:$0xff] }
 0x830   :  { %3280 = vmatpush.msrb.mxu2 %v3238_v16  ;;  %3300 = vmatpush.msrb.mxu3 %v3239_v33  ;;  %v3211_v16 = vld [vmem:[%s6863_s5 + $0x118] sm:$0xff]  ;;  %v3206_v33 = vld [vmem:[%s6863_s5 + $0xf0] sm:$0xff] }
 0x831   :  { %3241 = vmatpush.msrb.mxu0 %v3232_v50  ;;  %3261 = vmatpush.msrb.mxu1 %v3233_v10  ;;  %v3179_v50 = vld [vmem:[%s6863_s5 + $0x18] sm:$0xff] }
 0x832   :  { %3281 = vmatpush.msrb.mxu2 %v3234_v39  ;;  %3301 = vmatpush.msrb.mxu3 %v3235_v13  ;;  %v7261_v39 = vld [vmem:[#allocation49_spill] sm:$0xff] }
 0x833   :  { %3242 = vmatpush.msrb.mxu0 %v3228_v55  ;;  %3262 = vmatpush.msrb.mxu1 %v3229_v14  ;;  %v1846_v13 = vadd.f32 %v7261_v39, %v7250_v2 }
 0x834   :  { %3282 = vmatpush.msrb.mxu2 %v3230_v57  ;;  %3302 = vmatpush.msrb.mxu3 %v3231_v30 }
 0x835   :  { %3243 = vmatpush.msrb.mxu0 %v3224_v12  ;;  %3263 = vmatpush.msrb.mxu1 %v3225_v3 }
 0x836   :  { %3283 = vmatpush.msrb.mxu2 %v3226_v51  ;;  %3303 = vmatpush.msrb.mxu3 %v3227_v4  ;;  %v7262_v51 = vld [vmem:[#allocation50_spill] sm:$0xff] }
 0x837   :  { %3244 = vmatpush.msrb.mxu0 %v3220_v8  ;;  %3264 = vmatpush.msrb.mxu1 %v3221_v5  ;;  %v1887_v4 = vadd.f32 %v7262_v51, %v7252_v54  ;;  %v7263_v8 = vld [vmem:[#allocation22_spill] sm:$0xff] }
 0x838   :  { %3284 = vmatpush.msrb.mxu2 %v3222_v63  ;;  %3304 = vmatpush.msrb.mxu3 %v3223_v0  ;;  %v1928_v5 = vadd.f32 %v7263_v8, %v7254_v56 }
 0x839   :  { %3265 = vmatpush.msrb.mxu1 %v3217_v6 }
 0x83a   :  { %3285 = vmatpush.msrb.mxu2 %v3218_v34  ;;  %3305 = vmatpush.msrb.mxu3 %v3219_v21 }
 0x83b   :  { %3266 = vmatpush.msrb.mxu1 %v3213_v20 }
 0x83c   :  { %3306 = vmatpush.msrb.mxu3 %v3215_v7 }
 0x83d   :  { %3267 = vmatpush.msrb.mxu1 %v3209_v25 }
 0x83e   :  { %3307 = vmatpush.msrb.mxu3 %v3211_v16 }
 0x8aa   :  { %v2913_v24 = vpop.f32.mrf.mxu0  ;;  %v2933_v15 = vpop.f32.mrf.mxu1 }
 0x8ab   :  { %v2976_v22 = vadd.f32 %v2913_v24, %v1802_v47  ;;  %v2977_v61 = vadd.f32 %v2933_v15, %v1843_v60  ;;  %v3214_v47 = vld [vmem:[%s6863_s5 + $0x130] sm:$0xff]  ;;  %v3208_v60 = vld [vmem:[%s6863_s5 + $0x100] sm:$0xff]  ;;  %v3205_v15 = vld [vmem:[%s6863_s5 + $0xe8] sm:$0xff] }
 0x8ac   :  { %3286 = vmatpush.msrb.mxu2 %v3214_v47  ;;  %v3204_v24 = vld [vmem:[%s6863_s5 + $0xe0] sm:$0xff]  ;;  %3268 = vmatpush.msrb.mxu1 %v3205_v15 }
 0x8ad   :  { %v2980_v23 = vmul.f32 0.5, %v2976_v22  ;;  %v2984_v38 = vmul.f32 0.5, %v2977_v61  ;;  %v3207_v22 = vld [vmem:[%s6863_s5 + $0xf8] sm:$0xff]  ;;  %v3200_v61 = vld [vmem:[%s6863_s5 + $0xc0] sm:$0xff] }
 0x8ae   :  { %3287 = vmatpush.msrb.mxu2 %v3210_v62  ;;  %3308 = vmatpush.msrb.mxu3 %v3207_v22 }
 0x8af   :  { %3539 = vtanh.f32 %v2980_v23  ;;  %v3201_v23 = vld [vmem:[%s6863_s5 + $0xc8] sm:$0xff] }
 0x8b0   :  { %3541 = vtanh.f32 %v2984_v38  ;;  %3288 = vmatpush.msrb.mxu2 %v3206_v33  ;;  %v3202_v38 = vld [vmem:[%s6863_s5 + $0xd0] sm:$0xff]  ;;  %3269 = vmatpush.msrb.mxu1 %v3201_v23 }
 0x8b1   :  { %v2953_v42 = vpop.f32.mrf.mxu2  ;;  %v2973_v19 = vpop.f32.mrf.mxu3  ;;  %3309 = vmatpush.msrb.mxu3 %v3203_v17 }
 0x8b2   :  { %v2978_v26 = vadd.f32 %v2953_v42, %v1884_v18  ;;  %v2979_v28 = vadd.f32 %v2973_v19, %v1925_v43  ;;  %3289 = vmatpush.msrb.mxu2 %v3202_v38  ;;  %v3196_v18 = vld [vmem:[%s6863_s5 + $0xa0] sm:$0xff]  ;;  %v3198_v43 = vld [vmem:[%s6863_s5 + $0xb0] sm:$0xff]  ;;  %3270 = vmatpush.msrb.mxu1 %v3197_v53  ;;  %v3199_v42 = vld [vmem:[%s6863_s5 + $0xb8] sm:$0xff] }
 0x8b3   :  { %3310 = vmatpush.msrb.mxu3 %v3199_v42  ;;  %v3192_v19 = vld [vmem:[%s6863_s5 + $0x80] sm:$0xff] }
 0x8b4   :  { %3543 = vtanh.f32 %v2978_v26  ;;  %v2989_v29 = vmul.f32 0.5, %v2979_v28  ;;  %3290 = vmatpush.msrb.mxu2 %v3198_v43  ;;  %v3193_v26 = vld [vmem:[%s6863_s5 + $0x88] sm:$0xff]  ;;  %v3194_v28 = vld [vmem:[%s6863_s5 + $0x90] sm:$0xff]  ;;  %v7264_v38 = vld [vmem:[#allocation8_spill] sm:$0xff] }
 0x8b5   :  { %v3540_v48 = vpop.eup %3539  ;;  %3271 = vmatpush.msrb.mxu1 %v3193_v26  ;;  %v1808_v17 = vadd.f32 %v7264_v38, %v7248_v32 }
 0x8b6   :  { %v3542_v11 = vpop.eup %3541  ;;  %v2982_v46 = vmul.f32 0.5, %v3540_v48  ;;  %3545 = vtanh.f32 %v2989_v29  ;;  %v3195_v29 = vld [vmem:[%s6863_s5 + $0x98] sm:$0xff]  ;;  %3291 = vmatpush.msrb.mxu2 %v3194_v28  ;;  %v3188_v48 = vld [vmem:[%s6863_s5 + $0x60] sm:$0xff] }
 0x8b7   :  { %v2986_v41 = vmul.f32 0.5, %v3542_v11  ;;  %3311 = vmatpush.msrb.mxu3 %v3195_v29  ;;  %v3189_v11 = vld [vmem:[%s6863_s5 + $0x68] sm:$0xff]  ;;  %v7266_v29 = vld [vmem:[#allocation10_spill] sm:$0xff] }
 0x8b8   :  { %v2983_v59 = vadd.f32 0.5, %v2982_v46  ;;  %v3190_v46 = vld [vmem:[%s6863_s5 + $0x70] sm:$0xff]  ;;  %3272 = vmatpush.msrb.mxu1 %v3189_v11  ;;  %v7267_v11 = vld [vmem:[#allocation11_spill] sm:$0xff] }
 0x8b9   :  { %v2987_v58 = vadd.f32 0.5, %v2986_v41  ;;  %v3191_v41 = vld [vmem:[%s6863_s5 + $0x78] sm:$0xff]  ;;  %3292 = vmatpush.msrb.mxu2 %v3190_v46  ;;  %v1931_v46 = vadd.f32 %v7267_v11, %v7254_v56 }
 0x8ba   :  { %v3544_v31 = vpop.eup %3543  ;;  %3312 = vmatpush.msrb.mxu3 %v3191_v41 }
 0x8bb   :  { %v2993_v40 = vmul.f32 %v2987_v58, %v2823_v45  ;;  %v2994_v1 = vmul.f32 %v3544_v31, %v2983_v59  ;;  %v3216_v45 = vld [vmem:[%s6863_s5 + $0x140] sm:$0xff]  ;;  %v3185_v58 = vld [vmem:[%s6863_s5 + $0x48] sm:$0xff]  ;;  %v3186_v31 = vld [vmem:[%s6863_s5 + $0x50] sm:$0xff] }
 0x8bc   :  { %v3546_v44 = vpop.eup %3545  ;;  %3245 = vmatpush.msrb.mxu0 %v3216_v45  ;;  %v3184_v59 = vld [vmem:[%s6863_s5 + $0x40] sm:$0xff]  ;;  %3273 = vmatpush.msrb.mxu1 %v3185_v58 }
 0x8bd   :  { %v6645_v37 = vadd.f32 %v2994_v1, %v2993_v40  ;;  %v2991_v36 = vmul.f32 0.5, %v3546_v44  ;;  %v3187_v40 = vld [vmem:[%s6863_s5 + $0x58] sm:$0xff]  ;;  %3293 = vmatpush.msrb.mxu2 %v3186_v31  ;;  %v3180_v1 = vld [vmem:[%s6863_s5 + $0x20] sm:$0xff]  ;;  %v3181_v44 = vld [vmem:[%s6863_s5 + $0x28] sm:$0xff] }
 0x8be   :  { %3246 = vmatpush.msrb.mxu0 %v3212_v9  ;;  %3313 = vmatpush.msrb.mxu3 %v3187_v40 }
 0x8bf   :  { %3547 = vtanh.f32 %v6645_v37  ;;  %v2992_v35 = vadd.f32 0.5, %v2991_v36  ;;  %v3182_v36 = vld [vmem:[%s6863_s5 + $0x30] sm:$0xff]  ;;  %3274 = vmatpush.msrb.mxu1 %v3181_v44 }
 0x8c0   :  { %3247 = vmatpush.msrb.mxu0 %v3208_v60  ;;  %3294 = vmatpush.msrb.mxu2 %v3182_v36 }
 0x8c1   :  { %3314 = vmatpush.msrb.mxu3 %v6514_v27  ;;  %v7260_v27 = vld [vmem:[#allocation48_spill] sm:$0xff] }
 0x8c2   :  { %3248 = vmatpush.msrb.mxu0 %v3204_v24  ;;  %v1805_v10 = vadd.f32 %v7260_v27, %v7248_v32 }
 0x8c3   :  { %3315 = vmatpush.msrb.mxu3 %v3179_v50 }
 0x8c4   :  { %3249 = vmatpush.msrb.mxu0 %v3200_v61 }
 0x8c5   :  { %v3548_v52 = vpop.eup %3547 }
 0x8c6   :  { %v2997_v49 = vmul.f32 %v3548_v52, %v2992_v35  ;;  %3250 = vmatpush.msrb.mxu0 %v3196_v18  ;;  %v3176_v35 = vld [vmem:[%s6863_s5] sm:$0xff]  ;;  %v3177_v52 = vld [vmem:[%s6863_s5 + $0x8] sm:$0xff] }
 0x8c7   :  { %3275 = vmatpush.msrb.mxu1 %v3177_v52 }
 0x8c8   :  { %3403 = vst [vmem:[%s6867_s7 + $0x28] sm:$0xff] %v2997_v49  ;;  %3084 = vmatmul.f32.vlgmr.msra.gmra.mxu0 %v2997_v49  ;;  %3104 = vmatmul.f32.vlgmr.msra.gmra.mxu1 %v2997_v49 }
 0x8c9   :  { %3124 = vmatmul.f32.vlgmr.msra.gmra.mxu2 %v2997_v49  ;;  %3144 = vmatmul.f32.vlgmr.msra.gmra.mxu3 %v2997_v49  ;;  %v3178_v49 = vld [vmem:[%s6863_s5 + $0x10] sm:$0xff] }
 0x8ca   :  { %3251 = vmatpush.msrb.mxu0 %v3192_v19  ;;  %3295 = vmatpush.msrb.mxu2 %v3178_v49 }
 0x8cc   :  { %3252 = vmatpush.msrb.mxu0 %v3188_v48  ;;  %v1890_v48 = vadd.f32 %v7266_v29, %v7252_v54 }
 0x8ce   :  { %3253 = vmatpush.msrb.mxu0 %v3184_v59 }
 0x8d0   :  { %3254 = vmatpush.msrb.mxu0 %v3180_v1 }
 0x8d2   :  { %3255 = vmatpush.msrb.mxu0 %v3176_v35 }
 0x945   :  { %v3085_v55 = vpop.f32.mrf.mxu0  ;;  %v3105_v14 = vpop.f32.mrf.mxu1 }
 0x946   :  { %v3148_v57 = vadd.f32 %v3085_v55, %v1805_v10  ;;  %v3149_v30 = vadd.f32 %v3105_v14, %v1846_v13 }
 0x948   :  { %v3152_v12 = vmul.f32 0.5, %v3148_v57  ;;  %v3156_v3 = vmul.f32 0.5, %v3149_v30 }
 0x94a   :  { %3549 = vtanh.f32 %v3152_v12 }
 0x94b   :  { %3551 = vtanh.f32 %v3156_v3 }
 0x94c   :  { %v3125_v63 = vpop.f32.mrf.mxu2  ;;  %v3145_v0 = vpop.f32.mrf.mxu3 }
 0x94d   :  { %v3150_v45 = vadd.f32 %v3125_v63, %v1887_v4  ;;  %v3151_v6 = vadd.f32 %v3145_v0, %v1928_v5 }
 0x94f   :  { %3553 = vtanh.f32 %v3150_v45  ;;  %v3161_v34 = vmul.f32 0.5, %v3151_v6 }
 0x950   :  { %v3550_v21 = vpop.eup %3549 }
 0x951   :  { %v3552_v9 = vpop.eup %3551  ;;  %v3154_v20 = vmul.f32 0.5, %v3550_v21  ;;  %3555 = vtanh.f32 %v3161_v34 }
 0x952   :  { %v3158_v47 = vmul.f32 0.5, %v3552_v9 }
 0x953   :  { %v3155_v7 = vadd.f32 0.5, %v3154_v20 }
 0x954   :  { %v3159_v60 = vadd.f32 0.5, %v3158_v47 }
 0x955   :  { %v3554_v25 = vpop.eup %3553 }
 0x956   :  { %v3165_v62 = vmul.f32 %v3159_v60, %v6645_v37  ;;  %v3166_v16 = vmul.f32 %v3554_v25, %v3155_v7  ;;  %v7265_v37 = vld [vmem:[#allocation23_spill] sm:$0xff] }
 0x957   :  { %v3556_v24 = vpop.eup %3555  ;;  %v1849_v18 = vadd.f32 %v7265_v37, %v7250_v2 }
 0x958   :  { %v3167_v15 = vadd.f32 %v3166_v16, %v3165_v62  ;;  %v3163_v33 = vmul.f32 0.5, %v3556_v24 }
 0x95a   :  { %3557 = vtanh.f32 %v3167_v15  ;;  %v3164_v22 = vadd.f32 0.5, %v3163_v33 }
 0x960   :  { %v3558_v61 = vpop.eup %3557 }
 0x961   :  { %v3169_v23 = vmul.f32 %v3558_v61, %v3164_v22 }
 0x963   :  { %3404 = vst [vmem:[%s6867_s7 + $0x30] sm:$0xff] %v3169_v23  ;;  %3256 = vmatmul.f32.vlgmr.msrb.gmra.mxu0 %v3169_v23  ;;  %3276 = vmatmul.f32.vlgmr.msrb.gmra.mxu1 %v3169_v23 }
 0x964   :  { %3296 = vmatmul.f32.vlgmr.msrb.gmra.mxu2 %v3169_v23  ;;  %3316 = vmatmul.f32.vlgmr.msrb.gmra.mxu3 %v3169_v23 }
 0x9e0   :  { %v3257_v53 = vpop.f32.mrf.mxu0  ;;  %v3277_v43 = vpop.f32.mrf.mxu1 }
 0x9e1   :  { %v3320_v42 = vadd.f32 %v3257_v53, %v1808_v17  ;;  %v3321_v19 = vadd.f32 %v3277_v43, %v1849_v18 }
 0x9e3   :  { %v3324_v26 = vmul.f32 0.5, %v3320_v42  ;;  %v3328_v28 = vmul.f32 0.5, %v3321_v19 }
 0x9e5   :  { %3559 = vtanh.f32 %v3324_v26 }
 0x9e6   :  { %3561 = vtanh.f32 %v3328_v28 }
 0x9e7   :  { %v3297_v41 = vpop.f32.mrf.mxu2  ;;  %v3317_v59 = vpop.f32.mrf.mxu3 }
 0x9e8   :  { %v3322_v32 = vadd.f32 %v3297_v41, %v1890_v48  ;;  %v3323_v58 = vadd.f32 %v3317_v59, %v1931_v46 }
 0x9ea   :  { %3563 = vtanh.f32 %v3322_v32  ;;  %v3333_v2 = vmul.f32 0.5, %v3323_v58 }
 0x9eb   :  { %v3560_v31 = vpop.eup %3559 }
 0x9ec   :  { %v3562_v40 = vpop.eup %3561  ;;  %v3326_v1 = vmul.f32 0.5, %v3560_v31  ;;  %3565 = vtanh.f32 %v3333_v2 }
 0x9ed   :  { %v3330_v44 = vmul.f32 0.5, %v3562_v40 }
 0x9ee   :  { %v3327_v36 = vadd.f32 0.5, %v3326_v1 }
 0x9ef   :  { %v3331_v35 = vadd.f32 0.5, %v3330_v44 }
 0x9f0   :  { %v3564_v52 = vpop.eup %3563 }
 0x9f1   :  { %v3337_v49 = vmul.f32 %v3331_v35, %v3167_v15  ;;  %v3338_v54 = vmul.f32 %v3564_v52, %v3327_v36 }
 0x9f2   :  { %v3566_v50 = vpop.eup %3565 }
 0x9f3   :  { %v3339_v27 = vadd.f32 %v3338_v54, %v3337_v49  ;;  %v3335_v56 = vmul.f32 0.5, %v3566_v50 }
 0x9f5   :  { %3567 = vtanh.f32 %v3339_v27  ;;  %3407 = vst [vmem:[%s6864_s9 + $0x8] sm:$0xff] %v3339_v27  ;;  %v3336_v10 = vadd.f32 0.5, %v3335_v56 }
 0x9fb   :  { %v3568_v39 = vpop.eup %3567 }
 0x9fc   :  { %v3341_v13 = vmul.f32 %v3568_v39, %v3336_v10 }
 0x9fe   :  { %3405 = vst [vmem:[%s6867_s7 + $0x38] sm:$0xff] %v3341_v13 }
 0x9ff   :  { %3406 = vst [vmem:[%s6865_s8 + $0x8] sm:$0xff] %v3341_v13 }

</bundles_post_ra>
